<compile_context>
chip_gen: v7x
topology: tpu7x:2x2x1
jax: 0.10.0
libtpu: 0.0.40
codegen_flags: <defaults>
</compile_context>

<pallas_src>
import functools

import jax
import jax.numpy as jnp
from jax.experimental import pallas as pl
from jax.experimental.pallas import tpu as pltpu

EPS = 1e-5
LANE = 128                      # channel (lane) padding target
TM = 256                        # rows (N*Ho*Wo) per grid step, multiple of 8
VMEM_LIMIT = 32 * 1024 * 1024   # explicit scoped-VMEM budget (safe on v5e/v6e/v7x)


# ---------------- Pallas kernels -------------------------------------------


def conv_stats_kernel(x_ref, w_ref, z_ref, psum_ref, psq_ref):
    """One wide-K MXU matmul per M-tile + per-tile BN partial statistics.

    x_ref : (TM, Kp)     bf16  im2col rows (Kp = 9*Cin [+ Cin] padded to 128)
    w_ref : (Kp, Cp)     bf16  resident weights (constant index_map)
    z_ref : (TM, Cp)     bf16/f32  pre-BN conv output tile
    psum_ref / psq_ref : (1, 1, Cp) f32  per-tile channel sum / sum-of-squares
    """
    z = jnp.dot(x_ref[...], w_ref[...], preferred_element_type=jnp.float32)
    z_ref[...] = z.astype(z_ref.dtype)
    psum_ref[...] = jnp.sum(z, axis=0, keepdims=True)[None]
    psq_ref[...] = jnp.sum(z * z, axis=0, keepdims=True)[None]


def bn_relu_kernel(z_ref, scale_ref, shift_ref, o_ref):
    """Folded BatchNorm affine (precomputed scale/shift) + ReLU, per M-tile."""
    y = z_ref[...].astype(jnp.float32) * scale_ref[...] + shift_ref[...]
    o_ref[...] = jnp.maximum(y, 0.0).astype(o_ref.dtype)


# ---------------- pallas_call wrappers --------------------------------------


def _round_up(v, m):
    return (v + m - 1) // m * m


def _pad_axis(a, target, axis):
    if a.shape[axis] == target:
        return a
    pad = [(0, 0)] * a.ndim
    pad[axis] = (0, target - a.shape[axis])
    return jnp.pad(a, pad)


def _pad_vec(v, target):
    return jnp.pad(v, (0, target - v.shape[0]))


def _im2col3x3_wide(xp, ho, wo, stride):
    """xp: padded NHWC (N, H+2, W+2, C) -> (N*ho*wo, 9*C), tap-major columns."""
    n, _, _, c = xp.shape
    cols = []
    for ky in range(3):
        for kx in range(3):
            win = xp[:,
                     ky:ky + (ho - 1) * stride + 1:stride,
                     kx:kx + (wo - 1) * stride + 1:stride,
                     :]
            cols.append(win.reshape(n * ho * wo, c))
    return jnp.concatenate(cols, axis=1)


def _conv_stats(xcol, wmat, tm, z_dtype):
    mp, k = xcol.shape
    cp = wmat.shape[1]
    nt = mp // tm
    return pl.pallas_call(
        conv_stats_kernel,
        out_shape=(jax.ShapeDtypeStruct((mp, cp), z_dtype),
                   jax.ShapeDtypeStruct((nt, 1, cp), jnp.float32),
                   jax.ShapeDtypeStruct((nt, 1, cp), jnp.float32)),
        grid=(nt,),
        in_specs=[pl.BlockSpec((tm, k), lambda i: (i, 0)),
                  pl.BlockSpec((k, cp), lambda i: (0, 0))],     # weights resident
        out_specs=(pl.BlockSpec((tm, cp), lambda i: (i, 0)),
                   pl.BlockSpec((1, 1, cp), lambda i: (i, 0, 0)),
                   pl.BlockSpec((1, 1, cp), lambda i: (i, 0, 0))),
        compiler_params=pltpu.CompilerParams(
            dimension_semantics=("parallel",),
            vmem_limit_bytes=VMEM_LIMIT),
    )(xcol, wmat)


def _bn_relu(z, scale, shift, tm, out_dtype):
    mp, cp = z.shape
    nt = mp // tm
    return pl.pallas_call(
        bn_relu_kernel,
        out_shape=jax.ShapeDtypeStruct((mp, cp), out_dtype),
        grid=(nt,),
        in_specs=[pl.BlockSpec((tm, cp), lambda i: (i, 0)),
                  pl.BlockSpec((1, cp), lambda i: (0, 0)),
                  pl.BlockSpec((1, cp), lambda i: (0, 0))],
        out_specs=pl.BlockSpec((tm, cp), lambda i: (i, 0)),
        compiler_params=pltpu.CompilerParams(
            dimension_semantics=("parallel",),
            vmem_limit_bytes=VMEM_LIMIT),
    )(z, scale, shift)


def _bn_fold(psum, psq, m, gamma, beta, cp):
    """Reduce per-tile partial sums (tiny) and fold BN into scale/shift."""
    s = psum.sum(axis=0)[0]
    q = psq.sum(axis=0)[0]
    mean = s / m
    var = jnp.maximum(q / m - mean * mean, 0.0)
    scale = _pad_vec(gamma, cp) * jax.lax.rsqrt(var + EPS)
    shift = _pad_vec(beta, cp) - mean * scale
    return (scale.reshape(1, cp).astype(jnp.float32),
            shift.reshape(1, cp).astype(jnp.float32))


# ---------------- forward pass ----------------------------------------------


def res_block_forward(x_nchw, params, stride=1, tm=TM):
    w1, w2, wsc, g1, b1, g2, b2 = params          # PyTorch layouts (OIHW, OI11, C)
    n, cin, h, w = x_nchw.shape
    cmid, cout = w1.shape[0], w2.shape[0]
    cmid_p, cout_p = _round_up(cmid, LANE), _round_up(cout, LANE)

    x = jnp.transpose(x_nchw, (0, 2, 3, 1)).astype(jnp.float32)   # NHWC
    ho = (h + 2 - 3) // stride + 1
    wo = (w + 2 - 3) // stride + 1
    m = n * ho * wo
    tm = min(tm, _round_up(m, 8))
    mp = _round_up(m, tm)      # padded rows are all-zero -> contribute 0 to stats

    # ----- stage 1: conv1 (single wide-K matmul) + BN1 stats -----------------
    k1 = _round_up(9 * cin, LANE)
    xp = jnp.pad(x, ((0, 0), (1, 1), (1, 1), (0, 0)))
    xcol = _im2col3x3_wide(xp, ho, wo, stride)                    # (m, 9*cin)
    xcol = _pad_axis(jnp.pad(xcol, ((0, mp - m), (0, 0))), k1, 1)
    xcol = xcol.astype(jnp.bfloat16)
    w1w = jnp.transpose(w1, (2, 3, 1, 0)).reshape(9 * cin, cmid)  # (9*cin, cmid)
    w1w = _pad_axis(_pad_axis(w1w, cmid_p, 1), k1, 0).astype(jnp.bfloat16)

    z1, ps1, pq1 = _conv_stats(xcol, w1w, tm, jnp.bfloat16)
    scale1, shift1 = _bn_fold(ps1, pq1, m, g1, b1, cmid_p)
    h1 = _bn_relu(z1, scale1, shift1, tm, jnp.bfloat16)           # (mp, cmid_p)

    # ----- stage 2: conv2 + 1x1 shortcut folded into ONE wide-K matmul -------
    k2 = _round_up(9 * cmid_p + cin, LANE)
    h1v = h1[:m].reshape(n, ho, wo, cmid_p)
    hp = jnp.pad(h1v, ((0, 0), (1, 1), (1, 1), (0, 0)))
    hcol = _im2col3x3_wide(hp, ho, wo, 1)                         # (m, 9*cmid_p)
    xsc = x[:, ::stride, ::stride, :].reshape(m, cin)             # 1x1 / stride-s
    xcat = jnp.concatenate([hcol, xsc.astype(jnp.bfloat16)], axis=1)
    xcat = _pad_axis(jnp.pad(xcat, ((0, mp - m), (0, 0))), k2, 1)

    w2w = jnp.transpose(w2, (2, 3, 1, 0))                         # (3,3,cmid,cout)
    w2w = jnp.pad(w2w, ((0, 0), (0, 0),
                        (0, cmid_p - cmid), (0, cout_p - cout)))
    w2w = w2w.reshape(9 * cmid_p, cout_p)
    wscw = _pad_axis(wsc.reshape(cout, cin).T, cout_p, 1)         # (cin, cout_p)
    wcat = _pad_axis(jnp.concatenate([w2w, wscw], axis=0), k2, 0)
    wcat = wcat.astype(jnp.bfloat16)

    z2, ps2, pq2 = _conv_stats(xcat, wcat, tm, jnp.float32)
    scale2, shift2 = _bn_fold(ps2, pq2, m, g2, b2, cout_p)
    y = _bn_relu(z2, scale2, shift2, tm, jnp.float32)             # (mp, cout_p)

    out = y[:m, :cout].reshape(n, ho, wo, cout)
    return jnp.transpose(out, (0, 3, 1, 2))                       # NCHW


# ---------------- deterministic parameter init (mirrors __init__) -----------


def init_params(key, in_channels, mid_channels, out_channels, stride=1):
    k1, k2, k3 = jax.random.split(key, 3)

    def kaiming_uniform(k, shape):
        fan_in = shape[1] * shape[2] * shape[3]
        bound = 1.0 / jnp.sqrt(fan_in)
        return jax.random.uniform(k, shape, jnp.float32, -bound, bound)

    w1 = kaiming_uniform(k1, (mid_channels, in_channels, 3, 3))
    w2 = kaiming_uniform(k2, (out_channels, mid_channels, 3, 3))

    if stride == 1:
        # frozen (pseudo-)identity 1x1 shortcut, exactly as in the PyTorch module
        wsc = jnp.zeros((out_channels, in_channels, 1, 1), jnp.float32)
        idx = jnp.arange(min(in_channels, out_channels))
        wsc = wsc.at[idx, idx, 0, 0].set(1.0)
    else:
        wsc = kaiming_uniform(k3, (out_channels, in_channels, 1, 1))

    g1 = jnp.ones((mid_channels,), jnp.float32)
    b1 = jnp.zeros((mid_channels,), jnp.float32)
    g2 = jnp.ones((out_channels,), jnp.float32)
    b2 = jnp.zeros((out_channels,), jnp.float32)
    return (w1, w2, wsc, g1, b1, g2, b2)


# ---------------- pure-JAX reference for verification -----------------------


def res_block_reference(x, params, stride=1):
    w1, w2, wsc, g1, b1, g2, b2 = params

    def conv(v, wgt, s, pad):
        return jax.lax.conv_general_dilated(
            v, wgt, (s, s), [(pad, pad), (pad, pad)],
            dimension_numbers=("NCHW", "OIHW", "NCHW"))

    def bn(v, g, b):
        mean = v.mean(axis=(0, 2, 3), keepdims=True)
        var = ((v - mean) ** 2).mean(axis=(0, 2, 3), keepdims=True)
        return ((v - mean) * jax.lax.rsqrt(var + EPS)
                * g.reshape(1, -1, 1, 1) + b.reshape(1, -1, 1, 1))

    h = jax.nn.relu(bn(conv(x, w1, stride, 1), g1, b1))
    out = conv(h, w2, 1, 1) + conv(x, wsc, stride, 0)
    return jax.nn.relu(bn(out, g2, b2))


if __name__ == "__main__":
    N, CIN, H, W = 2, 4, 16, 16
    CMID, COUT, STRIDE = 8, 8, 1

    key = jax.random.PRNGKey(0)
    kx, kp = jax.random.split(key)
    x = jax.random.normal(kx, (N, CIN, H, W), jnp.float32)
    params = init_params(kp, CIN, CMID, COUT, stride=STRIDE)

    fwd = jax.jit(functools.partial(res_block_forward, stride=STRIDE))
    out = jax.block_until_ready(fwd(x, params))

    ref = jax.block_until_ready(res_block_reference(x, params, stride=STRIDE))
    assert out.shape == ref.shape, (out.shape, ref.shape)
    max_err = float(jnp.max(jnp.abs(out - ref)))
    assert jnp.allclose(out, ref, rtol=3e-2, atol=3e-2), max_err

    print("KERNEL_OK")
</pallas_src>

<mosaic_0001>
module attributes {stable_mosaic.version = 11 : i64} {
  func.func @conv_stats_kernel(%arg0: i32, %arg1: memref<256x128xbf16, #tpu.memory_space<vmem>>, %arg2: memref<128x128xbf16, #tpu.memory_space<vmem>>, %arg3: memref<256x128xbf16, #tpu.memory_space<vmem>>, %arg4: memref<1x1x128xf32, #tpu.memory_space<vmem>>, %arg5: memref<1x1x128xf32, #tpu.memory_space<vmem>>) attributes {dimension_semantics = [#tpu.dimension_semantics<parallel>], iteration_bounds = array<i64: 2>, scalar_prefetch = 0 : i64, scratch_operands = 0 : i64, tpu.core_type = #tpu.core_type<tc>, window_params = [{transform_indices = @transform_0, window_bounds = array<i64: 256, 128>}, {pipeline_mode = #tpu.pipeline_mode<synchronous>, transform_indices = @transform_1, window_bounds = array<i64: 128, 128>}, {transform_indices = @transform_2, window_bounds = array<i64: 256, 128>}, {transform_indices = @transform_3, window_bounds = array<i64: 1, 1, 128>}, {transform_indices = @transform_4, window_bounds = array<i64: 1, 1, 128>}]} {
    %c0 = arith.constant 0 : index
    %c0_0 = arith.constant 0 : index
    %0 = vector.load %arg1[%c0, %c0_0] : memref<256x128xbf16, #tpu.memory_space<vmem>>, vector<256x128xbf16>
    %c0_1 = arith.constant 0 : index
    %c0_2 = arith.constant 0 : index
    %1 = vector.load %arg2[%c0_1, %c0_2] : memref<128x128xbf16, #tpu.memory_space<vmem>>, vector<128x128xbf16>
    %cst = arith.constant dense<0.000000e+00> : vector<256x128xf32>
    %2 = tpu.matmul %0, %1, %cst {dimension_numbers = #tpu.dot_dimension_numbers<[1], [0], [0], [1], [0, 0, 1, 1], [], []>} : vector<256x128xbf16>, vector<128x128xbf16>, vector<256x128xf32> -> vector<256x128xf32>
    %3 = arith.truncf %2 : vector<256x128xf32> to vector<256x128xbf16>
    %c0_3 = arith.constant 0 : index
    %c0_4 = arith.constant 0 : index
    %4 = vector.load %arg3[%c0_3, %c0_4] : memref<256x128xbf16, #tpu.memory_space<vmem>>, vector<256x128xbf16>
    tpu.vector_store %arg3[%c0_3, %c0_4], %3 {strides = array<i32>} : memref<256x128xbf16, #tpu.memory_space<vmem>>, vector<256x128xbf16>,
    %cst_5 = arith.constant dense<0.000000e+00> : vector<128xf32>
    %5 = vector.multi_reduction <add>, %2, %cst_5 [0] : vector<256x128xf32> to vector<128xf32>
    %6 = vector.shape_cast %5 : vector<128xf32> to vector<1x128xf32>
    %7 = vector.shape_cast %6 : vector<1x128xf32> to vector<1x1x128xf32>
    %c0_6 = arith.constant 0 : index
    %c0_7 = arith.constant 0 : index
    %c0_8 = arith.constant 0 : index
    %8 = vector.load %arg4[%c0_6, %c0_7, %c0_8] : memref<1x1x128xf32, #tpu.memory_space<vmem>>, vector<1x1x128xf32>
    tpu.vector_store %arg4[%c0_6, %c0_7, %c0_8], %7 {strides = array<i32>} : memref<1x1x128xf32, #tpu.memory_space<vmem>>, vector<1x1x128xf32>,
    %9 = arith.mulf %2, %2 : vector<256x128xf32>
    %cst_9 = arith.constant dense<0.000000e+00> : vector<128xf32>
    %10 = vector.multi_reduction <add>, %9, %cst_9 [0] : vector<256x128xf32> to vector<128xf32>
    %11 = vector.shape_cast %10 : vector<128xf32> to vector<1x128xf32>
    %12 = vector.shape_cast %11 : vector<1x128xf32> to vector<1x1x128xf32>
    %c0_10 = arith.constant 0 : index
    %c0_11 = arith.constant 0 : index
    %c0_12 = arith.constant 0 : index
    %13 = vector.load %arg5[%c0_10, %c0_11, %c0_12] : memref<1x1x128xf32, #tpu.memory_space<vmem>>, vector<1x1x128xf32>
    tpu.vector_store %arg5[%c0_10, %c0_11, %c0_12], %12 {strides = array<i32>} : memref<1x1x128xf32, #tpu.memory_space<vmem>>, vector<1x1x128xf32>,
    return
  }
  func.func @transform_0(%arg0: i32) -> (i32, i32) {
    %c0_i32 = arith.constant 0 : i32
    %c0_i32_0 = arith.constant 0 : i32
    return %arg0, %c0_i32 : i32, i32
  }
  func.func @transform_1(%arg0: i32) -> (i32, i32) {
    %c0_i32 = arith.constant 0 : i32
    %c0_i32_0 = arith.constant 0 : i32
    %c0_i32_1 = arith.constant 0 : i32
    return %c0_i32, %c0_i32_0 : i32, i32
  }
  func.func @transform_2(%arg0: i32) -> (i32, i32) {
    %c0_i32 = arith.constant 0 : i32
    %c0_i32_0 = arith.constant 0 : i32
    return %arg0, %c0_i32 : i32, i32
  }
  func.func @transform_3(%arg0: i32) -> (i32, i32, i32) {
    %c0_i32 = arith.constant 0 : i32
    %c0_i32_0 = arith.constant 0 : i32
    %c0_i32_1 = arith.constant 0 : i32
    return %arg0, %c0_i32, %c0_i32_0 : i32, i32, i32
  }
  func.func @transform_4(%arg0: i32) -> (i32, i32, i32) {
    %c0_i32 = arith.constant 0 : i32
    %c0_i32_0 = arith.constant 0 : i32
    %c0_i32_1 = arith.constant 0 : i32
    return %arg0, %c0_i32, %c0_i32_0 : i32, i32, i32
  }
}

module attributes {stable_mosaic.version = 11 : i64} {
  func.func @bn_relu_kernel(%arg0: i32, %arg1: memref<256x128xbf16, #tpu.memory_space<vmem>>, %arg2: memref<1x128xf32, #tpu.memory_space<vmem>>, %arg3: memref<1x128xf32, #tpu.memory_space<vmem>>, %arg4: memref<256x128xbf16, #tpu.memory_space<vmem>>) attributes {dimension_semantics = [#tpu.dimension_semantics<parallel>], iteration_bounds = array<i64: 2>, scalar_prefetch = 0 : i64, scratch_operands = 0 : i64, tpu.core_type = #tpu.core_type<tc>, window_params = [{transform_indices = @transform_0, window_bounds = array<i64: 256, 128>}, {pipeline_mode = #tpu.pipeline_mode<synchronous>, transform_indices = @transform_1, window_bounds = array<i64: 1, 128>}, {pipeline_mode = #tpu.pipeline_mode<synchronous>, transform_indices = @transform_2, window_bounds = array<i64: 1, 128>}, {transform_indices = @transform_3, window_bounds = array<i64: 256, 128>}]} {
    %c0 = arith.constant 0 : index
    %c0_0 = arith.constant 0 : index
    %0 = vector.load %arg1[%c0, %c0_0] : memref<256x128xbf16, #tpu.memory_space<vmem>>, vector<256x128xbf16>
    %1 = arith.extf %0 : vector<256x128xbf16> to vector<256x128xf32>
    %c0_1 = arith.constant 0 : index
    %c0_2 = arith.constant 0 : index
    %2 = vector.load %arg2[%c0_1, %c0_2] : memref<1x128xf32, #tpu.memory_space<vmem>>, vector<1x128xf32>
    %3 = vector.broadcast %2 : vector<1x128xf32> to vector<256x128xf32>
    %4 = arith.mulf %1, %3 : vector<256x128xf32>
    %c0_3 = arith.constant 0 : index
    %c0_4 = arith.constant 0 : index
    %5 = vector.load %arg3[%c0_3, %c0_4] : memref<1x128xf32, #tpu.memory_space<vmem>>, vector<1x128xf32>
    %6 = vector.broadcast %5 : vector<1x128xf32> to vector<256x128xf32>
    %7 = arith.addf %4, %6 : vector<256x128xf32>
    %cst = arith.constant 0.000000e+00 : f32
    %8 = vector.broadcast %cst : f32 to vector<256x128xf32>
    %9 = arith.maximumf %7, %8 : vector<256x128xf32>
    %10 = arith.truncf %9 : vector<256x128xf32> to vector<256x128xbf16>
    %c0_5 = arith.constant 0 : index
    %c0_6 = arith.constant 0 : index
    %11 = vector.load %arg4[%c0_5, %c0_6] : memref<256x128xbf16, #tpu.memory_space<vmem>>, vector<256x128xbf16>
    tpu.vector_store %arg4[%c0_5, %c0_6], %10 {strides = array<i32>} : memref<256x128xbf16, #tpu.memory_space<vmem>>, vector<256x128xbf16>,
    return
  }
  func.func @transform_0(%arg0: i32) -> (i32, i32) {
    %c0_i32 = arith.constant 0 : i32
    %c0_i32_0 = arith.constant 0 : i32
    return %arg0, %c0_i32 : i32, i32
  }
  func.func @transform_1(%arg0: i32) -> (i32, i32) {
    %c0_i32 = arith.constant 0 : i32
    %c0_i32_0 = arith.constant 0 : i32
    %c0_i32_1 = arith.constant 0 : i32
    return %c0_i32, %c0_i32_0 : i32, i32
  }
  func.func @transform_2(%arg0: i32) -> (i32, i32) {
    %c0_i32 = arith.constant 0 : i32
    %c0_i32_0 = arith.constant 0 : i32
    %c0_i32_1 = arith.constant 0 : i32
    return %c0_i32, %c0_i32_0 : i32, i32
  }
  func.func @transform_3(%arg0: i32) -> (i32, i32) {
    %c0_i32 = arith.constant 0 : i32
    %c0_i32_0 = arith.constant 0 : i32
    return %arg0, %c0_i32 : i32, i32
  }
}

module attributes {stable_mosaic.version = 11 : i64} {
  func.func @bn_relu_kernel(%arg0: i32, %arg1: memref<256x128xf32, #tpu.memory_space<vmem>>, %arg2: memref<1x128xf32, #tpu.memory_space<vmem>>, %arg3: memref<1x128xf32, #tpu.memory_space<vmem>>, %arg4: memref<256x128xf32, #tpu.memory_space<vmem>>) attributes {dimension_semantics = [#tpu.dimension_semantics<parallel>], iteration_bounds = array<i64: 2>, scalar_prefetch = 0 : i64, scratch_operands = 0 : i64, tpu.core_type = #tpu.core_type<tc>, window_params = [{transform_indices = @transform_0, window_bounds = array<i64: 256, 128>}, {pipeline_mode = #tpu.pipeline_mode<synchronous>, transform_indices = @transform_1, window_bounds = array<i64: 1, 128>}, {pipeline_mode = #tpu.pipeline_mode<synchronous>, transform_indices = @transform_2, window_bounds = array<i64: 1, 128>}, {transform_indices = @transform_3, window_bounds = array<i64: 256, 128>}]} {
    %c0 = arith.constant 0 : index
    %c0_0 = arith.constant 0 : index
    %0 = vector.load %arg1[%c0, %c0_0] : memref<256x128xf32, #tpu.memory_space<vmem>>, vector<256x128xf32>
    %c0_1 = arith.constant 0 : index
    %c0_2 = arith.constant 0 : index
    %1 = vector.load %arg2[%c0_1, %c0_2] : memref<1x128xf32, #tpu.memory_space<vmem>>, vector<1x128xf32>
    %2 = vector.broadcast %1 : vector<1x128xf32> to vector<256x128xf32>
    %3 = arith.mulf %0, %2 : vector<256x128xf32>
    %c0_3 = arith.constant 0 : index
    %c0_4 = arith.constant 0 : index
    %4 = vector.load %arg3[%c0_3, %c0_4] : memref<1x128xf32, #tpu.memory_space<vmem>>, vector<1x128xf32>
    %5 = vector.broadcast %4 : vector<1x128xf32> to vector<256x128xf32>
    %6 = arith.addf %3, %5 : vector<256x128xf32>
    %cst = arith.constant 0.000000e+00 : f32
    %7 = vector.broadcast %cst : f32 to vector<256x128xf32>
    %8 = arith.maximumf %6, %7 : vector<256x128xf32>
    %c0_5 = arith.constant 0 : index
    %c0_6 = arith.constant 0 : index
    %9 = vector.load %arg4[%c0_5, %c0_6] : memref<256x128xf32, #tpu.memory_space<vmem>>, vector<256x128xf32>
    tpu.vector_store %arg4[%c0_5, %c0_6], %8 {strides = array<i32>} : memref<256x128xf32, #tpu.memory_space<vmem>>, vector<256x128xf32>,
    return
  }
  func.func @transform_0(%arg0: i32) -> (i32, i32) {
    %c0_i32 = arith.constant 0 : i32
    %c0_i32_0 = arith.constant 0 : i32
    return %arg0, %c0_i32 : i32, i32
  }
  func.func @transform_1(%arg0: i32) -> (i32, i32) {
    %c0_i32 = arith.constant 0 : i32
    %c0_i32_0 = arith.constant 0 : i32
    %c0_i32_1 = arith.constant 0 : i32
    return %c0_i32, %c0_i32_0 : i32, i32
  }
  func.func @transform_2(%arg0: i32) -> (i32, i32) {
    %c0_i32 = arith.constant 0 : i32
    %c0_i32_0 = arith.constant 0 : i32
    %c0_i32_1 = arith.constant 0 : i32
    return %c0_i32, %c0_i32_0 : i32, i32
  }
  func.func @transform_3(%arg0: i32) -> (i32, i32) {
    %c0_i32 = arith.constant 0 : i32
    %c0_i32_0 = arith.constant 0 : i32
    return %arg0, %c0_i32 : i32, i32
  }
}

module attributes {stable_mosaic.version = 11 : i64} {
  func.func @conv_stats_kernel(%arg0: i32, %arg1: memref<256x1280xbf16, #tpu.memory_space<vmem>>, %arg2: memref<1280x128xbf16, #tpu.memory_space<vmem>>, %arg3: memref<256x128xf32, #tpu.memory_space<vmem>>, %arg4: memref<1x1x128xf32, #tpu.memory_space<vmem>>, %arg5: memref<1x1x128xf32, #tpu.memory_space<vmem>>) attributes {dimension_semantics = [#tpu.dimension_semantics<parallel>], iteration_bounds = array<i64: 2>, scalar_prefetch = 0 : i64, scratch_operands = 0 : i64, tpu.core_type = #tpu.core_type<tc>, window_params = [{transform_indices = @transform_0, window_bounds = array<i64: 256, 1280>}, {pipeline_mode = #tpu.pipeline_mode<synchronous>, transform_indices = @transform_1, window_bounds = array<i64: 1280, 128>}, {transform_indices = @transform_2, window_bounds = array<i64: 256, 128>}, {transform_indices = @transform_3, window_bounds = array<i64: 1, 1, 128>}, {transform_indices = @transform_4, window_bounds = array<i64: 1, 1, 128>}]} {
    %c0 = arith.constant 0 : index
    %c0_0 = arith.constant 0 : index
    %0 = vector.load %arg1[%c0, %c0_0] : memref<256x1280xbf16, #tpu.memory_space<vmem>>, vector<256x1280xbf16>
    %c0_1 = arith.constant 0 : index
    %c0_2 = arith.constant 0 : index
    %1 = vector.load %arg2[%c0_1, %c0_2] : memref<1280x128xbf16, #tpu.memory_space<vmem>>, vector<1280x128xbf16>
    %cst = arith.constant dense<0.000000e+00> : vector<256x128xf32>
    %2 = tpu.matmul %0, %1, %cst {dimension_numbers = #tpu.dot_dimension_numbers<[1], [0], [0], [1], [0, 0, 1, 1], [], []>} : vector<256x1280xbf16>, vector<1280x128xbf16>, vector<256x128xf32> -> vector<256x128xf32>
    %c0_3 = arith.constant 0 : index
    %c0_4 = arith.constant 0 : index
    %3 = vector.load %arg3[%c0_3, %c0_4] : memref<256x128xf32, #tpu.memory_space<vmem>>, vector<256x128xf32>
    tpu.vector_store %arg3[%c0_3, %c0_4], %2 {strides = array<i32>} : memref<256x128xf32, #tpu.memory_space<vmem>>, vector<256x128xf32>,
    %cst_5 = arith.constant dense<0.000000e+00> : vector<128xf32>
    %4 = vector.multi_reduction <add>, %2, %cst_5 [0] : vector<256x128xf32> to vector<128xf32>
    %5 = vector.shape_cast %4 : vector<128xf32> to vector<1x128xf32>
    %6 = vector.shape_cast %5 : vector<1x128xf32> to vector<1x1x128xf32>
    %c0_6 = arith.constant 0 : index
    %c0_7 = arith.constant 0 : index
    %c0_8 = arith.constant 0 : index
    %7 = vector.load %arg4[%c0_6, %c0_7, %c0_8] : memref<1x1x128xf32, #tpu.memory_space<vmem>>, vector<1x1x128xf32>
    tpu.vector_store %arg4[%c0_6, %c0_7, %c0_8], %6 {strides = array<i32>} : memref<1x1x128xf32, #tpu.memory_space<vmem>>, vector<1x1x128xf32>,
    %8 = arith.mulf %2, %2 : vector<256x128xf32>
    %cst_9 = arith.constant dense<0.000000e+00> : vector<128xf32>
    %9 = vector.multi_reduction <add>, %8, %cst_9 [0] : vector<256x128xf32> to vector<128xf32>
    %10 = vector.shape_cast %9 : vector<128xf32> to vector<1x128xf32>
    %11 = vector.shape_cast %10 : vector<1x128xf32> to vector<1x1x128xf32>
    %c0_10 = arith.constant 0 : index
    %c0_11 = arith.constant 0 : index
    %c0_12 = arith.constant 0 : index
    %12 = vector.load %arg5[%c0_10, %c0_11, %c0_12] : memref<1x1x128xf32, #tpu.memory_space<vmem>>, vector<1x1x128xf32>
    tpu.vector_store %arg5[%c0_10, %c0_11, %c0_12], %11 {strides = array<i32>} : memref<1x1x128xf32, #tpu.memory_space<vmem>>, vector<1x1x128xf32>,
    return
  }
  func.func @transform_0(%arg0: i32) -> (i32, i32) {
    %c0_i32 = arith.constant 0 : i32
    %c0_i32_0 = arith.constant 0 : i32
    return %arg0, %c0_i32 : i32, i32
  }
  func.func @transform_1(%arg0: i32) -> (i32, i32) {
    %c0_i32 = arith.constant 0 : i32
    %c0_i32_0 = arith.constant 0 : i32
    %c0_i32_1 = arith.constant 0 : i32
    return %c0_i32, %c0_i32_0 : i32, i32
  }
  func.func @transform_2(%arg0: i32) -> (i32, i32) {
    %c0_i32 = arith.constant 0 : i32
    %c0_i32_0 = arith.constant 0 : i32
    return %arg0, %c0_i32 : i32, i32
  }
  func.func @transform_3(%arg0: i32) -> (i32, i32, i32) {
    %c0_i32 = arith.constant 0 : i32
    %c0_i32_0 = arith.constant 0 : i32
    %c0_i32_1 = arith.constant 0 : i32
    return %arg0, %c0_i32, %c0_i32_0 : i32, i32, i32
  }
  func.func @transform_4(%arg0: i32) -> (i32, i32, i32) {
    %c0_i32 = arith.constant 0 : i32
    %c0_i32_0 = arith.constant 0 : i32
    %c0_i32_1 = arith.constant 0 : i32
    return %arg0, %c0_i32, %c0_i32_0 : i32, i32, i32
  }
}

</mosaic_0001>

<bundles_post_ra>
// kernel: res_block_forward.5
= control target key start
LH: loop header
LB: loop body
LE: loop exit
PB: predicated region body
PF: predicated region fallthrough
CT: control target
= control target key end

     0   :  { %s851_s12 = smov 0   ;;  %s985_s0 = inlined_call_operand.vmem [shape: bf16[512,128], index: 0, kind: input, shape index: {}]   ;;  %s986_s1 = inlined_call_operand.vmem [shape: f32[1,128], index: 1, kind: input, shape index: {}]   ;;  %s987_s2 = inlined_call_operand.vmem [shape: f32[1,128], index: 2, kind: input, shape index: {}]   ;;  %s988_s3 = inlined_call_operand.vmem [shape: bf16[512,128], index: 3, kind: output, shape index: {}]  }
   0x1 LB: > { %s564_s13 = sadd.s32 4294967295, %s829_s12   ;;  %p568_p0 = scmp.ge.s32.totalorder %s829_s12, 1  ;;  %s829_s12 = sphi %s851_s12, %s13_s12  }
   0x2   : > { %p138_p1 = scmp.lt.s32.totalorder %s829_s12, 3 }
   0x4   : > { %p139_p2 = pnand %p568_p0, %p138_p1 }
   0x5   : > { %s569_s14 = sshll.u32 (!%p139_p2), %s564_s13, 5  ;;  %v872_v0 = vld [vmem:[%s986_s1] ss:$0 sm:$0xff] (!%p139_p2) }
   0x6   : > { %142 = sbr.rel (%p139_p2) target bundleno = 59 (0x3b), region = 32  ;;  %p163_p3 = scmp.lt.s32.totalorder (!%p139_p2), %s569_s14, 63  ;;  %v881_v9 = vld [vmem:[%s987_s2] ss:$0 sm:$0xff] (!%p139_p2) }
   0xd   : > { %s990_s14 = smov (!%p163_p3, %s569_s14), 63 }
   0xe   : > { %s570_s15 = sshll.u32 %s990_s14, 2 }
   0xf   : > { %s867_s18 = scalar_lea.vmem %s985_s0, %s570_s15  ;;  %s906_s25 = scalar_lea.vmem %s988_s3, %s570_s15 }
  0x10   : > { %v642_v1 = vld [vmem:[%s867_s18] sm:$0xff]   ;;  %v785_v2 = vld [vmem:[%s867_s18 + $0x8] sm:$0xff]   ;;  %v786_v3 = vld [vmem:[%s867_s18 + $0x10] sm:$0xff]  }
  0x11   : > { %v643_v4 = vunpack.c.l.bf16 %v642_v1  ;;  %v644_v5 = vunpack.c.h.bf16 %v642_v1  ;;  %v647_v6 = vunpack.c.l.bf16 %v785_v2  ;;  %v648_v7 = vunpack.c.h.bf16 %v785_v2  ;;  %v787_v8 = vld [vmem:[%s867_s18 + $0x18] sm:$0xff]   ;;  %v788_v30 = vld [vmem:[%s867_s18 + $0x20] sm:$0xff]   ;;  %v789_v35 = vld [vmem:[%s867_s18 + $0x28] sm:$0xff]  }
  0x12   : > { %v651_v10 = vunpack.c.l.bf16 %v786_v3  ;;  %v652_v11 = vunpack.c.h.bf16 %v786_v3  ;;  %v655_v12 = vunpack.c.l.bf16 %v787_v8  ;;  %v656_v13 = vunpack.c.h.bf16 %v787_v8  ;;  %v790_v40 = vld [vmem:[%s867_s18 + $0x30] sm:$0xff]   ;;  %v791_v45 = vld [vmem:[%s867_s18 + $0x38] sm:$0xff]   ;;  %v792_v3 = vld [vmem:[%s867_s18 + $0x40] sm:$0xff]  }
  0x13   : > { %v245_v14 = vmul.f32 %v643_v4, %v872_v0  ;;  %v246_v15 = vmul.f32 %v644_v5, %v872_v0  ;;  %v247_v16 = vmul.f32 %v647_v6, %v872_v0  ;;  %v248_v17 = vmul.f32 %v648_v7, %v872_v0 }
  0x14   : > { %v249_v18 = vmul.f32 %v651_v10, %v872_v0  ;;  %v250_v19 = vmul.f32 %v652_v11, %v872_v0  ;;  %v251_v20 = vmul.f32 %v655_v12, %v872_v0  ;;  %v252_v21 = vmul.f32 %v656_v13, %v872_v0  ;;  %v793_v13 = vld [vmem:[%s867_s18 + $0x48] sm:$0xff]  }
  0x15   : > { %v284_v22 = vadd.f32 %v881_v9, %v245_v14  ;;  %v285_v23 = vadd.f32 %v881_v9, %v246_v15  ;;  %v286_v24 = vadd.f32 %v881_v9, %v247_v16  ;;  %v287_v25 = vadd.f32 %v881_v9, %v248_v17 }
  0x16   : > { %v288_v26 = vadd.f32 %v881_v9, %v249_v18  ;;  %v289_v27 = vadd.f32 %v881_v9, %v250_v19  ;;  %v290_v28 = vadd.f32 %v881_v9, %v251_v20  ;;  %v291_v29 = vadd.f32 %v881_v9, %v252_v21  ;;  %v794_v18 = vld [vmem:[%s867_s18 + $0x50] sm:$0xff]  }
  0x17   : > { %v316_v31 = vmax.f32 %v284_v22, 0.0  ;;  %v317_v32 = vmax.f32 %v285_v23, 0.0  ;;  %v318_v33 = vmax.f32 %v286_v24, 0.0  ;;  %v319_v34 = vmax.f32 %v287_v25, 0.0  ;;  %v795_v23 = vld [vmem:[%s867_s18 + $0x58] sm:$0xff]  }
  0x18   : > { %v320_v36 = vmax.f32 %v288_v26, 0.0  ;;  %v321_v37 = vmax.f32 %v289_v27, 0.0  ;;  %v322_v38 = vmax.f32 %v290_v28, 0.0  ;;  %v323_v39 = vmax.f32 %v291_v29, 0.0 }
  0x19   : > { %v708_v41 = vpack.c.bf16 %v317_v32, %v316_v31  ;;  %v713_v42 = vpack.c.bf16 %v319_v34, %v318_v33  ;;  %v659_v43 = vunpack.c.l.bf16 %v788_v30  ;;  %v660_v44 = vunpack.c.h.bf16 %v788_v30 }
  0x1a   : > { %v718_v46 = vpack.c.bf16 %v321_v37, %v320_v36  ;;  %v723_v47 = vpack.c.bf16 %v323_v39, %v322_v38  ;;  %v663_v48 = vunpack.c.l.bf16 %v789_v35  ;;  %v664_v49 = vunpack.c.h.bf16 %v789_v35 }
  0x1b   : > { %709 = vst [vmem:[%s906_s25] sm:$0xff] %v708_v41   ;;  %800 = vst [vmem:[%s906_s25 + $0x8] sm:$0xff] %v713_v42   ;;  %v253_v50 = vmul.f32 %v659_v43, %v872_v0  ;;  %v254_v51 = vmul.f32 %v660_v44, %v872_v0  ;;  %v667_v52 = vunpack.c.l.bf16 %v790_v40  ;;  %v668_v53 = vunpack.c.h.bf16 %v790_v40  ;;  %v796_v40 = vld [vmem:[%s867_s18 + $0x60] sm:$0xff]  }
  0x1c   : > { %801 = vst [vmem:[%s906_s25 + $0x10] sm:$0xff] %v718_v46   ;;  %802 = vst [vmem:[%s906_s25 + $0x18] sm:$0xff] %v723_v47   ;;  %v255_v54 = vmul.f32 %v663_v48, %v872_v0  ;;  %v256_v55 = vmul.f32 %v664_v49, %v872_v0  ;;  %v671_v56 = vunpack.c.l.bf16 %v791_v45  ;;  %v672_v57 = vunpack.c.h.bf16 %v791_v45 }
  0x1d   : > { %v292_v58 = vadd.f32 %v881_v9, %v253_v50  ;;  %v293_v59 = vadd.f32 %v881_v9, %v254_v51  ;;  %v257_v60 = vmul.f32 %v667_v52, %v872_v0  ;;  %v258_v61 = vmul.f32 %v668_v53, %v872_v0  ;;  %v797_v53 = vld [vmem:[%s867_s18 + $0x68] sm:$0xff]  }
  0x1e   : > { %v294_v62 = vadd.f32 %v881_v9, %v255_v54  ;;  %v295_v63 = vadd.f32 %v881_v9, %v256_v55  ;;  %v259_v1 = vmul.f32 %v671_v56, %v872_v0  ;;  %v260_v2 = vmul.f32 %v672_v57, %v872_v0 }
  0x1f   : > { %v324_v4 = vmax.f32 %v292_v58, 0.0  ;;  %v325_v5 = vmax.f32 %v293_v59, 0.0  ;;  %v296_v6 = vadd.f32 %v881_v9, %v257_v60  ;;  %v297_v7 = vadd.f32 %v881_v9, %v258_v61  ;;  %v798_v58 = vld [vmem:[%s867_s18 + $0x70] sm:$0xff]  }
  0x20   : > { %v326_v8 = vmax.f32 %v294_v62, 0.0  ;;  %v327_v10 = vmax.f32 %v295_v63, 0.0  ;;  %v298_v11 = vadd.f32 %v881_v9, %v259_v1  ;;  %v299_v12 = vadd.f32 %v881_v9, %v260_v2  ;;  %v799_v63 = vld [vmem:[%s867_s18 + $0x78] sm:$0xff]  }
  0x21   : > { %v728_v14 = vpack.c.bf16 %v325_v5, %v324_v4  ;;  %v328_v15 = vmax.f32 %v296_v6, 0.0  ;;  %v329_v16 = vmax.f32 %v297_v7, 0.0  ;;  %v675_v17 = vunpack.c.l.bf16 %v792_v3 }
  0x22   : > { %v733_v19 = vpack.c.bf16 %v327_v10, %v326_v8  ;;  %v330_v20 = vmax.f32 %v298_v11, 0.0  ;;  %v331_v21 = vmax.f32 %v299_v12, 0.0  ;;  %v676_v22 = vunpack.c.h.bf16 %v792_v3 }
  0x23   : > { %803 = vst [vmem:[%s906_s25 + $0x20] sm:$0xff] %v728_v14   ;;  %v738_v24 = vpack.c.bf16 %v329_v16, %v328_v15  ;;  %v261_v25 = vmul.f32 %v675_v17, %v872_v0  ;;  %v679_v26 = vunpack.c.l.bf16 %v793_v13  ;;  %v680_v27 = vunpack.c.h.bf16 %v793_v13 }
  0x24   : > { %804 = vst [vmem:[%s906_s25 + $0x28] sm:$0xff] %v733_v19   ;;  %v743_v28 = vpack.c.bf16 %v331_v21, %v330_v20  ;;  %v262_v29 = vmul.f32 %v676_v22, %v872_v0  ;;  %v683_v30 = vunpack.c.l.bf16 %v794_v18  ;;  %v684_v31 = vunpack.c.h.bf16 %v794_v18 }
  0x25   : > { %805 = vst [vmem:[%s906_s25 + $0x30] sm:$0xff] %v738_v24   ;;  %v300_v32 = vadd.f32 %v881_v9, %v261_v25  ;;  %v263_v33 = vmul.f32 %v679_v26, %v872_v0  ;;  %v264_v34 = vmul.f32 %v680_v27, %v872_v0  ;;  %v687_v35 = vunpack.c.l.bf16 %v795_v23 }
  0x26   : > { %806 = vst [vmem:[%s906_s25 + $0x38] sm:$0xff] %v743_v28   ;;  %v301_v36 = vadd.f32 %v881_v9, %v262_v29  ;;  %v265_v37 = vmul.f32 %v683_v30, %v872_v0  ;;  %v266_v38 = vmul.f32 %v684_v31, %v872_v0  ;;  %v688_v39 = vunpack.c.h.bf16 %v795_v23 }
  0x27   : > { %v332_v41 = vmax.f32 %v300_v32, 0.0  ;;  %v302_v42 = vadd.f32 %v881_v9, %v263_v33  ;;  %v303_v43 = vadd.f32 %v881_v9, %v264_v34  ;;  %v267_v44 = vmul.f32 %v687_v35, %v872_v0 }
  0x28   : > { %v333_v45 = vmax.f32 %v301_v36, 0.0  ;;  %v304_v46 = vadd.f32 %v881_v9, %v265_v37  ;;  %v305_v47 = vadd.f32 %v881_v9, %v266_v38  ;;  %v268_v48 = vmul.f32 %v688_v39, %v872_v0 }
  0x29   : > { %v334_v49 = vmax.f32 %v302_v42, 0.0  ;;  %v335_v50 = vmax.f32 %v303_v43, 0.0  ;;  %v306_v51 = vadd.f32 %v881_v9, %v267_v44  ;;  %v691_v52 = vunpack.c.l.bf16 %v796_v40 }
  0x2a   : > { %v748_v54 = vpack.c.bf16 %v333_v45, %v332_v41  ;;  %v336_v55 = vmax.f32 %v304_v46, 0.0  ;;  %v337_v56 = vmax.f32 %v305_v47, 0.0  ;;  %v307_v57 = vadd.f32 %v881_v9, %v268_v48 }
  0x2b   : > { %v753_v59 = vpack.c.bf16 %v335_v50, %v334_v49  ;;  %v338_v60 = vmax.f32 %v306_v51, 0.0  ;;  %v692_v61 = vunpack.c.h.bf16 %v796_v40  ;;  %v269_v62 = vmul.f32 %v691_v52, %v872_v0 }
  0x2c   : > { %807 = vst [vmem:[%s906_s25 + $0x40] sm:$0xff] %v748_v54   ;;  %v758_v1 = vpack.c.bf16 %v337_v56, %v336_v55  ;;  %v339_v2 = vmax.f32 %v307_v57, 0.0  ;;  %v695_v3 = vunpack.c.l.bf16 %v797_v53  ;;  %v696_v4 = vunpack.c.h.bf16 %v797_v53 }
  0x2d   : > { %808 = vst [vmem:[%s906_s25 + $0x48] sm:$0xff] %v753_v59   ;;  %v270_v5 = vmul.f32 %v692_v61, %v872_v0  ;;  %v308_v6 = vadd.f32 %v881_v9, %v269_v62  ;;  %v699_v7 = vunpack.c.l.bf16 %v798_v58  ;;  %v700_v8 = vunpack.c.h.bf16 %v798_v58 }
  0x2e   : > { %809 = vst [vmem:[%s906_s25 + $0x50] sm:$0xff] %v758_v1   ;;  %v763_v10 = vpack.c.bf16 %v339_v2, %v338_v60  ;;  %v271_v11 = vmul.f32 %v695_v3, %v872_v0  ;;  %v272_v12 = vmul.f32 %v696_v4, %v872_v0  ;;  %v703_v13 = vunpack.c.l.bf16 %v799_v63 }
  0x2f   : > { %v309_v14 = vadd.f32 %v881_v9, %v270_v5  ;;  %v340_v15 = vmax.f32 %v308_v6, 0.0  ;;  %v273_v16 = vmul.f32 %v699_v7, %v872_v0  ;;  %v274_v17 = vmul.f32 %v700_v8, %v872_v0 }
  0x30   : > { %810 = vst [vmem:[%s906_s25 + $0x58] sm:$0xff] %v763_v10   ;;  %v310_v18 = vadd.f32 %v881_v9, %v271_v11  ;;  %v311_v19 = vadd.f32 %v881_v9, %v272_v12  ;;  %v704_v20 = vunpack.c.h.bf16 %v799_v63  ;;  %v275_v21 = vmul.f32 %v703_v13, %v872_v0 }
  0x31   : > { %v341_v22 = vmax.f32 %v309_v14, 0.0  ;;  %v312_v23 = vadd.f32 %v881_v9, %v273_v16  ;;  %v313_v24 = vadd.f32 %v881_v9, %v274_v17 }
  0x32   : > { %v342_v25 = vmax.f32 %v310_v18, 0.0  ;;  %v343_v26 = vmax.f32 %v311_v19, 0.0  ;;  %v276_v27 = vmul.f32 %v704_v20, %v872_v0  ;;  %v314_v28 = vadd.f32 %v881_v9, %v275_v21 }
  0x33   : > { %v768_v29 = vpack.c.bf16 %v341_v22, %v340_v15  ;;  %v344_v30 = vmax.f32 %v312_v23, 0.0  ;;  %v345_v31 = vmax.f32 %v313_v24, 0.0 }
  0x34   : > { %v773_v32 = vpack.c.bf16 %v343_v26, %v342_v25  ;;  %v315_v33 = vadd.f32 %v881_v9, %v276_v27  ;;  %v346_v34 = vmax.f32 %v314_v28, 0.0 }
  0x35   : > { %811 = vst [vmem:[%s906_s25 + $0x60] sm:$0xff] %v768_v29   ;;  %v778_v35 = vpack.c.bf16 %v345_v31, %v344_v30 }
  0x36   : > { %812 = vst [vmem:[%s906_s25 + $0x68] sm:$0xff] %v773_v32   ;;  %v347_v36 = vmax.f32 %v315_v33, 0.0 }
  0x37   : > { %813 = vst [vmem:[%s906_s25 + $0x70] sm:$0xff] %v778_v35  }
  0x38   : > { %v783_v37 = vpack.c.bf16 %v347_v36, %v346_v34 }
  0x3a   : > { %814 = vst [vmem:[%s906_s25 + $0x78] sm:$0xff] %v783_v37  }
  0x3b PF: > { %s13_s12 = sadd.s32 1, %s829_s12  }
  0x3c   : > { %p10_p4 = scmp.ge.s32.totalorder %s13_s12, 4  }
  0x3e   :  { %12 = sbr.rel (!%p10_p4) target bundleno = 1 (0x1), region = 62 }

// kernel: res_block_forward.4
= control target key start
LH: loop header
LB: loop body
LE: loop exit
PB: predicated region body
PF: predicated region fallthrough
CT: control target
= control target key end

     0   :  { %s1293_s15 = smov 0   ;;  %s1472_s0 = inlined_call_operand.vmem [shape: bf16[512,128], index: 0, kind: input, shape index: {}]   ;;  %s1473_s1 = inlined_call_operand.vmem [shape: bf16[128,128], index: 1, kind: input, shape index: {}]   ;;  %s1474_s2 = inlined_call_operand.vmem [shape: bf16[512,128], index: 2, kind: output, shape index: {0}]   ;;  %s1475_s3 = inlined_call_operand.vmem [shape: f32[2,1,128], index: 3, kind: output, shape index: {1}]   ;;  %s1476_s4 = inlined_call_operand.vmem [shape: f32[2,1,128], index: 4, kind: output, shape index: {2}]  }
   0x1 LB: > { %s1299_s16 = sadd.s32 4294967295, %s1266_s15   ;;  %p950_p0 = scmp.ge.s32.totalorder %s1266_s15, 1  ;;  %s1266_s15 = sphi %s1293_s15, %s15_s15  }
   0x2   : > { %p168_p1 = scmp.lt.s32.totalorder %s1266_s15, 3 }
   0x4   : > { %p169_p2 = pnand %p950_p0, %p168_p1 }
   0x5   : > { %v1236_v0 = vld [vmem:[%s1473_s1] sm:$0xff] (!%p169_p2)   ;;  %s951_s19 = sshll.u32 (!%p169_p2), %s1299_s16, 5  ;;  %v1237_v1 = vld [vmem:[%s1473_s1 + $0x8] sm:$0xff] (!%p169_p2)   ;;  %v1238_v2 = vld [vmem:[%s1473_s1 + $0x10] sm:$0xff] (!%p169_p2)   ;;  %p212_p4 = scmp.lt.s32.totalorder (!%p169_p2), %s1299_s16, 1 }
   0x6   : > { %172 = sbr.rel (%p169_p2) target bundleno = 330 (0x14a), region = 28  ;;  %p201_p3 = scmp.lt.s32.totalorder (!%p169_p2), %s951_s19, 63  ;;  %1164 = vmatprep.subr.bf16.mxu0 (!%p169_p2), %v1236_v0  ;;  %1212 = vmatprep.subr.bf16.mxu1 (!%p169_p2), %v1236_v0  ;;  %v1239_v3 = vld [vmem:[%s1473_s1 + $0x18] sm:$0xff] (!%p169_p2)   ;;  %v1240_v5 = vld [vmem:[%s1473_s1 + $0x20] sm:$0xff] (!%p169_p2)   ;;  %v1241_v6 = vld [vmem:[%s1473_s1 + $0x28] sm:$0xff] (!%p169_p2)  }
   0x7   : > { %1165 = vmatpush3.bf16.msra.mxu0 (!%p169_p2), %v1236_v0  ;;  %1220 = vmatpush3.bf16.msra.mxu1 (!%p169_p2), %v1236_v0  ;;  %v1242_v8 = vld [vmem:[%s1473_s1 + $0x30] sm:$0xff] (!%p169_p2)   ;;  %v1243_v9 = vld [vmem:[%s1473_s1 + $0x38] sm:$0xff] (!%p169_p2)  }
   0x8   : > { %1166 = vmatprep.subr.bf16.mxu0 (!%p169_p2), %v1237_v1  ;;  %1213 = vmatprep.subr.bf16.mxu1 (!%p169_p2), %v1237_v1 }
   0xb   : > { %1167 = vmatpush3.bf16.msra.mxu0 (!%p169_p2), %v1237_v1  ;;  %1221 = vmatpush3.bf16.msra.mxu1 (!%p169_p2), %v1237_v1 }
   0xc   : > { %1168 = vmatprep.subr.bf16.mxu0 (!%p169_p2), %v1238_v2  ;;  %1214 = vmatprep.subr.bf16.mxu1 (!%p169_p2), %v1238_v2 }
   0xd   : > { %s1478_s19 = smov (!%p201_p3, %s951_s19), 63  ;;  %s1480_s16 = smov (!%p212_p4, %s1299_s16), 1 }
   0xe   : > { %s952_s24 = sshll.u32 %s1478_s19, 2  ;;  %s214_s19 = scalar_lea.vmem %s1475_s3, %s1480_s16 }
   0xf   : > { %s1321_s27 = scalar_lea.vmem %s1472_s0, %s952_s24  ;;  %1169 = vmatpush3.bf16.msra.mxu0 %v1238_v2  ;;  %1222 = vmatpush3.bf16.msra.mxu1 %v1238_v2  ;;  %s1363_s14 = scalar_lea.vmem %s1474_s2, %s952_s24 }
  0x10   : > { %v1244_v4 = vld [vmem:[%s1321_s27] sm:$0xff]   ;;  %1170 = vmatprep.subr.bf16.mxu0 %v1239_v3  ;;  %1215 = vmatprep.subr.bf16.mxu1 %v1239_v3  ;;  %v1245_v10 = vld [vmem:[%s1321_s27 + $0x8] sm:$0xff]   ;;  %v1246_v12 = vld [vmem:[%s1321_s27 + $0x10] sm:$0xff]   ;;  %s217_s22 = scalar_lea.vmem %s1476_s4, %s1480_s16 }
  0x11   : > { %1180 = vmatprep.mubr.bf16.mxu0 %v1244_v4  ;;  %v1252_v7 = vld [vmem:[%s1321_s27 + $0x40] sm:$0xff]   ;;  %v1253_v11 = vld [vmem:[%s1321_s27 + $0x48] sm:$0xff]   ;;  %v1254_v13 = vld [vmem:[%s1321_s27 + $0x50] sm:$0xff]  }
  0x12   : > { %1196 = vmatprep.mubr.bf16.mxu1 %v1252_v7  ;;  %v1247_v14 = vld [vmem:[%s1321_s27 + $0x18] sm:$0xff]   ;;  %v1248_v16 = vld [vmem:[%s1321_s27 + $0x20] sm:$0xff]   ;;  %v1249_v18 = vld [vmem:[%s1321_s27 + $0x28] sm:$0xff]  }
  0x13   : > { %1171 = vmatpush3.bf16.msra.mxu0 %v1239_v3  ;;  %1223 = vmatpush3.bf16.msra.mxu1 %v1239_v3  ;;  %v1255_v15 = vld [vmem:[%s1321_s27 + $0x58] sm:$0xff]   ;;  %v1256_v17 = vld [vmem:[%s1321_s27 + $0x60] sm:$0xff]   ;;  %v1257_v19 = vld [vmem:[%s1321_s27 + $0x68] sm:$0xff]  }
  0x14   : > { %1172 = vmatprep.subr.bf16.mxu0 %v1240_v5  ;;  %1216 = vmatprep.subr.bf16.mxu1 %v1240_v5  ;;  %v1250_v20 = vld [vmem:[%s1321_s27 + $0x30] sm:$0xff]   ;;  %v1251_v22 = vld [vmem:[%s1321_s27 + $0x38] sm:$0xff]  }
  0x15   : > { %v1258_v21 = vld [vmem:[%s1321_s27 + $0x70] sm:$0xff]   ;;  %v1259_v23 = vld [vmem:[%s1321_s27 + $0x78] sm:$0xff]  }
  0x17   : > { %1173 = vmatpush3.bf16.msra.mxu0 %v1240_v5  ;;  %1224 = vmatpush3.bf16.msra.mxu1 %v1240_v5 }
  0x18   : > { %1174 = vmatprep.subr.bf16.mxu0 %v1241_v6  ;;  %1217 = vmatprep.subr.bf16.mxu1 %v1241_v6 }
  0x1b   : > { %1175 = vmatpush3.bf16.msra.mxu0 %v1241_v6  ;;  %1225 = vmatpush3.bf16.msra.mxu1 %v1241_v6 }
  0x1c   : > { %1176 = vmatprep.subr.bf16.mxu0 %v1242_v8  ;;  %1218 = vmatprep.subr.bf16.mxu1 %v1242_v8 }
  0x1f   : > { %1177 = vmatpush3.bf16.msra.mxu0 %v1242_v8  ;;  %1226 = vmatpush3.bf16.msra.mxu1 %v1242_v8 }
  0x20   : > { %1178 = vmatprep.subr.bf16.mxu0 %v1243_v9  ;;  %1219 = vmatprep.subr.bf16.mxu1 %v1243_v9 }
  0x23   : > { %1179 = vmatpush3.bf16.msra.mxu0 %v1243_v9  ;;  %1227 = vmatpush3.bf16.msra.mxu1 %v1243_v9 }
  0x26   : > { %1181 = vmatmul.mubr.bf16.vlgmr.msra.gmra.mrb[0].mxu0 %v1245_v10  ;;  %1197 = vmatmul.mubr.bf16.vlgmr.msra.gmra.mrb[0].mxu1 %v1253_v11 }
  0x27   : > { %1184 = vmatprep.mubr.bf16.mxu0 %v1246_v12  ;;  %1200 = vmatprep.mubr.bf16.mxu1 %v1254_v13 }
  0x2e   : > { %1185 = vmatmul.mubr.bf16.gmra.mrb[4].mxu0 %v1247_v14  ;;  %1201 = vmatmul.mubr.bf16.gmra.mrb[4].mxu1 %v1255_v15 }
  0x2f   : > { %1188 = vmatprep.mubr.bf16.mxu0 %v1248_v16  ;;  %1204 = vmatprep.mubr.bf16.mxu1 %v1256_v17 }
  0x36   : > { %1189 = vmatmul.mubr.bf16.gmra.mrb[8].mxu0 %v1249_v18  ;;  %1205 = vmatmul.mubr.bf16.gmra.mrb[8].mxu1 %v1257_v19 }
  0x37   : > { %1192 = vmatprep.mubr.bf16.mxu0 %v1250_v20  ;;  %1208 = vmatprep.mubr.bf16.mxu1 %v1258_v21 }
  0x3e   : > { %1193 = vmatmul.mubr.bf16.gmra.mrb[12].mxu0 %v1251_v22  ;;  %1209 = vmatmul.mubr.bf16.gmra.mrb[12].mxu1 %v1259_v23 }
  0xf9   : > { %v1182_v24 = vpop.f32.mrb[0].mxu0  ;;  %v1354_v25 = vpop.f32.mrb[0].mxu1 }
  0xfa   : > { %v445_v26 = vpop.f32.mrb[1].mxu0  ;;  %v1356_v27 = vpop.f32.mrb[1].mxu1  ;;  %v772_v39 = vmul.f32 %v1182_v24, %v1182_v24 }
  0xfb   : > { %v1183_v28 = vpop.f32.mrb[2].mxu0  ;;  %v1365_v29 = vpop.f32.mrb[2].mxu1  ;;  %v770_v30 = vmul.f32 %v445_v26, %v445_v26 }
  0xfc   : > { %v1053_v31 = vpack.c.bf16 %v1183_v28, %v1182_v24  ;;  %v448_v32 = vpop.f32.mrb[3].mxu0  ;;  %v1093_v33 = vpack.c.bf16 %v1365_v29, %v1354_v25  ;;  %v1369_v34 = vpop.f32.mrb[3].mxu1  ;;  %v773_v42 = vmul.f32 %v1183_v28, %v1183_v28 }
  0xfd   : > { %v1048_v35 = vpack.c.bf16 %v448_v32, %v445_v26  ;;  %v732_v36 = vadd.f32 %v448_v32, %v445_v26  ;;  %v771_v37 = vmul.f32 %v448_v32, %v448_v32  ;;  %v1088_v38 = vpack.c.bf16 %v1369_v34, %v1356_v27 }
  0xfe   : > { %1125 = vst [vmem:[%s1363_s14 + $0x8] sm:$0xff] %v1053_v31   ;;  %1133 = vst [vmem:[%s1363_s14 + $0x48] sm:$0xff] %v1093_v33  }
  0xff   : > { %1049 = vst [vmem:[%s1363_s14] sm:$0xff] %v1048_v35   ;;  %v733_v40 = vadd.f32 %v1182_v24, %v732_v36  ;;  %v802_v41 = vadd.f32 %v771_v37, %v770_v30  ;;  %1132 = vst [vmem:[%s1363_s14 + $0x40] sm:$0xff] %v1088_v38  }
 0x101   : > { %v803_v43 = vadd.f32 %v802_v41, %v772_v39  ;;  %v1186_v44 = vpop.f32.mrb[4].mxu0  ;;  %v734_v45 = vadd.f32 %v1183_v28, %v733_v40  ;;  %v1377_v46 = vpop.f32.mrb[4].mxu1 }
 0x102   : > { %v461_v47 = vpop.f32.mrb[5].mxu0  ;;  %v1379_v48 = vpop.f32.mrb[5].mxu1  ;;  %v776_v63 = vmul.f32 %v1186_v44, %v1186_v44 }
 0x103   : > { %v735_v49 = vadd.f32 %v734_v45, %v461_v47  ;;  %v774_v50 = vmul.f32 %v461_v47, %v461_v47  ;;  %v804_v51 = vadd.f32 %v803_v43, %v773_v42  ;;  %v1187_v52 = vpop.f32.mrb[6].mxu0  ;;  %v1381_v53 = vpop.f32.mrb[6].mxu1 }
 0x104   : > { %v1063_v54 = vpack.c.bf16 %v1187_v52, %v1186_v44  ;;  %v464_v55 = vpop.f32.mrb[7].mxu0  ;;  %v1103_v56 = vpack.c.bf16 %v1381_v53, %v1377_v46  ;;  %v1385_v57 = vpop.f32.mrb[7].mxu1  ;;  %v777_v2 = vmul.f32 %v1187_v52, %v1187_v52 }
 0x105   : > { %v805_v58 = vadd.f32 %v804_v51, %v774_v50  ;;  %v1058_v59 = vpack.c.bf16 %v464_v55, %v461_v47  ;;  %v736_v60 = vadd.f32 %v735_v49, %v464_v55  ;;  %v775_v61 = vmul.f32 %v464_v55, %v464_v55 }
 0x106   : > { %1127 = vst [vmem:[%s1363_s14 + $0x18] sm:$0xff] %v1063_v54   ;;  %1135 = vst [vmem:[%s1363_s14 + $0x58] sm:$0xff] %v1103_v56   ;;  %v1098_v62 = vpack.c.bf16 %v1385_v57, %v1379_v48 }
 0x107   : > { %1126 = vst [vmem:[%s1363_s14 + $0x10] sm:$0xff] %v1058_v59   ;;  %v737_v0 = vadd.f32 %v1186_v44, %v736_v60  ;;  %v806_v1 = vadd.f32 %v805_v58, %v775_v61  ;;  %v786_v61 = vmul.f32 %v1356_v27, %v1356_v27 }
 0x108   : > { %1134 = vst [vmem:[%s1363_s14 + $0x50] sm:$0xff] %v1098_v62  }
 0x109   : > { %v807_v3 = vadd.f32 %v806_v1, %v776_v63  ;;  %v1190_v4 = vpop.f32.mrb[8].mxu0  ;;  %v738_v5 = vadd.f32 %v1187_v52, %v737_v0  ;;  %v1393_v6 = vpop.f32.mrb[8].mxu1 }
 0x10a   : > { %v477_v7 = vpop.f32.mrb[9].mxu0  ;;  %v1395_v8 = vpop.f32.mrb[9].mxu1  ;;  %v780_v23 = vmul.f32 %v1190_v4, %v1190_v4 }
 0x10b   : > { %v739_v9 = vadd.f32 %v738_v5, %v477_v7  ;;  %v778_v10 = vmul.f32 %v477_v7, %v477_v7  ;;  %v808_v11 = vadd.f32 %v807_v3, %v777_v2  ;;  %v1191_v12 = vpop.f32.mrb[10].mxu0  ;;  %v1397_v13 = vpop.f32.mrb[10].mxu1  ;;  %v787_v2 = vmul.f32 %v1369_v34, %v1369_v34 }
 0x10c   : > { %v1073_v14 = vpack.c.bf16 %v1191_v12, %v1190_v4  ;;  %v480_v15 = vpop.f32.mrb[11].mxu0  ;;  %v1113_v16 = vpack.c.bf16 %v1397_v13, %v1393_v6  ;;  %v1401_v17 = vpop.f32.mrb[11].mxu1  ;;  %v781_v28 = vmul.f32 %v1191_v12, %v1191_v12  ;;  %v788_v3 = vmul.f32 %v1354_v25, %v1354_v25 }
 0x10d   : > { %v809_v18 = vadd.f32 %v808_v11, %v778_v10  ;;  %v1068_v19 = vpack.c.bf16 %v480_v15, %v477_v7  ;;  %v740_v20 = vadd.f32 %v739_v9, %v480_v15  ;;  %v779_v21 = vmul.f32 %v480_v15, %v480_v15 }
 0x10e   : > { %1129 = vst [vmem:[%s1363_s14 + $0x28] sm:$0xff] %v1073_v14   ;;  %1137 = vst [vmem:[%s1363_s14 + $0x68] sm:$0xff] %v1113_v16   ;;  %v1108_v22 = vpack.c.bf16 %v1401_v17, %v1395_v8  ;;  %v789_v7 = vmul.f32 %v1365_v29, %v1365_v29  ;;  %v791_v15 = vmul.f32 %v1385_v57, %v1385_v57 }
 0x10f   : > { %1128 = vst [vmem:[%s1363_s14 + $0x20] sm:$0xff] %v1068_v19   ;;  %v741_v24 = vadd.f32 %v1190_v4, %v740_v20  ;;  %v810_v26 = vadd.f32 %v809_v18, %v779_v21 }
 0x110   : > { %1136 = vst [vmem:[%s1363_s14 + $0x60] sm:$0xff] %v1108_v22  }
 0x111   : > { %v811_v30 = vadd.f32 %v810_v26, %v780_v23  ;;  %v1194_v31 = vpop.f32.mrb[12].mxu0  ;;  %v742_v32 = vadd.f32 %v1191_v12, %v741_v24  ;;  %v1409_v33 = vpop.f32.mrb[12].mxu1  ;;  %v795_v24 = vmul.f32 %v1401_v17, %v1401_v17 }
 0x112   : > { %v493_v35 = vpop.f32.mrb[13].mxu0  ;;  %v557_v36 = vpop.f32.mrb[13].mxu1  ;;  %v784_v54 = vmul.f32 %v1194_v31, %v1194_v31 }
 0x113   : > { %v743_v37 = vadd.f32 %v742_v32, %v493_v35  ;;  %v782_v38 = vmul.f32 %v493_v35, %v493_v35  ;;  %v812_v39 = vadd.f32 %v811_v30, %v781_v28  ;;  %v1195_v40 = vpop.f32.mrb[14].mxu0  ;;  %v1411_v41 = vpop.f32.mrb[14].mxu1 }
 0x114   : > { %v1083_v42 = vpack.c.bf16 %v1195_v40, %v1194_v31  ;;  %v496_v43 = vpop.f32.mrb[15].mxu0  ;;  %v1123_v44 = vpack.c.bf16 %v1411_v41, %v1409_v33  ;;  %v560_v45 = vpop.f32.mrb[15].mxu1  ;;  %v785_v58 = vmul.f32 %v1195_v40, %v1195_v40 }
 0x115   : > { %v813_v47 = vadd.f32 %v812_v39, %v782_v38  ;;  %v1078_v49 = vpack.c.bf16 %v496_v43, %v493_v35  ;;  %v744_v50 = vadd.f32 %v743_v37, %v496_v43  ;;  %v783_v51 = vmul.f32 %v496_v43, %v496_v43 }
 0x116   : > { %1131 = vst [vmem:[%s1363_s14 + $0x38] sm:$0xff] %v1083_v42   ;;  %1139 = vst [vmem:[%s1363_s14 + $0x78] sm:$0xff] %v1123_v44   ;;  %v1118_v52 = vpack.c.bf16 %v560_v45, %v557_v36  ;;  %v800_v39 = vmul.f32 %v1409_v33, %v1409_v33  ;;  %v801_v42 = vmul.f32 %v1411_v41, %v1411_v41 }
 0x117   : > { %1130 = vst [vmem:[%s1363_s14 + $0x30] sm:$0xff] %v1078_v49   ;;  %v745_v55 = vadd.f32 %v1194_v31, %v744_v50  ;;  %v814_v56 = vadd.f32 %v813_v47, %v783_v51  ;;  %v798_v31 = vmul.f32 %v557_v36, %v557_v36 }
 0x118   : > { %1138 = vst [vmem:[%s1363_s14 + $0x70] sm:$0xff] %v1118_v52  }
 0x119   : > { %v815_v59 = vadd.f32 %v814_v56, %v784_v54  ;;  %v746_v60 = vadd.f32 %v1195_v40, %v745_v55 }
 0x11b   : > { %v747_v62 = vadd.f32 %v746_v60, %v1356_v27  ;;  %v816_v63 = vadd.f32 %v815_v59, %v785_v58  ;;  %v790_v27 = vmul.f32 %v1379_v48, %v1379_v48 }
 0x11d   : > { %v817_v0 = vadd.f32 %v816_v63, %v786_v61  ;;  %v748_v1 = vadd.f32 %v747_v62, %v1369_v34 }
 0x11f   : > { %v749_v4 = vadd.f32 %v1354_v25, %v748_v1  ;;  %v818_v5 = vadd.f32 %v817_v0, %v787_v2  ;;  %v792_v25 = vmul.f32 %v1377_v46, %v1377_v46 }
 0x121   : > { %v819_v9 = vadd.f32 %v818_v5, %v788_v3  ;;  %v750_v10 = vadd.f32 %v1365_v29, %v749_v4  ;;  %v793_v29 = vmul.f32 %v1381_v53, %v1381_v53 }
 0x123   : > { %v751_v11 = vadd.f32 %v750_v10, %v1379_v48  ;;  %v820_v12 = vadd.f32 %v819_v9, %v789_v7  ;;  %v794_v48 = vmul.f32 %v1395_v8, %v1395_v8 }
 0x125   : > { %v821_v14 = vadd.f32 %v820_v12, %v790_v27  ;;  %v752_v34 = vadd.f32 %v751_v11, %v1385_v57 }
 0x127   : > { %v753_v16 = vadd.f32 %v1377_v46, %v752_v34  ;;  %v822_v18 = vadd.f32 %v821_v14, %v791_v15  ;;  %v796_v46 = vmul.f32 %v1393_v6, %v1393_v6 }
 0x129   : > { %v823_v19 = vadd.f32 %v822_v18, %v792_v25  ;;  %v754_v20 = vadd.f32 %v1381_v53, %v753_v16  ;;  %v797_v53 = vmul.f32 %v1397_v13, %v1397_v13 }
 0x12b   : > { %v755_v21 = vadd.f32 %v754_v20, %v1395_v8  ;;  %v824_v22 = vadd.f32 %v823_v19, %v793_v29 }
 0x12d   : > { %v825_v23 = vadd.f32 %v824_v22, %v794_v48  ;;  %v756_v57 = vadd.f32 %v755_v21, %v1401_v17  ;;  %v799_v17 = vmul.f32 %v560_v45, %v560_v45 }
 0x12f   : > { %v757_v26 = vadd.f32 %v1393_v6, %v756_v57  ;;  %v826_v28 = vadd.f32 %v825_v23, %v795_v24 }
 0x131   : > { %v827_v30 = vadd.f32 %v826_v28, %v796_v46  ;;  %v758_v8 = vadd.f32 %v1397_v13, %v757_v26 }
 0x133   : > { %v759_v32 = vadd.f32 %v758_v8, %v557_v36  ;;  %v828_v35 = vadd.f32 %v827_v30, %v797_v53 }
 0x135   : > { %v829_v37 = vadd.f32 %v828_v35, %v798_v31  ;;  %v760_v38 = vadd.f32 %v759_v32, %v560_v45 }
 0x137   : > { %v761_v6 = vadd.f32 %v1409_v33, %v760_v38  ;;  %v830_v40 = vadd.f32 %v829_v37, %v799_v17 }
 0x139   : > { %v762_v43 = vadd.f32 %v1411_v41, %v761_v6  ;;  %v831_v44 = vadd.f32 %v830_v40, %v800_v39 }
 0x13b   : > { %v763_v13 = vrot.slane %v762_v43, 4  ;;  %v832_v47 = vadd.f32 %v831_v44, %v801_v42 }
 0x13d   : > { %v764_v36 = vadd.f32 %v763_v13, %v762_v43  ;;  %v833_v49 = vrot.slane %v832_v47, 4 }
 0x13f   : > { %v765_v50 = vrot.slane %v764_v36, 2  ;;  %v834_v51 = vadd.f32 %v833_v49, %v832_v47 }
 0x141   : > { %v766_v45 = vadd.f32 %v765_v50, %v764_v36  ;;  %v835_v52 = vrot.slane %v834_v51, 2 }
 0x143   : > { %v767_v54 = vrot.slane %v766_v45, 1  ;;  %v836_v55 = vadd.f32 %v835_v52, %v834_v51 }
 0x145   : > { %v768_v33 = vadd.f32 %v767_v54, %v766_v45  ;;  %v837_v56 = vrot.slane %v836_v55, 1 }
 0x147   : > { %769 = vst [vmem:[%s214_s19] sm:$0x1] %v768_v33  ;;  %v838_v41 = vadd.f32 %v837_v56, %v836_v55 }
 0x149   : > { %839 = vst [vmem:[%s217_s22] sm:$0x1] %v838_v41 }
 0x14a PF: > { %s15_s15 = sadd.s32 1, %s1266_s15  }
 0x14b   : > { %p12_p5 = scmp.ge.s32.totalorder %s15_s15, 4  }
 0x14d   :  { %14 = sbr.rel (!%p12_p5) target bundleno = 1 (0x1), region = 82 }

// kernel: res_block_forward.7
= control target key start
LH: loop header
LB: loop body
LE: loop exit
PB: predicated region body
PF: predicated region fallthrough
CT: control target
= control target key end

     0   :  { %s453_s12 = smov 0   ;;  %s612_s0 = inlined_call_operand.vmem [shape: f32[512,128], index: 0, kind: input, shape index: {}]   ;;  %s613_s1 = inlined_call_operand.vmem [shape: f32[1,128], index: 1, kind: input, shape index: {}]   ;;  %s614_s2 = inlined_call_operand.vmem [shape: f32[1,128], index: 2, kind: input, shape index: {}]   ;;  %s615_s3 = inlined_call_operand.vmem [shape: f32[512,128], index: 3, kind: output, shape index: {}]  }
   0x1 LB: > { %s404_s13 = sadd.s32 4294967295, %s431_s12   ;;  %p408_p0 = scmp.ge.s32.totalorder %s431_s12, 1  ;;  %s431_s12 = sphi %s453_s12, %s13_s12  }
   0x2   : > { %p138_p1 = scmp.lt.s32.totalorder %s431_s12, 3 }
   0x4   : > { %p139_p2 = pnand %p408_p0, %p138_p1 }
   0x5   : > { %s409_s14 = sshll.u32 (!%p139_p2), %s404_s13, 5  ;;  %v464_v0 = vld [vmem:[%s613_s1] ss:$0 sm:$0xff] (!%p139_p2) }
   0x6   : > { %142 = sbr.rel (%p139_p2) target bundleno = 46 (0x2e), region = 32  ;;  %p163_p3 = scmp.lt.s32.totalorder (!%p139_p2), %s409_s14, 63  ;;  %v474_v1 = vld [vmem:[%s614_s2] ss:$0 sm:$0xff] (!%p139_p2) }
   0xd   : > { %s617_s14 = smov (!%p163_p3, %s409_s14), 63 }
   0xe   : > { %s410_s15 = sshll.u32 %s617_s14, 3 }
   0xf   : > { %s469_s20 = scalar_lea.vmem %s612_s0, %s410_s15  ;;  %s497_s25 = scalar_lea.vmem %s615_s3, %s410_s15 }
  0x10   : > { %v174_v2 = vld [vmem:[%s469_s20] sm:$0xff]  ;;  %v175_v3 = vld [vmem:[%s469_s20 + $0x8] sm:$0xff]  ;;  %v176_v4 = vld [vmem:[%s469_s20 + $0x10] sm:$0xff] }
  0x11   : > { %v213_v5 = vmul.f32 %v464_v0, %v174_v2  ;;  %v214_v6 = vmul.f32 %v464_v0, %v175_v3  ;;  %v215_v7 = vmul.f32 %v464_v0, %v176_v4  ;;  %v177_v8 = vld [vmem:[%s469_s20 + $0x18] sm:$0xff]  ;;  %v178_v9 = vld [vmem:[%s469_s20 + $0x20] sm:$0xff]  ;;  %v179_v10 = vld [vmem:[%s469_s20 + $0x28] sm:$0xff] }
  0x12   : > { %v216_v11 = vmul.f32 %v464_v0, %v177_v8  ;;  %v217_v12 = vmul.f32 %v464_v0, %v178_v9  ;;  %v218_v13 = vmul.f32 %v464_v0, %v179_v10  ;;  %v180_v14 = vld [vmem:[%s469_s20 + $0x30] sm:$0xff]  ;;  %v181_v15 = vld [vmem:[%s469_s20 + $0x38] sm:$0xff]  ;;  %v182_v24 = vld [vmem:[%s469_s20 + $0x40] sm:$0xff] }
  0x13   : > { %v252_v16 = vadd.f32 %v474_v1, %v213_v5  ;;  %v253_v17 = vadd.f32 %v474_v1, %v214_v6  ;;  %v254_v18 = vadd.f32 %v474_v1, %v215_v7  ;;  %v219_v19 = vmul.f32 %v464_v0, %v180_v14  ;;  %v183_v25 = vld [vmem:[%s469_s20 + $0x48] sm:$0xff]  ;;  %v184_v26 = vld [vmem:[%s469_s20 + $0x50] sm:$0xff]  ;;  %v185_v31 = vld [vmem:[%s469_s20 + $0x58] sm:$0xff] }
  0x14   : > { %v255_v20 = vadd.f32 %v474_v1, %v216_v11  ;;  %v256_v21 = vadd.f32 %v474_v1, %v217_v12  ;;  %v257_v22 = vadd.f32 %v474_v1, %v218_v13  ;;  %v220_v23 = vmul.f32 %v464_v0, %v181_v15  ;;  %v186_v32 = vld [vmem:[%s469_s20 + $0x60] sm:$0xff]  ;;  %v187_v33 = vld [vmem:[%s469_s20 + $0x68] sm:$0xff]  ;;  %v188_v38 = vld [vmem:[%s469_s20 + $0x70] sm:$0xff] }
  0x15   : > { %v284_v27 = vmax.f32 %v252_v16, 0.0  ;;  %v285_v28 = vmax.f32 %v253_v17, 0.0  ;;  %v286_v29 = vmax.f32 %v254_v18, 0.0  ;;  %v258_v30 = vadd.f32 %v474_v1, %v219_v19  ;;  %v189_v43 = vld [vmem:[%s469_s20 + $0x78] sm:$0xff]  ;;  %v190_v56 = vld [vmem:[%s469_s20 + $0x80] sm:$0xff]  ;;  %v191_v57 = vld [vmem:[%s469_s20 + $0x88] sm:$0xff] }
  0x16   : > { %v287_v34 = vmax.f32 %v255_v20, 0.0  ;;  %v288_v35 = vmax.f32 %v256_v21, 0.0  ;;  %v289_v36 = vmax.f32 %v257_v22, 0.0  ;;  %v259_v37 = vadd.f32 %v474_v1, %v220_v23  ;;  %v192_v58 = vld [vmem:[%s469_s20 + $0x90] sm:$0xff]  ;;  %v193_v63 = vld [vmem:[%s469_s20 + $0x98] sm:$0xff]  ;;  %v194_v2 = vld [vmem:[%s469_s20 + $0xa0] sm:$0xff] }
  0x17   : > { %316 = vst [vmem:[%s497_s25] sm:$0xff] %v284_v27  ;;  %317 = vst [vmem:[%s497_s25 + $0x8] sm:$0xff] %v285_v28  ;;  %v290_v39 = vmax.f32 %v258_v30, 0.0  ;;  %v221_v40 = vmul.f32 %v464_v0, %v182_v24  ;;  %v222_v41 = vmul.f32 %v464_v0, %v183_v25  ;;  %v223_v42 = vmul.f32 %v464_v0, %v184_v26  ;;  %v195_v3 = vld [vmem:[%s469_s20 + $0xa8] sm:$0xff]  ;;  %v196_v8 = vld [vmem:[%s469_s20 + $0xb0] sm:$0xff] }
  0x18   : > { %318 = vst [vmem:[%s497_s25 + $0x10] sm:$0xff] %v286_v29  ;;  %319 = vst [vmem:[%s497_s25 + $0x18] sm:$0xff] %v287_v34  ;;  %v291_v44 = vmax.f32 %v259_v37, 0.0  ;;  %v224_v45 = vmul.f32 %v464_v0, %v185_v31  ;;  %v225_v46 = vmul.f32 %v464_v0, %v186_v32  ;;  %v226_v47 = vmul.f32 %v464_v0, %v187_v33  ;;  %v197_v13 = vld [vmem:[%s469_s20 + $0xb8] sm:$0xff]  ;;  %v198_v26 = vld [vmem:[%s469_s20 + $0xc0] sm:$0xff] }
  0x19   : > { %320 = vst [vmem:[%s497_s25 + $0x20] sm:$0xff] %v288_v35  ;;  %321 = vst [vmem:[%s497_s25 + $0x28] sm:$0xff] %v289_v36  ;;  %v260_v48 = vadd.f32 %v474_v1, %v221_v40  ;;  %v261_v49 = vadd.f32 %v474_v1, %v222_v41  ;;  %v262_v50 = vadd.f32 %v474_v1, %v223_v42  ;;  %v199_v27 = vld [vmem:[%s469_s20 + $0xc8] sm:$0xff]  ;;  %v200_v28 = vld [vmem:[%s469_s20 + $0xd0] sm:$0xff] }
  0x1a   : > { %322 = vst [vmem:[%s497_s25 + $0x30] sm:$0xff] %v290_v39  ;;  %v227_v51 = vmul.f32 %v464_v0, %v188_v38  ;;  %323 = vst [vmem:[%s497_s25 + $0x38] sm:$0xff] %v291_v44  ;;  %v263_v52 = vadd.f32 %v474_v1, %v224_v45  ;;  %v264_v53 = vadd.f32 %v474_v1, %v225_v46  ;;  %v201_v33 = vld [vmem:[%s469_s20 + $0xd8] sm:$0xff]  ;;  %v202_v34 = vld [vmem:[%s469_s20 + $0xe0] sm:$0xff] }
  0x1b   : > { %v265_v54 = vadd.f32 %v474_v1, %v226_v47  ;;  %v228_v55 = vmul.f32 %v464_v0, %v189_v43  ;;  %v292_v59 = vmax.f32 %v260_v48, 0.0  ;;  %v293_v60 = vmax.f32 %v261_v49, 0.0  ;;  %v203_v35 = vld [vmem:[%s469_s20 + $0xe8] sm:$0xff]  ;;  %v204_v40 = vld [vmem:[%s469_s20 + $0xf0] sm:$0xff]  ;;  %v205_v45 = vld [vmem:[%s469_s20 + $0xf8] sm:$0xff] }
  0x1c   : > { %v294_v61 = vmax.f32 %v262_v50, 0.0  ;;  %v266_v62 = vadd.f32 %v474_v1, %v227_v51  ;;  %v295_v4 = vmax.f32 %v263_v52, 0.0  ;;  %v296_v5 = vmax.f32 %v264_v53, 0.0 }
  0x1d   : > { %v297_v6 = vmax.f32 %v265_v54, 0.0  ;;  %v267_v7 = vadd.f32 %v474_v1, %v228_v55  ;;  %324 = vst [vmem:[%s497_s25 + $0x40] sm:$0xff] %v292_v59  ;;  %325 = vst [vmem:[%s497_s25 + $0x48] sm:$0xff] %v293_v60  ;;  %v229_v10 = vmul.f32 %v464_v0, %v190_v56  ;;  %v230_v11 = vmul.f32 %v464_v0, %v191_v57 }
  0x1e   : > { %326 = vst [vmem:[%s497_s25 + $0x50] sm:$0xff] %v294_v61  ;;  %v298_v9 = vmax.f32 %v266_v62, 0.0  ;;  %v231_v12 = vmul.f32 %v464_v0, %v192_v58  ;;  %327 = vst [vmem:[%s497_s25 + $0x58] sm:$0xff] %v295_v4  ;;  %v232_v15 = vmul.f32 %v464_v0, %v193_v63  ;;  %v233_v16 = vmul.f32 %v464_v0, %v194_v2 }
  0x1f   : > { %328 = vst [vmem:[%s497_s25 + $0x60] sm:$0xff] %v296_v5  ;;  %329 = vst [vmem:[%s497_s25 + $0x68] sm:$0xff] %v297_v6  ;;  %v299_v14 = vmax.f32 %v267_v7, 0.0  ;;  %v234_v17 = vmul.f32 %v464_v0, %v195_v3  ;;  %v268_v18 = vadd.f32 %v474_v1, %v229_v10  ;;  %v269_v19 = vadd.f32 %v474_v1, %v230_v11 }
  0x20   : > { %330 = vst [vmem:[%s497_s25 + $0x70] sm:$0xff] %v298_v9  ;;  %v270_v20 = vadd.f32 %v474_v1, %v231_v12  ;;  %v235_v21 = vmul.f32 %v464_v0, %v196_v8  ;;  %v271_v22 = vadd.f32 %v474_v1, %v232_v15  ;;  %v272_v23 = vadd.f32 %v474_v1, %v233_v16 }
  0x21   : > { %331 = vst [vmem:[%s497_s25 + $0x78] sm:$0xff] %v299_v14  ;;  %v273_v24 = vadd.f32 %v474_v1, %v234_v17  ;;  %v236_v25 = vmul.f32 %v464_v0, %v197_v13  ;;  %v300_v29 = vmax.f32 %v268_v18, 0.0  ;;  %v301_v30 = vmax.f32 %v269_v19, 0.0 }
  0x22   : > { %v302_v31 = vmax.f32 %v270_v20, 0.0  ;;  %v274_v32 = vadd.f32 %v474_v1, %v235_v21  ;;  %v303_v36 = vmax.f32 %v271_v22, 0.0  ;;  %v304_v37 = vmax.f32 %v272_v23, 0.0 }
  0x23   : > { %v305_v38 = vmax.f32 %v273_v24, 0.0  ;;  %v275_v39 = vadd.f32 %v474_v1, %v236_v25  ;;  %332 = vst [vmem:[%s497_s25 + $0x80] sm:$0xff] %v300_v29  ;;  %333 = vst [vmem:[%s497_s25 + $0x88] sm:$0xff] %v301_v30  ;;  %v237_v42 = vmul.f32 %v464_v0, %v198_v26  ;;  %v238_v43 = vmul.f32 %v464_v0, %v199_v27 }
  0x24   : > { %334 = vst [vmem:[%s497_s25 + $0x90] sm:$0xff] %v302_v31  ;;  %v306_v41 = vmax.f32 %v274_v32, 0.0  ;;  %v239_v44 = vmul.f32 %v464_v0, %v200_v28  ;;  %335 = vst [vmem:[%s497_s25 + $0x98] sm:$0xff] %v303_v36  ;;  %v240_v47 = vmul.f32 %v464_v0, %v201_v33  ;;  %v241_v48 = vmul.f32 %v464_v0, %v202_v34 }
  0x25   : > { %336 = vst [vmem:[%s497_s25 + $0xa0] sm:$0xff] %v304_v37  ;;  %337 = vst [vmem:[%s497_s25 + $0xa8] sm:$0xff] %v305_v38  ;;  %v307_v46 = vmax.f32 %v275_v39, 0.0  ;;  %v242_v49 = vmul.f32 %v464_v0, %v203_v35  ;;  %v276_v50 = vadd.f32 %v474_v1, %v237_v42  ;;  %v277_v51 = vadd.f32 %v474_v1, %v238_v43 }
  0x26   : > { %338 = vst [vmem:[%s497_s25 + $0xb0] sm:$0xff] %v306_v41  ;;  %v278_v52 = vadd.f32 %v474_v1, %v239_v44  ;;  %v243_v53 = vmul.f32 %v464_v0, %v204_v40  ;;  %v279_v54 = vadd.f32 %v474_v1, %v240_v47  ;;  %v280_v55 = vadd.f32 %v474_v1, %v241_v48 }
  0x27   : > { %339 = vst [vmem:[%s497_s25 + $0xb8] sm:$0xff] %v307_v46  ;;  %v281_v56 = vadd.f32 %v474_v1, %v242_v49  ;;  %v244_v57 = vmul.f32 %v464_v0, %v205_v45  ;;  %v308_v58 = vmax.f32 %v276_v50, 0.0  ;;  %v309_v59 = vmax.f32 %v277_v51, 0.0 }
  0x28   : > { %v310_v60 = vmax.f32 %v278_v52, 0.0  ;;  %v282_v61 = vadd.f32 %v474_v1, %v243_v53  ;;  %v311_v62 = vmax.f32 %v279_v54, 0.0  ;;  %v312_v63 = vmax.f32 %v280_v55, 0.0 }
  0x29   : > { %v313_v2 = vmax.f32 %v281_v56, 0.0  ;;  %v283_v3 = vadd.f32 %v474_v1, %v244_v57  ;;  %340 = vst [vmem:[%s497_s25 + $0xc0] sm:$0xff] %v308_v58  ;;  %341 = vst [vmem:[%s497_s25 + $0xc8] sm:$0xff] %v309_v59 }
  0x2a   : > { %342 = vst [vmem:[%s497_s25 + $0xd0] sm:$0xff] %v310_v60  ;;  %v314_v4 = vmax.f32 %v282_v61, 0.0  ;;  %343 = vst [vmem:[%s497_s25 + $0xd8] sm:$0xff] %v311_v62 }
  0x2b   : > { %344 = vst [vmem:[%s497_s25 + $0xe0] sm:$0xff] %v312_v63  ;;  %345 = vst [vmem:[%s497_s25 + $0xe8] sm:$0xff] %v313_v2  ;;  %v315_v0 = vmax.f32 %v283_v3, 0.0 }
  0x2c   : > { %346 = vst [vmem:[%s497_s25 + $0xf0] sm:$0xff] %v314_v4 }
  0x2d   : > { %347 = vst [vmem:[%s497_s25 + $0xf8] sm:$0xff] %v315_v0 }
  0x2e PF: > { %s13_s12 = sadd.s32 1, %s431_s12  }
  0x2f   : > { %p10_p4 = scmp.ge.s32.totalorder %s13_s12, 4  }
  0x31   :  { %12 = sbr.rel (!%p10_p4) target bundleno = 1 (0x1), region = 62 }

// kernel: res_block_forward.6
= control target key start
LH: loop header
LB: loop body
LE: loop exit
PB: predicated region body
PF: predicated region fallthrough
CT: control target
= control target key end

     0   :  { %s4062_s15 = smov 0   ;;  %s4722_s0 = inlined_call_operand.vmem [shape: bf16[512,1280], index: 0, kind: input, shape index: {}]   ;;  %s4723_s1 = inlined_call_operand.vmem [shape: bf16[1280,128], index: 1, kind: input, shape index: {}]   ;;  %s4724_s2 = inlined_call_operand.vmem [shape: f32[512,128], index: 2, kind: output, shape index: {0}]   ;;  %s4725_s3 = inlined_call_operand.vmem [shape: f32[2,1,128], index: 3, kind: output, shape index: {1}]   ;;  %s4726_s4 = inlined_call_operand.vmem [shape: f32[2,1,128], index: 4, kind: output, shape index: {2}]  }
   0x1 LB: > { %s4068_s16 = sadd.s32 4294967295, %s4035_s15   ;;  %p2877_p0 = scmp.ge.s32.totalorder %s4035_s15, 1  ;;  %s4035_s15 = sphi %s4062_s15, %s15_s15  }
   0x2   : > { %p169_p1 = scmp.lt.s32.totalorder %s4035_s15, 3 }
   0x4   : > { %p170_p2 = pnand %p2877_p0, %p169_p1 }
   0x5   : > { %v3709_v0 = vld [vmem:[%s4723_s1 + $0x40] sm:$0xff] (!%p170_p2)   ;;  %s2878_s19 = sshll.u32 (!%p170_p2), %s4068_s16, 5  ;;  %v3711_v2 = vld [vmem:[%s4723_s1 + $0x48] sm:$0xff] (!%p170_p2)   ;;  %v3713_v4 = vld [vmem:[%s4723_s1 + $0x50] sm:$0xff] (!%p170_p2)   ;;  %p215_p4 = scmp.lt.s32.totalorder (!%p170_p2), %s4068_s16, 1 }
   0x6   : > { %173 = sbr.rel (%p170_p2) target bundleno = 588 (0x24c), region = 28  ;;  %v3710_v1 = vld [vmem:[%s4723_s1] sm:$0xff] (!%p170_p2)   ;;  %3124 = vmatprep.subr.bf16.mxu0 (!%p170_p2), %v3709_v0  ;;  %3684 = vmatprep.subr.bf16.mxu1 (!%p170_p2), %v3709_v0  ;;  %p203_p3 = scmp.lt.s32.totalorder (!%p170_p2), %s2878_s19, 63  ;;  %v3712_v3 = vld [vmem:[%s4723_s1 + $0x8] sm:$0xff] (!%p170_p2)   ;;  %v3714_v5 = vld [vmem:[%s4723_s1 + $0x10] sm:$0xff] (!%p170_p2)  }
   0x7   : > { %3125 = vmatpush3.bf16.msra.mxu0 (!%p170_p2), %v3710_v1  ;;  %3692 = vmatpush3.bf16.msra.mxu1 (!%p170_p2), %v3710_v1  ;;  %v3715_v6 = vld [vmem:[%s4723_s1 + $0x58] sm:$0xff] (!%p170_p2)   ;;  %v3717_v8 = vld [vmem:[%s4723_s1 + $0x60] sm:$0xff] (!%p170_p2)   ;;  %v3719_v10 = vld [vmem:[%s4723_s1 + $0x68] sm:$0xff] (!%p170_p2)  }
   0x8   : > { %3126 = vmatprep.subr.bf16.mxu0 (!%p170_p2), %v3711_v2  ;;  %3685 = vmatprep.subr.bf16.mxu1 (!%p170_p2), %v3711_v2  ;;  %v3716_v7 = vld [vmem:[%s4723_s1 + $0x18] sm:$0xff] (!%p170_p2)   ;;  %v3718_v9 = vld [vmem:[%s4723_s1 + $0x20] sm:$0xff] (!%p170_p2)   ;;  %v3720_v13 = vld [vmem:[%s4723_s1 + $0x28] sm:$0xff] (!%p170_p2)  }
   0x9   : > { %v3721_v14 = vld [vmem:[%s4723_s1 + $0x70] sm:$0xff] (!%p170_p2)   ;;  %v3723_v16 = vld [vmem:[%s4723_s1 + $0x78] sm:$0xff] (!%p170_p2)   ;;  %v3731_v18 = vld [vmem:[%s4723_s1 + $0xc0] sm:$0xff] (!%p170_p2)  }
   0xa   : > { %v3722_v15 = vld [vmem:[%s4723_s1 + $0x30] sm:$0xff] (!%p170_p2)   ;;  %v3724_v17 = vld [vmem:[%s4723_s1 + $0x38] sm:$0xff] (!%p170_p2)   ;;  %v3733_v20 = vld [vmem:[%s4723_s1 + $0x140] sm:$0xff] (!%p170_p2)  }
   0xb   : > { %3127 = vmatpush3.bf16.msra.mxu0 (!%p170_p2), %v3712_v3  ;;  %3693 = vmatpush3.bf16.msra.mxu1 (!%p170_p2), %v3712_v3  ;;  %v3732_v22 = vld [vmem:[%s4723_s1 + $0x80] sm:$0xff] (!%p170_p2)   ;;  %v3741_v26 = vld [vmem:[%s4723_s1 + $0xc8] sm:$0xff] (!%p170_p2)   ;;  %v3751_v30 = vld [vmem:[%s4723_s1 + $0xd0] sm:$0xff] (!%p170_p2)  }
   0xc   : > { %3128 = vmatprep.subr.bf16.mxu0 (!%p170_p2), %v3713_v4  ;;  %3686 = vmatprep.subr.bf16.mxu1 (!%p170_p2), %v3713_v4  ;;  %v3734_v23 = vld [vmem:[%s4723_s1 + $0x100] sm:$0xff] (!%p170_p2)   ;;  %v3742_v27 = vld [vmem:[%s4723_s1 + $0x88] sm:$0xff] (!%p170_p2)   ;;  %v3753_v33 = vld [vmem:[%s4723_s1 + $0x150] sm:$0xff] (!%p170_p2)  }
   0xd   : > { %s4728_s19 = smov (!%p203_p3, %s2878_s19), 63  ;;  %v3743_v28 = vld [vmem:[%s4723_s1 + $0x148] sm:$0xff]   ;;  %v3752_v36 = vld [vmem:[%s4723_s1 + $0x90] sm:$0xff]   ;;  %v3761_v38 = vld [vmem:[%s4723_s1 + $0xd8] sm:$0xff]   ;;  %s4730_s16 = smov (!%p215_p4, %s4068_s16), 1 }
   0xe   : > { %s3700_s6 = smul.u32 40, %s4728_s19  ;;  %v3744_v29 = vld [vmem:[%s4723_s1 + $0x108] sm:$0xff]   ;;  %v3754_v37 = vld [vmem:[%s4723_s1 + $0x110] sm:$0xff]   ;;  %v3763_v39 = vld [vmem:[%s4723_s1 + $0x158] sm:$0xff]   ;;  %s217_s5 = scalar_lea.vmem %s4725_s3, %s4730_s16 }
   0xf   : > { %3129 = vmatpush3.bf16.msra.mxu0 %v3714_v5  ;;  %3694 = vmatpush3.bf16.msra.mxu1 %v3714_v5  ;;  %v3762_v42 = vld [vmem:[%s4723_s1 + $0x98] sm:$0xff]   ;;  %v3771_v46 = vld [vmem:[%s4723_s1 + $0xe0] sm:$0xff]   ;;  %v3781_v52 = vld [vmem:[%s4723_s1 + $0xe8] sm:$0xff]   ;;  %s220_s8 = scalar_lea.vmem %s4726_s4, %s4730_s16 }
  0x10   : > { %3130 = vmatprep.subr.bf16.mxu0 %v3715_v6  ;;  %3687 = vmatprep.subr.bf16.mxu1 %v3715_v6  ;;  %s4106_s13 = scalar_lea.vmem %s4722_s0, %s3700_s6  ;;  %v3764_v43 = vld [vmem:[%s4723_s1 + $0x118] sm:$0xff]   ;;  %v3772_v47 = vld [vmem:[%s4723_s1 + $0xa0] sm:$0xff]   ;;  %v3782_v55 = vld [vmem:[%s4723_s1 + $0xa8] sm:$0xff]  }
  0x11   : > { %v3727_v11 = vld [vmem:[%s4106_s13 + $0x4] ss:$40 sps:$4 sm:$0xff]   ;;  %v3725_v19 = vld [vmem:[%s4106_s13] ss:$40 sps:$4 sm:$0xff]   ;;  %v3735_v24 = vld [vmem:[%s4106_s13 + $0x54] ss:$40 sps:$4 sm:$0xff]  }
  0x12   : > { %v3730_v12 = vld [vmem:[%s4106_s13 + $0x284] ss:$40 sps:$4 sm:$0xff]   ;;  %1854 = vmatprep.mubr.bf16.mxu0 %v3727_v11  ;;  %v3728_v21 = vld [vmem:[%s4106_s13 + $0x280] ss:$40 sps:$4 sm:$0xff]   ;;  %v3737_v25 = vld [vmem:[%s4106_s13 + $0x2d4] ss:$40 sps:$4 sm:$0xff]  }
  0x13   : > { %3131 = vmatpush3.bf16.msra.mxu0 %v3716_v7  ;;  %3695 = vmatpush3.bf16.msra.mxu1 %v3716_v7  ;;  %v3739_v31 = vld [vmem:[%s4106_s13 + $0x50] ss:$40 sps:$4 sm:$0xff]   ;;  %v3745_v34 = vld [vmem:[%s4106_s13 + $0xa4] ss:$40 sps:$4 sm:$0xff]   ;;  %v3749_v40 = vld [vmem:[%s4106_s13 + $0xa0] ss:$40 sps:$4 sm:$0xff]  }
  0x14   : > { %3132 = vmatprep.subr.bf16.mxu0 %v3717_v8  ;;  %3688 = vmatprep.subr.bf16.mxu1 %v3717_v8  ;;  %v3740_v32 = vld [vmem:[%s4106_s13 + $0x2d0] ss:$40 sps:$4 sm:$0xff]   ;;  %v3747_v35 = vld [vmem:[%s4106_s13 + $0x324] ss:$40 sps:$4 sm:$0xff]   ;;  %v3750_v41 = vld [vmem:[%s4106_s13 + $0x320] ss:$40 sps:$4 sm:$0xff]  }
  0x15   : > { %1918 = vmatprep.mubr.bf16.mxu1 %v3730_v12  ;;  %v3755_v44 = vld [vmem:[%s4106_s13 + $0xf4] ss:$40 sps:$4 sm:$0xff]   ;;  %v3773_v48 = vld [vmem:[%s4723_s1 + $0x160] sm:$0xff]   ;;  %v3759_v50 = vld [vmem:[%s4106_s13 + $0xf0] ss:$40 sps:$4 sm:$0xff]  }
  0x16   : > { %v3757_v45 = vld [vmem:[%s4106_s13 + $0x374] ss:$40 sps:$4 sm:$0xff]   ;;  %v3774_v49 = vld [vmem:[%s4723_s1 + $0x120] sm:$0xff]   ;;  %v3760_v51 = vld [vmem:[%s4106_s13 + $0x370] ss:$40 sps:$4 sm:$0xff]  }
  0x17   : > { %3133 = vmatpush3.bf16.msra.mxu0 %v3718_v9  ;;  %3696 = vmatpush3.bf16.msra.mxu1 %v3718_v9  ;;  %v3765_v53 = vld [vmem:[%s4106_s13 + $0x144] ss:$40 sps:$4 sm:$0xff]   ;;  %v3791_v58 = vld [vmem:[%s4723_s1 + $0xf0] sm:$0xff]   ;;  %v3769_v59 = vld [vmem:[%s4106_s13 + $0x140] ss:$40 sps:$4 sm:$0xff]  }
  0x18   : > { %3134 = vmatprep.subr.bf16.mxu0 %v3719_v10  ;;  %3689 = vmatprep.subr.bf16.mxu1 %v3719_v10  ;;  %v3767_v54 = vld [vmem:[%s4106_s13 + $0x3c4] ss:$40 sps:$4 sm:$0xff]   ;;  %v3770_v60 = vld [vmem:[%s4106_s13 + $0x3c0] ss:$40 sps:$4 sm:$0xff]   ;;  %v3792_v61 = vld [vmem:[%s4723_s1 + $0xb0] sm:$0xff]  }
  0x19   : > { %v3783_v56 = vld [vmem:[%s4723_s1 + $0x168] sm:$0xff]   ;;  %v3775_v62 = vld [vmem:[%s4106_s13 + $0x194] ss:$40 sps:$4 sm:$0xff]   ;;  %v3779_v6 = vld [vmem:[%s4106_s13 + $0x190] ss:$40 sps:$4 sm:$0xff]  }
  0x1a   : > { %v3784_v57 = vld [vmem:[%s4723_s1 + $0x128] sm:$0xff]   ;;  %v3793_v63 = vld [vmem:[%s4723_s1 + $0x170] sm:$0xff]   ;;  %v3801_v2 = vld [vmem:[%s4723_s1 + $0xf8] sm:$0xff]  }
  0x1b   : > { %3135 = vmatpush3.bf16.msra.mxu0 %v3720_v13  ;;  %3697 = vmatpush3.bf16.msra.mxu1 %v3720_v13  ;;  %v3794_v0 = vld [vmem:[%s4723_s1 + $0x130] sm:$0xff]   ;;  %v3802_v3 = vld [vmem:[%s4723_s1 + $0xb8] sm:$0xff]   ;;  %v3785_v8 = vld [vmem:[%s4106_s13 + $0x1e4] ss:$40 sps:$4 sm:$0xff]  }
  0x1c   : > { %3136 = vmatprep.subr.bf16.mxu0 %v3721_v14  ;;  %3690 = vmatprep.subr.bf16.mxu1 %v3721_v14  ;;  %v3777_v1 = vld [vmem:[%s4106_s13 + $0x414] ss:$40 sps:$4 sm:$0xff]   ;;  %v3780_v7 = vld [vmem:[%s4106_s13 + $0x410] ss:$40 sps:$4 sm:$0xff]   ;;  %v3787_v9 = vld [vmem:[%s4106_s13 + $0x464] ss:$40 sps:$4 sm:$0xff]  }
  0x1d   : > { %v3803_v4 = vld [vmem:[%s4723_s1 + $0x178] sm:$0xff]   ;;  %v3811_v10 = vld [vmem:[%s4723_s1 + $0x1c0] sm:$0xff]  }
  0x1e   : > { %v3804_v5 = vld [vmem:[%s4723_s1 + $0x138] sm:$0xff]   ;;  %v3813_v11 = vld [vmem:[%s4723_s1 + $0x240] sm:$0xff]  }
  0x1f   : > { %3137 = vmatpush3.bf16.msra.mxu0 %v3722_v15  ;;  %3698 = vmatpush3.bf16.msra.mxu1 %v3722_v15  ;;  %v3789_v12 = vld [vmem:[%s4106_s13 + $0x1e0] ss:$40 sps:$4 sm:$0xff]   ;;  %v3795_v14 = vld [vmem:[%s4106_s13 + $0x234] ss:$40 sps:$4 sm:$0xff]  }
  0x20   : > { %3138 = vmatprep.subr.bf16.mxu0 %v3723_v16  ;;  %3691 = vmatprep.subr.bf16.mxu1 %v3723_v16  ;;  %v3790_v13 = vld [vmem:[%s4106_s13 + $0x460] ss:$40 sps:$4 sm:$0xff]   ;;  %v3797_v15 = vld [vmem:[%s4106_s13 + $0x4b4] ss:$40 sps:$4 sm:$0xff]   ;;  %v3799_v16 = vld [vmem:[%s4106_s13 + $0x230] ss:$40 sps:$4 sm:$0xff]  }
  0x23   : > { %3139 = vmatpush3.bf16.msra.mxu0 %v3724_v17  ;;  %3699 = vmatpush3.bf16.msra.mxu1 %v3724_v17  ;;  %v3800_v17 = vld [vmem:[%s4106_s13 + $0x4b0] ss:$40 sps:$4 sm:$0xff]  }
  0x24   : > { %3236 = vmatprep.subr.bf16.mxu1 %v3731_v18  ;;  %3348 = vmatprep.subr.bf16.mxu0 %v3733_v20  ;;  %v3807_v18 = vld [vmem:[%s4106_s13 + $0xc] ss:$40 sps:$4 sm:$0xff]   ;;  %v3805_v20 = vld [vmem:[%s4106_s13 + $0x8] ss:$40 sps:$4 sm:$0xff]  }
  0x26   : > { %1855 = vmatmul.mubr.bf16.vlgmr.msra.gmra.mrb[0].mxu0 %v3725_v19  ;;  %1919 = vmatmul.mubr.bf16.vlgmr.msra.gmra.mrb[0].mxu1 %v3728_v21  ;;  %v3810_v19 = vld [vmem:[%s4106_s13 + $0x14] ss:$40 sps:$4 sm:$0xff]   ;;  %v3808_v21 = vld [vmem:[%s4106_s13 + $0x10] ss:$40 sps:$4 sm:$0xff]  }
  0x27   : > { %3237 = vmatpush3.bf16.msra.mxu1 %v3732_v22  ;;  %3349 = vmatpush3.bf16.msra.mxu0 %v3734_v23  ;;  %v3812_v22 = vld [vmem:[%s4723_s1 + $0x180] sm:$0xff]  }
  0x28   : > { %1862 = vmatprep.mubr.bf16.mxu0 %v3735_v24  ;;  %1926 = vmatprep.mubr.bf16.mxu1 %v3737_v25  ;;  %v3814_v23 = vld [vmem:[%s4723_s1 + $0x200] sm:$0xff]  }
  0x29   : > { %3238 = vmatprep.subr.bf16.mxu1 %v3741_v26  ;;  %3350 = vmatprep.subr.bf16.mxu0 %v3743_v28  ;;  %v3815_v24 = vld [vmem:[%s4106_s13 + $0x5c] ss:$40 sps:$4 sm:$0xff]   ;;  %v3827_v26 = vld [vmem:[%s4723_s1 + $0x1c8] sm:$0xff]  }
  0x2a   : > { %v3817_v25 = vld [vmem:[%s4106_s13 + $0x64] ss:$40 sps:$4 sm:$0xff]  }
  0x2b   : > { %3239 = vmatpush3.bf16.msra.mxu1 %v3742_v27  ;;  %3351 = vmatpush3.bf16.msra.mxu0 %v3744_v29  ;;  %v3829_v27 = vld [vmem:[%s4723_s1 + $0x248] sm:$0xff]  }
  0x2c   : > { %3240 = vmatprep.subr.bf16.mxu1 %v3751_v30  ;;  %3352 = vmatprep.subr.bf16.mxu0 %v3753_v33  ;;  %v3828_v28 = vld [vmem:[%s4723_s1 + $0x188] sm:$0xff]   ;;  %v3843_v30 = vld [vmem:[%s4723_s1 + $0x1d0] sm:$0xff]  }
  0x2d   : > { %v3830_v29 = vld [vmem:[%s4723_s1 + $0x208] sm:$0xff]   ;;  %v3845_v33 = vld [vmem:[%s4723_s1 + $0x250] sm:$0xff]  }
  0x2e   : > { %1863 = vmatmul.mubr.bf16.gmra.mrb[4].mxu0 %v3739_v31  ;;  %1927 = vmatmul.mubr.bf16.gmra.mrb[4].mxu1 %v3740_v32  ;;  %v3819_v31 = vld [vmem:[%s4106_s13 + $0x58] ss:$40 sps:$4 sm:$0xff]  }
  0x2f   : > { %1870 = vmatprep.mubr.bf16.mxu0 %v3745_v34  ;;  %1934 = vmatprep.mubr.bf16.mxu1 %v3747_v35  ;;  %v3820_v32 = vld [vmem:[%s4106_s13 + $0x60] ss:$40 sps:$4 sm:$0xff]   ;;  %v3821_v34 = vld [vmem:[%s4106_s13 + $0xac] ss:$40 sps:$4 sm:$0xff]  }
  0x30   : > { %3241 = vmatpush3.bf16.msra.mxu1 %v3752_v36  ;;  %3353 = vmatpush3.bf16.msra.mxu0 %v3754_v37  ;;  %v3823_v35 = vld [vmem:[%s4106_s13 + $0xb4] ss:$40 sps:$4 sm:$0xff]  }
  0x31   : > { %3242 = vmatprep.subr.bf16.mxu1 %v3761_v38  ;;  %3354 = vmatprep.subr.bf16.mxu0 %v3763_v39  ;;  %v3844_v36 = vld [vmem:[%s4723_s1 + $0x190] sm:$0xff]   ;;  %v3859_v38 = vld [vmem:[%s4723_s1 + $0x1d8] sm:$0xff]  }
  0x32   : > { %v3846_v37 = vld [vmem:[%s4723_s1 + $0x210] sm:$0xff]   ;;  %v3861_v39 = vld [vmem:[%s4723_s1 + $0x258] sm:$0xff]  }
  0x34   : > { %3243 = vmatpush3.bf16.msra.mxu1 %v3762_v42  ;;  %3355 = vmatpush3.bf16.msra.mxu0 %v3764_v43  ;;  %v3860_v42 = vld [vmem:[%s4723_s1 + $0x198] sm:$0xff]  }
  0x35   : > { %3244 = vmatprep.subr.bf16.mxu1 %v3771_v46  ;;  %3356 = vmatprep.subr.bf16.mxu0 %v3773_v48  ;;  %v3862_v43 = vld [vmem:[%s4723_s1 + $0x218] sm:$0xff]   ;;  %v3875_v46 = vld [vmem:[%s4723_s1 + $0x1e0] sm:$0xff]  }
  0x36   : > { %1871 = vmatmul.mubr.bf16.gmra.mrb[8].mxu0 %v3749_v40  ;;  %1935 = vmatmul.mubr.bf16.gmra.mrb[8].mxu1 %v3750_v41  ;;  %v3825_v40 = vld [vmem:[%s4106_s13 + $0xa8] ss:$40 sps:$4 sm:$0xff]   ;;  %v3877_v48 = vld [vmem:[%s4723_s1 + $0x260] sm:$0xff]  }
  0x37   : > { %1878 = vmatprep.mubr.bf16.mxu0 %v3755_v44  ;;  %1942 = vmatprep.mubr.bf16.mxu1 %v3757_v45  ;;  %v3826_v41 = vld [vmem:[%s4106_s13 + $0xb0] ss:$40 sps:$4 sm:$0xff]   ;;  %v3831_v44 = vld [vmem:[%s4106_s13 + $0xfc] ss:$40 sps:$4 sm:$0xff]  }
  0x38   : > { %3245 = vmatpush3.bf16.msra.mxu1 %v3772_v47  ;;  %3357 = vmatpush3.bf16.msra.mxu0 %v3774_v49  ;;  %v3833_v45 = vld [vmem:[%s4106_s13 + $0x104] ss:$40 sps:$4 sm:$0xff]  }
  0x39   : > { %3246 = vmatprep.subr.bf16.mxu1 %v3781_v52  ;;  %3358 = vmatprep.subr.bf16.mxu0 %v3783_v56  ;;  %v3876_v47 = vld [vmem:[%s4723_s1 + $0x1a0] sm:$0xff]   ;;  %v3837_v52 = vld [vmem:[%s4106_s13 + $0x14c] ss:$40 sps:$4 sm:$0xff]  }
  0x3a   : > { %v3878_v49 = vld [vmem:[%s4723_s1 + $0x220] sm:$0xff]   ;;  %v3893_v56 = vld [vmem:[%s4723_s1 + $0x268] sm:$0xff]  }
  0x3c   : > { %3247 = vmatpush3.bf16.msra.mxu1 %v3782_v55  ;;  %3359 = vmatpush3.bf16.msra.mxu0 %v3784_v57  ;;  %v3892_v55 = vld [vmem:[%s4723_s1 + $0x1a8] sm:$0xff]  }
  0x3d   : > { %3248 = vmatprep.subr.bf16.mxu1 %v3791_v58  ;;  %3360 = vmatprep.subr.bf16.mxu0 %v3793_v63  ;;  %v3894_v57 = vld [vmem:[%s4723_s1 + $0x228] sm:$0xff]   ;;  %v3908_v63 = vld [vmem:[%s4723_s1 + $0x1b0] sm:$0xff]  }
  0x3e   : > { %1879 = vmatmul.mubr.bf16.gmra.mrb[12].mxu0 %v3759_v50  ;;  %1943 = vmatmul.mubr.bf16.gmra.mrb[12].mxu1 %v3760_v51  ;;  %v3835_v50 = vld [vmem:[%s4106_s13 + $0xf8] ss:$40 sps:$4 sm:$0xff]   ;;  %v3841_v58 = vld [vmem:[%s4106_s13 + $0x148] ss:$40 sps:$4 sm:$0xff]  }
  0x3f   : > { %1886 = vmatprep.mubr.bf16.mxu0 %v3765_v53  ;;  %1950 = vmatprep.mubr.bf16.mxu1 %v3767_v54  ;;  %v3836_v51 = vld [vmem:[%s4106_s13 + $0x100] ss:$40 sps:$4 sm:$0xff]   ;;  %v3839_v53 = vld [vmem:[%s4106_s13 + $0x154] ss:$40 sps:$4 sm:$0xff]  }
  0x40   : > { %3249 = vmatpush3.bf16.msra.mxu1 %v3792_v61  ;;  %3361 = vmatpush3.bf16.msra.mxu0 %v3794_v0  ;;  %v3891_v54 = vld [vmem:[%s4723_s1 + $0x1e8] sm:$0xff]   ;;  %v3909_v0 = vld [vmem:[%s4723_s1 + $0x270] sm:$0xff]  }
  0x41   : > { %3250 = vmatprep.subr.bf16.mxu1 %v3801_v2  ;;  %3362 = vmatprep.subr.bf16.mxu0 %v3803_v4  ;;  %v3849_v61 = vld [vmem:[%s4106_s13 + $0x1a4] ss:$40 sps:$4 sm:$0xff]   ;;  %v3851_v2 = vld [vmem:[%s4106_s13 + $0x198] ss:$40 sps:$4 sm:$0xff]  }
  0x42   : > { %v3853_v4 = vld [vmem:[%s4106_s13 + $0x1ec] ss:$40 sps:$4 sm:$0xff]  }
  0x44   : > { %3251 = vmatpush3.bf16.msra.mxu1 %v3802_v3  ;;  %3363 = vmatpush3.bf16.msra.mxu0 %v3804_v5  ;;  %v3852_v3 = vld [vmem:[%s4106_s13 + $0x1a0] ss:$40 sps:$4 sm:$0xff]   ;;  %v3855_v5 = vld [vmem:[%s4106_s13 + $0x1f4] ss:$40 sps:$4 sm:$0xff]  }
  0x45   : > { %3460 = vmatprep.subr.bf16.mxu1 %v3811_v10  ;;  %3572 = vmatprep.subr.bf16.mxu0 %v3813_v11  ;;  %v3926_v10 = vld [vmem:[%s4723_s1 + $0x238] sm:$0xff]  }
  0x46   : > { %1887 = vmatmul.mubr.bf16.gmra.mrb[16].mxu0 %v3769_v59  ;;  %1951 = vmatmul.mubr.bf16.gmra.mrb[16].mxu1 %v3770_v60  ;;  %v3842_v59 = vld [vmem:[%s4106_s13 + $0x150] ss:$40 sps:$4 sm:$0xff]   ;;  %v3847_v60 = vld [vmem:[%s4106_s13 + $0x19c] ss:$40 sps:$4 sm:$0xff]  }
  0x47   : > { %1894 = vmatprep.mubr.bf16.mxu0 %v3775_v62  ;;  %1958 = vmatprep.mubr.bf16.mxu1 %v3777_v1  ;;  %v3907_v62 = vld [vmem:[%s4723_s1 + $0x1f0] sm:$0xff]  }
  0x48   : > { %v3910_v1 = vld [vmem:[%s4723_s1 + $0x230] sm:$0xff]  }
  0x49   : > { %v3858_v11 = vld [vmem:[%s4106_s13 + $0x1f0] ss:$40 sps:$4 sm:$0xff]  }
  0x4e   : > { %1895 = vmatmul.mubr.bf16.gmra.mrb[20].mxu0 %v3779_v6  ;;  %1959 = vmatmul.mubr.bf16.gmra.mrb[20].mxu1 %v3780_v7  ;;  %v3923_v6 = vld [vmem:[%s4723_s1 + $0x1f8] sm:$0xff]  }
  0x4f   : > { %1902 = vmatprep.mubr.bf16.mxu0 %v3785_v8  ;;  %1966 = vmatprep.mubr.bf16.mxu1 %v3787_v9  ;;  %v3924_v7 = vld [vmem:[%s4723_s1 + $0x1b8] sm:$0xff]   ;;  %v3857_v8 = vld [vmem:[%s4106_s13 + $0x1e8] ss:$40 sps:$4 sm:$0xff]  }
  0x50   : > { %v3925_v9 = vld [vmem:[%s4723_s1 + $0x278] sm:$0xff]  }
  0x56   : > { %1903 = vmatmul.mubr.bf16.gmra.mrb[24].mxu0 %v3789_v12  ;;  %1967 = vmatmul.mubr.bf16.gmra.mrb[24].mxu1 %v3790_v13  ;;  %v3863_v12 = vld [vmem:[%s4106_s13 + $0x23c] ss:$40 sps:$4 sm:$0xff]  }
  0x57   : > { %1910 = vmatprep.mubr.bf16.mxu0 %v3795_v14  ;;  %1974 = vmatprep.mubr.bf16.mxu1 %v3797_v15  ;;  %v3865_v13 = vld [vmem:[%s4106_s13 + $0x244] ss:$40 sps:$4 sm:$0xff]   ;;  %v3867_v14 = vld [vmem:[%s4106_s13 + $0x238] ss:$40 sps:$4 sm:$0xff]  }
  0x58   : > { %v3868_v15 = vld [vmem:[%s4106_s13 + $0x240] ss:$40 sps:$4 sm:$0xff]  }
  0x5e   : > { %1911 = vmatmul.mubr.bf16.gmra.mrb[28].mxu0 %v3799_v16  ;;  %1975 = vmatmul.mubr.bf16.gmra.mrb[28].mxu1 %v3800_v17  ;;  %v3869_v16 = vld [vmem:[%s4106_s13 + $0x28c] ss:$40 sps:$4 sm:$0xff]  }
  0x5f   : > { %2015 = vmatprep.mubr.bf16.mxu1 %v3807_v18  ;;  %2176 = vmatprep.mubr.bf16.mxu0 %v3810_v19  ;;  %v3871_v17 = vld [vmem:[%s4106_s13 + $0x294] ss:$40 sps:$4 sm:$0xff]   ;;  %v3873_v18 = vld [vmem:[%s4106_s13 + $0x288] ss:$40 sps:$4 sm:$0xff]  }
  0x60   : > { %v3874_v19 = vld [vmem:[%s4106_s13 + $0x290] ss:$40 sps:$4 sm:$0xff]  }
  0x66   : > { %2016 = vmatmul.mubr.bf16.vlgmr.msra.gmra.mrb[32].mxu1 %v3805_v20  ;;  %2177 = vmatmul.mubr.bf16.vlgmr.msra.gmra.mrb[32].mxu0 %v3808_v21  ;;  %v3879_v20 = vld [vmem:[%s4106_s13 + $0x2dc] ss:$40 sps:$4 sm:$0xff]  }
  0x67   : > { %3461 = vmatpush3.bf16.msra.mxu1 %v3812_v22  ;;  %3573 = vmatpush3.bf16.msra.mxu0 %v3814_v23  ;;  %v3881_v21 = vld [vmem:[%s4106_s13 + $0x2e4] ss:$40 sps:$4 sm:$0xff]   ;;  %v3883_v22 = vld [vmem:[%s4106_s13 + $0x2d8] ss:$40 sps:$4 sm:$0xff]  }
  0x68   : > { %2023 = vmatprep.mubr.bf16.mxu1 %v3815_v24  ;;  %2184 = vmatprep.mubr.bf16.mxu0 %v3817_v25  ;;  %v3884_v23 = vld [vmem:[%s4106_s13 + $0x2e0] ss:$40 sps:$4 sm:$0xff]   ;;  %v3885_v24 = vld [vmem:[%s4106_s13 + $0x32c] ss:$40 sps:$4 sm:$0xff]  }
  0x69   : > { %3462 = vmatprep.subr.bf16.mxu1 %v3827_v26  ;;  %3574 = vmatprep.subr.bf16.mxu0 %v3829_v27  ;;  %v3887_v25 = vld [vmem:[%s4106_s13 + $0x334] ss:$40 sps:$4 sm:$0xff]   ;;  %v3889_v26 = vld [vmem:[%s4106_s13 + $0x328] ss:$40 sps:$4 sm:$0xff]  }
  0x6a   : > { %v3890_v27 = vld [vmem:[%s4106_s13 + $0x330] ss:$40 sps:$4 sm:$0xff]  }
  0x6b   : > { %3463 = vmatpush3.bf16.msra.mxu1 %v3828_v28  ;;  %3575 = vmatpush3.bf16.msra.mxu0 %v3830_v29  ;;  %v3895_v28 = vld [vmem:[%s4106_s13 + $0x37c] ss:$40 sps:$4 sm:$0xff]  }
  0x6c   : > { %3464 = vmatprep.subr.bf16.mxu1 %v3843_v30  ;;  %3576 = vmatprep.subr.bf16.mxu0 %v3845_v33  ;;  %v3897_v29 = vld [vmem:[%s4106_s13 + $0x384] ss:$40 sps:$4 sm:$0xff]   ;;  %v3899_v30 = vld [vmem:[%s4106_s13 + $0x378] ss:$40 sps:$4 sm:$0xff]   ;;  %v3903_v33 = vld [vmem:[%s4106_s13 + $0x3d4] ss:$40 sps:$4 sm:$0xff]  }
  0x6e   : > { %2024 = vmatmul.mubr.bf16.gmra.mrb[36].mxu1 %v3819_v31  ;;  %2185 = vmatmul.mubr.bf16.gmra.mrb[36].mxu0 %v3820_v32  ;;  %v3900_v31 = vld [vmem:[%s4106_s13 + $0x380] ss:$40 sps:$4 sm:$0xff]   ;;  %v3901_v32 = vld [vmem:[%s4106_s13 + $0x3cc] ss:$40 sps:$4 sm:$0xff]  }
  0x6f   : > { %2031 = vmatprep.mubr.bf16.mxu1 %v3821_v34  ;;  %2192 = vmatprep.mubr.bf16.mxu0 %v3823_v35  ;;  %v3905_v34 = vld [vmem:[%s4106_s13 + $0x3c8] ss:$40 sps:$4 sm:$0xff]  }
  0x70   : > { %3465 = vmatpush3.bf16.msra.mxu1 %v3844_v36  ;;  %3577 = vmatpush3.bf16.msra.mxu0 %v3846_v37  ;;  %v3906_v35 = vld [vmem:[%s4106_s13 + $0x3d0] ss:$40 sps:$4 sm:$0xff]   ;;  %v3911_v36 = vld [vmem:[%s4106_s13 + $0x41c] ss:$40 sps:$4 sm:$0xff]  }
  0x71   : > { %3466 = vmatprep.subr.bf16.mxu1 %v3859_v38  ;;  %3578 = vmatprep.subr.bf16.mxu0 %v3861_v39  ;;  %v3913_v37 = vld [vmem:[%s4106_s13 + $0x424] ss:$40 sps:$4 sm:$0xff]   ;;  %v3915_v38 = vld [vmem:[%s4106_s13 + $0x418] ss:$40 sps:$4 sm:$0xff]  }
  0x72   : > { %v3916_v39 = vld [vmem:[%s4106_s13 + $0x420] ss:$40 sps:$4 sm:$0xff]  }
  0x74   : > { %3467 = vmatpush3.bf16.msra.mxu1 %v3860_v42  ;;  %3579 = vmatpush3.bf16.msra.mxu0 %v3862_v43  ;;  %v3921_v42 = vld [vmem:[%s4106_s13 + $0x468] ss:$40 sps:$4 sm:$0xff]  }
  0x75   : > { %3468 = vmatprep.subr.bf16.mxu1 %v3875_v46  ;;  %3580 = vmatprep.subr.bf16.mxu0 %v3877_v48  ;;  %v3922_v43 = vld [vmem:[%s4106_s13 + $0x470] ss:$40 sps:$4 sm:$0xff]   ;;  %v3935_v48 = vld [vmem:[%s4106_s13 + $0x1c] ss:$40 sps:$4 sm:$0xff]  }
  0x76   : > { %2032 = vmatmul.mubr.bf16.gmra.mrb[40].mxu1 %v3825_v40  ;;  %2193 = vmatmul.mubr.bf16.gmra.mrb[40].mxu0 %v3826_v41  ;;  %v3917_v40 = vld [vmem:[%s4106_s13 + $0x46c] ss:$40 sps:$4 sm:$0xff]   ;;  %v3931_v46 = vld [vmem:[%s4106_s13 + $0x4b8] ss:$40 sps:$4 sm:$0xff]  }
  0x77   : > { %2039 = vmatprep.mubr.bf16.mxu1 %v3831_v44  ;;  %2200 = vmatprep.mubr.bf16.mxu0 %v3833_v45  ;;  %v3919_v41 = vld [vmem:[%s4106_s13 + $0x474] ss:$40 sps:$4 sm:$0xff]   ;;  %v3929_v45 = vld [vmem:[%s4106_s13 + $0x4c4] ss:$40 sps:$4 sm:$0xff]  }
  0x78   : > { %3469 = vmatpush3.bf16.msra.mxu1 %v3876_v47  ;;  %3581 = vmatpush3.bf16.msra.mxu0 %v3878_v49  ;;  %v3927_v44 = vld [vmem:[%s4106_s13 + $0x4bc] ss:$40 sps:$4 sm:$0xff]   ;;  %v3932_v47 = vld [vmem:[%s4106_s13 + $0x4c0] ss:$40 sps:$4 sm:$0xff]  }
  0x79   : > { %3470 = vmatprep.subr.bf16.mxu1 %v3891_v54  ;;  %3582 = vmatprep.subr.bf16.mxu0 %v3893_v56  ;;  %v3938_v49 = vld [vmem:[%s4106_s13 + $0x24] ss:$40 sps:$4 sm:$0xff]   ;;  %v3943_v54 = vld [vmem:[%s4106_s13 + $0x68] ss:$40 sps:$4 sm:$0xff]  }
  0x7a   : > { %v3945_v56 = vld [vmem:[%s4106_s13 + $0xbc] ss:$40 sps:$4 sm:$0xff]  }
  0x7c   : > { %3471 = vmatpush3.bf16.msra.mxu1 %v3892_v55  ;;  %3583 = vmatpush3.bf16.msra.mxu0 %v3894_v57  ;;  %v3944_v55 = vld [vmem:[%s4106_s13 + $0x70] ss:$40 sps:$4 sm:$0xff]   ;;  %v3947_v57 = vld [vmem:[%s4106_s13 + $0xc4] ss:$40 sps:$4 sm:$0xff]  }
  0x7d   : > { %3472 = vmatprep.subr.bf16.mxu1 %v3907_v62  ;;  %3584 = vmatprep.subr.bf16.mxu0 %v3909_v0 }
  0x7e   : > { %2040 = vmatmul.mubr.bf16.gmra.mrb[44].mxu1 %v3835_v50  ;;  %2201 = vmatmul.mubr.bf16.gmra.mrb[44].mxu0 %v3836_v51  ;;  %v3933_v50 = vld [vmem:[%s4106_s13 + $0x18] ss:$40 sps:$4 sm:$0xff]  }
  0x7f   : > { %2047 = vmatprep.mubr.bf16.mxu1 %v3837_v52  ;;  %2208 = vmatprep.mubr.bf16.mxu0 %v3839_v53  ;;  %v3936_v51 = vld [vmem:[%s4106_s13 + $0x20] ss:$40 sps:$4 sm:$0xff]   ;;  %v3939_v52 = vld [vmem:[%s4106_s13 + $0x6c] ss:$40 sps:$4 sm:$0xff]  }
  0x80   : > { %3473 = vmatpush3.bf16.msra.mxu1 %v3908_v63  ;;  %3585 = vmatpush3.bf16.msra.mxu0 %v3910_v1  ;;  %v3941_v53 = vld [vmem:[%s4106_s13 + $0x74] ss:$40 sps:$4 sm:$0xff]  }
  0x81   : > { %3474 = vmatprep.subr.bf16.mxu1 %v3923_v6  ;;  %3586 = vmatprep.subr.bf16.mxu0 %v3925_v9  ;;  %v3959_v9 = vld [vmem:[%s4106_s13 + $0x164] ss:$40 sps:$4 sm:$0xff]  }
  0x84   : > { %3475 = vmatpush3.bf16.msra.mxu1 %v3924_v7  ;;  %3587 = vmatpush3.bf16.msra.mxu0 %v3926_v10 }
  0x86   : > { %2048 = vmatmul.mubr.bf16.gmra.mrb[48].mxu1 %v3841_v58  ;;  %2209 = vmatmul.mubr.bf16.gmra.mrb[48].mxu0 %v3842_v59  ;;  %v3949_v58 = vld [vmem:[%s4106_s13 + $0xb8] ss:$40 sps:$4 sm:$0xff]  }
  0x87   : > { %2055 = vmatprep.mubr.bf16.mxu1 %v3847_v60  ;;  %2216 = vmatprep.mubr.bf16.mxu0 %v3849_v61  ;;  %v3950_v59 = vld [vmem:[%s4106_s13 + $0xc0] ss:$40 sps:$4 sm:$0xff]   ;;  %v3951_v60 = vld [vmem:[%s4106_s13 + $0x10c] ss:$40 sps:$4 sm:$0xff]  }
  0x88   : > { %v3953_v61 = vld [vmem:[%s4106_s13 + $0x114] ss:$40 sps:$4 sm:$0xff]  }
  0x8e   : > { %2056 = vmatmul.mubr.bf16.gmra.mrb[52].mxu1 %v3851_v2  ;;  %2217 = vmatmul.mubr.bf16.gmra.mrb[52].mxu0 %v3852_v3  ;;  %v3955_v2 = vld [vmem:[%s4106_s13 + $0x108] ss:$40 sps:$4 sm:$0xff]  }
  0x8f   : > { %2063 = vmatprep.mubr.bf16.mxu1 %v3853_v4  ;;  %2224 = vmatprep.mubr.bf16.mxu0 %v3855_v5  ;;  %v3956_v3 = vld [vmem:[%s4106_s13 + $0x110] ss:$40 sps:$4 sm:$0xff]  }
  0x96   : > { %2064 = vmatmul.mubr.bf16.gmra.mrb[56].mxu1 %v3857_v8  ;;  %2225 = vmatmul.mubr.bf16.gmra.mrb[56].mxu0 %v3858_v11  ;;  %v3957_v8 = vld [vmem:[%s4106_s13 + $0x15c] ss:$40 sps:$4 sm:$0xff]  }
  0x97   : > { %2071 = vmatprep.mubr.bf16.mxu1 %v3863_v12  ;;  %2232 = vmatprep.mubr.bf16.mxu0 %v3865_v13 }
  0x9e   : > { %2072 = vmatmul.mubr.bf16.gmra.mrb[60].mxu1 %v3867_v14  ;;  %2233 = vmatmul.mubr.bf16.gmra.mrb[60].mxu0 %v3868_v15 }
  0x9f   : > { %2079 = vmatprep.mubr.bf16.mxu1 %v3869_v16  ;;  %2240 = vmatprep.mubr.bf16.mxu0 %v3871_v17 }
  0xa6   : > { %2080 = vmatmul.mubr.bf16.gmra.mrb[64].mxu1 %v3873_v18  ;;  %2241 = vmatmul.mubr.bf16.gmra.mrb[64].mxu0 %v3874_v19  ;;  %v3961_v18 = vld [vmem:[%s4106_s13 + $0x158] ss:$40 sps:$4 sm:$0xff]  }
  0xa7   : > { %2087 = vmatprep.mubr.bf16.mxu1 %v3879_v20  ;;  %2248 = vmatprep.mubr.bf16.mxu0 %v3881_v21  ;;  %v3962_v19 = vld [vmem:[%s4106_s13 + $0x160] ss:$40 sps:$4 sm:$0xff]  }
  0xae   : > { %2088 = vmatmul.mubr.bf16.gmra.mrb[68].mxu1 %v3883_v22  ;;  %2249 = vmatmul.mubr.bf16.gmra.mrb[68].mxu0 %v3884_v23 }
  0xaf   : > { %2095 = vmatprep.mubr.bf16.mxu1 %v3885_v24  ;;  %2256 = vmatprep.mubr.bf16.mxu0 %v3887_v25  ;;  %v3963_v24 = vld [vmem:[%s4106_s13 + $0x1ac] ss:$40 sps:$4 sm:$0xff]  }
  0xb0   : > { %v3965_v25 = vld [vmem:[%s4106_s13 + $0x1b4] ss:$40 sps:$4 sm:$0xff]  }
  0xb6   : > { %2096 = vmatmul.mubr.bf16.gmra.mrb[72].mxu1 %v3889_v26  ;;  %2257 = vmatmul.mubr.bf16.gmra.mrb[72].mxu0 %v3890_v27 }
  0xb7   : > { %2103 = vmatprep.mubr.bf16.mxu1 %v3895_v28  ;;  %2264 = vmatprep.mubr.bf16.mxu0 %v3897_v29 }
  0xbe   : > { %2104 = vmatmul.mubr.bf16.gmra.mrb[76].mxu1 %v3899_v30  ;;  %2265 = vmatmul.mubr.bf16.gmra.mrb[76].mxu0 %v3900_v31 }
  0xbf   : > { %2111 = vmatprep.mubr.bf16.mxu1 %v3901_v32  ;;  %2272 = vmatprep.mubr.bf16.mxu0 %v3903_v33 }
  0xc6   : > { %2112 = vmatmul.mubr.bf16.gmra.mrb[80].mxu1 %v3905_v34  ;;  %2273 = vmatmul.mubr.bf16.gmra.mrb[80].mxu0 %v3906_v35  ;;  %v3967_v34 = vld [vmem:[%s4106_s13 + $0x1a8] ss:$40 sps:$4 sm:$0xff]  }
  0xc7   : > { %2119 = vmatprep.mubr.bf16.mxu1 %v3911_v36  ;;  %2280 = vmatprep.mubr.bf16.mxu0 %v3913_v37  ;;  %v3968_v35 = vld [vmem:[%s4106_s13 + $0x1b0] ss:$40 sps:$4 sm:$0xff]  }
  0xce   : > { %2120 = vmatmul.mubr.bf16.gmra.mrb[84].mxu1 %v3915_v38  ;;  %2281 = vmatmul.mubr.bf16.gmra.mrb[84].mxu0 %v3916_v39 }
  0xcf   : > { %2127 = vmatprep.mubr.bf16.mxu1 %v3917_v40  ;;  %2288 = vmatprep.mubr.bf16.mxu0 %v3919_v41  ;;  %v3969_v40 = vld [vmem:[%s4106_s13 + $0x1fc] ss:$40 sps:$4 sm:$0xff]  }
  0xd0   : > { %v3971_v41 = vld [vmem:[%s4106_s13 + $0x204] ss:$40 sps:$4 sm:$0xff]  }
  0xd6   : > { %2128 = vmatmul.mubr.bf16.gmra.mrb[88].mxu1 %v3921_v42  ;;  %2289 = vmatmul.mubr.bf16.gmra.mrb[88].mxu0 %v3922_v43 }
  0xd7   : > { %2135 = vmatprep.mubr.bf16.mxu1 %v3927_v44  ;;  %2296 = vmatprep.mubr.bf16.mxu0 %v3929_v45 }
  0xde   : > { %2136 = vmatmul.mubr.bf16.gmra.mrb[92].mxu1 %v3931_v46  ;;  %2297 = vmatmul.mubr.bf16.gmra.mrb[92].mxu0 %v3932_v47 }
  0xdf   : > { %2337 = vmatprep.mubr.bf16.mxu1 %v3935_v48  ;;  %2498 = vmatprep.mubr.bf16.mxu0 %v3938_v49 }
  0xe6   : > { %2338 = vmatmul.mubr.bf16.vlgmr.msra.gmra.mrb[96].mxu1 %v3933_v50  ;;  %2499 = vmatmul.mubr.bf16.vlgmr.msra.gmra.mrb[96].mxu0 %v3936_v51  ;;  %v3973_v50 = vld [vmem:[%s4106_s13 + $0x1f8] ss:$40 sps:$4 sm:$0xff]  }
  0xe7   : > { %2345 = vmatprep.mubr.bf16.mxu1 %v3939_v52  ;;  %2506 = vmatprep.mubr.bf16.mxu0 %v3941_v53  ;;  %v3974_v51 = vld [vmem:[%s4106_s13 + $0x200] ss:$40 sps:$4 sm:$0xff]  }
  0xee   : > { %2346 = vmatmul.mubr.bf16.gmra.mrb[100].mxu1 %v3943_v54  ;;  %2507 = vmatmul.mubr.bf16.gmra.mrb[100].mxu0 %v3944_v55 }
  0xef   : > { %2353 = vmatprep.mubr.bf16.mxu1 %v3945_v56  ;;  %2514 = vmatprep.mubr.bf16.mxu0 %v3947_v57  ;;  %v3975_v56 = vld [vmem:[%s4106_s13 + $0x24c] ss:$40 sps:$4 sm:$0xff]  }
  0xf0   : > { %v3977_v57 = vld [vmem:[%s4106_s13 + $0x254] ss:$40 sps:$4 sm:$0xff]  }
  0xf6   : > { %2354 = vmatmul.mubr.bf16.gmra.mrb[104].mxu1 %v3949_v58  ;;  %2515 = vmatmul.mubr.bf16.gmra.mrb[104].mxu0 %v3950_v59 }
  0xf7   : > { %2361 = vmatprep.mubr.bf16.mxu1 %v3951_v60  ;;  %2522 = vmatprep.mubr.bf16.mxu0 %v3953_v61 }
  0xf9   : > { %v3140_v62 = vpop.f32.mrb[0].mxu0  ;;  %v3188_v63 = vpop.f32.mrb[0].mxu1 }
  0xfa   : > { %v3141_v0 = vpop.f32.mrb[1].mxu0  ;;  %v3189_v1 = vpop.f32.mrb[1].mxu1 }
  0xfb   : > { %v4433_v4 = vadd.f32 %v3141_v0, %v3140_v62  ;;  %v4435_v5 = vadd.f32 %v3189_v1, %v3188_v63  ;;  %v3143_v6 = vpop.f32.mrb[2].mxu0  ;;  %v3191_v7 = vpop.f32.mrb[2].mxu1 }
  0xfc   : > { %v3144_v10 = vpop.f32.mrb[3].mxu0  ;;  %v3192_v11 = vpop.f32.mrb[3].mxu1 }
  0xfd   : > { %v4439_v12 = vadd.f32 %v3144_v10, %v3143_v6  ;;  %v4441_v13 = vadd.f32 %v3192_v11, %v3191_v7  ;;  %v3981_v10 = vld [vmem:[%s4106_s13 + $0x29c] ss:$40 sps:$4 sm:$0xff]  }
  0xfe   : > { %2362 = vmatmul.mubr.bf16.gmra.mrb[108].mxu1 %v3955_v2  ;;  %2523 = vmatmul.mubr.bf16.gmra.mrb[108].mxu0 %v3956_v3  ;;  %v3979_v2 = vld [vmem:[%s4106_s13 + $0x248] ss:$40 sps:$4 sm:$0xff]   ;;  %v3983_v11 = vld [vmem:[%s4106_s13 + $0x2a4] ss:$40 sps:$4 sm:$0xff]  }
  0xff   : > { %2369 = vmatprep.mubr.bf16.mxu1 %v3957_v8  ;;  %2530 = vmatprep.mubr.bf16.mxu0 %v3959_v9  ;;  %v3980_v3 = vld [vmem:[%s4106_s13 + $0x250] ss:$40 sps:$4 sm:$0xff]  }
 0x101   : > { %v3146_v14 = vpop.f32.mrb[4].mxu0  ;;  %v3194_v15 = vpop.f32.mrb[4].mxu1 }
 0x102   : > { %v3147_v16 = vpop.f32.mrb[5].mxu0  ;;  %v3195_v17 = vpop.f32.mrb[5].mxu1 }
 0x103   : > { %v4445_v20 = vadd.f32 %v3147_v16, %v3146_v14  ;;  %v4447_v21 = vadd.f32 %v3195_v17, %v3194_v15  ;;  %v3149_v22 = vpop.f32.mrb[6].mxu0  ;;  %v3197_v23 = vpop.f32.mrb[6].mxu1 }
 0x104   : > { %v3150_v26 = vpop.f32.mrb[7].mxu0  ;;  %v3198_v27 = vpop.f32.mrb[7].mxu1 }
 0x105   : > { %v4451_v28 = vadd.f32 %v3150_v26, %v3149_v22  ;;  %v4453_v29 = vadd.f32 %v3198_v27, %v3197_v23 }
 0x106   : > { %2370 = vmatmul.mubr.bf16.gmra.mrb[112].mxu1 %v3961_v18  ;;  %2531 = vmatmul.mubr.bf16.gmra.mrb[112].mxu0 %v3962_v19 }
 0x107   : > { %2377 = vmatprep.mubr.bf16.mxu1 %v3963_v24  ;;  %2538 = vmatprep.mubr.bf16.mxu0 %v3965_v25  ;;  %v3985_v24 = vld [vmem:[%s4106_s13 + $0x298] ss:$40 sps:$4 sm:$0xff]  }
 0x108   : > { %v3986_v25 = vld [vmem:[%s4106_s13 + $0x2a0] ss:$40 sps:$4 sm:$0xff]  }
 0x109   : > { %v3152_v30 = vpop.f32.mrb[8].mxu0  ;;  %v3200_v31 = vpop.f32.mrb[8].mxu1 }
 0x10a   : > { %v3153_v32 = vpop.f32.mrb[9].mxu0  ;;  %v3201_v33 = vpop.f32.mrb[9].mxu1 }
 0x10b   : > { %v4457_v36 = vadd.f32 %v3153_v32, %v3152_v30  ;;  %v4459_v37 = vadd.f32 %v3201_v33, %v3200_v31  ;;  %v3155_v38 = vpop.f32.mrb[10].mxu0  ;;  %v3203_v39 = vpop.f32.mrb[10].mxu1  ;;  %v3987_v32 = vld [vmem:[%s4106_s13 + $0x2ec] ss:$40 sps:$4 sm:$0xff]  }
 0x10c   : > { %v3156_v42 = vpop.f32.mrb[11].mxu0  ;;  %v3204_v43 = vpop.f32.mrb[11].mxu1  ;;  %v3989_v33 = vld [vmem:[%s4106_s13 + $0x2f4] ss:$40 sps:$4 sm:$0xff]  }
 0x10d   : > { %v4463_v44 = vadd.f32 %v3156_v42, %v3155_v38  ;;  %v4465_v45 = vadd.f32 %v3204_v43, %v3203_v39 }
 0x10e   : > { %2378 = vmatmul.mubr.bf16.gmra.mrb[116].mxu1 %v3967_v34  ;;  %2539 = vmatmul.mubr.bf16.gmra.mrb[116].mxu0 %v3968_v35 }
 0x10f   : > { %2385 = vmatprep.mubr.bf16.mxu1 %v3969_v40  ;;  %2546 = vmatprep.mubr.bf16.mxu0 %v3971_v41 }
 0x111   : > { %v3158_v46 = vpop.f32.mrb[12].mxu0  ;;  %v3206_v47 = vpop.f32.mrb[12].mxu1 }
 0x112   : > { %v3159_v48 = vpop.f32.mrb[13].mxu0  ;;  %v3207_v49 = vpop.f32.mrb[13].mxu1 }
 0x113   : > { %v4469_v52 = vadd.f32 %v3159_v48, %v3158_v46  ;;  %v4471_v53 = vadd.f32 %v3207_v49, %v3206_v47  ;;  %v3161_v54 = vpop.f32.mrb[14].mxu0  ;;  %v3209_v55 = vpop.f32.mrb[14].mxu1  ;;  %v3991_v46 = vld [vmem:[%s4106_s13 + $0x2e8] ss:$40 sps:$4 sm:$0xff]  }
 0x114   : > { %v3162_v58 = vpop.f32.mrb[15].mxu0  ;;  %v3210_v59 = vpop.f32.mrb[15].mxu1  ;;  %v3992_v47 = vld [vmem:[%s4106_s13 + $0x2f0] ss:$40 sps:$4 sm:$0xff]  }
 0x115   : > { %v4475_v60 = vadd.f32 %v3162_v58, %v3161_v54  ;;  %v4477_v61 = vadd.f32 %v3210_v59, %v3209_v55  ;;  %v3993_v54 = vld [vmem:[%s4106_s13 + $0x33c] ss:$40 sps:$4 sm:$0xff]  }
 0x116   : > { %2386 = vmatmul.mubr.bf16.gmra.mrb[120].mxu1 %v3973_v50  ;;  %2547 = vmatmul.mubr.bf16.gmra.mrb[120].mxu0 %v3974_v51  ;;  %v3995_v55 = vld [vmem:[%s4106_s13 + $0x344] ss:$40 sps:$4 sm:$0xff]  }
 0x117   : > { %2393 = vmatprep.mubr.bf16.mxu1 %v3975_v56  ;;  %2554 = vmatprep.mubr.bf16.mxu0 %v3977_v57 }
 0x119   : > { %v3164_v62 = vpop.f32.mrb[16].mxu0  ;;  %v3212_v63 = vpop.f32.mrb[16].mxu1 }
 0x11a   : > { %v3165_v0 = vpop.f32.mrb[17].mxu0  ;;  %v3213_v1 = vpop.f32.mrb[17].mxu1 }
 0x11b   : > { %v4481_v6 = vadd.f32 %v3165_v0, %v3164_v62  ;;  %v4483_v7 = vadd.f32 %v3213_v1, %v3212_v63  ;;  %v3167_v8 = vpop.f32.mrb[18].mxu0  ;;  %v3215_v9 = vpop.f32.mrb[18].mxu1 }
 0x11c   : > { %v3168_v14 = vpop.f32.mrb[19].mxu0  ;;  %v3216_v15 = vpop.f32.mrb[19].mxu1 }
 0x11d   : > { %v4487_v16 = vadd.f32 %v3168_v14, %v3167_v8  ;;  %v4489_v17 = vadd.f32 %v3216_v15, %v3215_v9  ;;  %v3999_v14 = vld [vmem:[%s4106_s13 + $0x38c] ss:$40 sps:$4 sm:$0xff]  }
 0x11e   : > { %2394 = vmatmul.mubr.bf16.gmra.mrb[124].mxu1 %v3979_v2  ;;  %2555 = vmatmul.mubr.bf16.gmra.mrb[124].mxu0 %v3980_v3  ;;  %v3997_v2 = vld [vmem:[%s4106_s13 + $0x338] ss:$40 sps:$4 sm:$0xff]   ;;  %v4001_v15 = vld [vmem:[%s4106_s13 + $0x394] ss:$40 sps:$4 sm:$0xff]  }
 0x11f   : > { %2401 = vmatprep.mubr.bf16.mxu1 %v3981_v10  ;;  %2562 = vmatprep.mubr.bf16.mxu0 %v3983_v11  ;;  %v3998_v3 = vld [vmem:[%s4106_s13 + $0x340] ss:$40 sps:$4 sm:$0xff]  }
 0x121   : > { %v3170_v18 = vpop.f32.mrb[20].mxu0  ;;  %v3218_v19 = vpop.f32.mrb[20].mxu1 }
 0x122   : > { %v3171_v22 = vpop.f32.mrb[21].mxu0  ;;  %v3219_v23 = vpop.f32.mrb[21].mxu1 }
 0x123   : > { %v4493_v26 = vadd.f32 %v3171_v22, %v3170_v18  ;;  %v4495_v27 = vadd.f32 %v3219_v23, %v3218_v19  ;;  %v3173_v30 = vpop.f32.mrb[22].mxu0  ;;  %v3221_v31 = vpop.f32.mrb[22].mxu1 }
 0x124   : > { %v3174_v34 = vpop.f32.mrb[23].mxu0  ;;  %v3222_v35 = vpop.f32.mrb[23].mxu1 }
 0x125   : > { %v4499_v38 = vadd.f32 %v3174_v34, %v3173_v30  ;;  %v4501_v39 = vadd.f32 %v3222_v35, %v3221_v31 }
 0x126   : > { %2402 = vmatmul.mubr.bf16.gmra.mrb[128].mxu1 %v3985_v24  ;;  %2563 = vmatmul.mubr.bf16.gmra.mrb[128].mxu0 %v3986_v25 }
 0x127   : > { %2409 = vmatprep.mubr.bf16.mxu1 %v3987_v32  ;;  %2570 = vmatprep.mubr.bf16.mxu0 %v3989_v33  ;;  %v4003_v32 = vld [vmem:[%s4106_s13 + $0x388] ss:$40 sps:$4 sm:$0xff]  }
 0x128   : > { %v4004_v33 = vld [vmem:[%s4106_s13 + $0x390] ss:$40 sps:$4 sm:$0xff]  }
 0x129   : > { %v3176_v40 = vpop.f32.mrb[24].mxu0  ;;  %v3224_v41 = vpop.f32.mrb[24].mxu1 }
 0x12a   : > { %v3177_v42 = vpop.f32.mrb[25].mxu0  ;;  %v3225_v43 = vpop.f32.mrb[25].mxu1 }
 0x12b   : > { %v4505_v48 = vadd.f32 %v3177_v42, %v3176_v40  ;;  %v4507_v49 = vadd.f32 %v3225_v43, %v3224_v41  ;;  %v3179_v50 = vpop.f32.mrb[26].mxu0  ;;  %v3227_v51 = vpop.f32.mrb[26].mxu1  ;;  %v4005_v42 = vld [vmem:[%s4106_s13 + $0x3dc] ss:$40 sps:$4 sm:$0xff]  }
 0x12c   : > { %v3180_v56 = vpop.f32.mrb[27].mxu0  ;;  %v3228_v57 = vpop.f32.mrb[27].mxu1  ;;  %v4007_v43 = vld [vmem:[%s4106_s13 + $0x3e4] ss:$40 sps:$4 sm:$0xff]  }
 0x12d   : > { %v4511_v58 = vadd.f32 %v3180_v56, %v3179_v50  ;;  %v4513_v59 = vadd.f32 %v3228_v57, %v3227_v51 }
 0x12e   : > { %2410 = vmatmul.mubr.bf16.gmra.mrb[132].mxu1 %v3991_v46  ;;  %2571 = vmatmul.mubr.bf16.gmra.mrb[132].mxu0 %v3992_v47 }
 0x12f   : > { %2417 = vmatprep.mubr.bf16.mxu1 %v3993_v54  ;;  %2578 = vmatprep.mubr.bf16.mxu0 %v3995_v55 }
 0x131   : > { %v3182_v62 = vpop.f32.mrb[28].mxu0  ;;  %v3230_v63 = vpop.f32.mrb[28].mxu1 }
 0x132   : > { %v3183_v0 = vpop.f32.mrb[29].mxu0  ;;  %v3231_v1 = vpop.f32.mrb[29].mxu1 }
 0x133   : > { %v4517_v8 = vadd.f32 %v3183_v0, %v3182_v62  ;;  %v4519_v9 = vadd.f32 %v3231_v1, %v3230_v63  ;;  %v3185_v10 = vpop.f32.mrb[30].mxu0  ;;  %v3233_v11 = vpop.f32.mrb[30].mxu1 }
 0x134   : > { %v3186_v18 = vpop.f32.mrb[31].mxu0  ;;  %v3234_v19 = vpop.f32.mrb[31].mxu1 }
 0x135   : > { %v4523_v22 = vadd.f32 %v3186_v18, %v3185_v10  ;;  %v4525_v23 = vadd.f32 %v3234_v19, %v3233_v11  ;;  %v4013_v18 = vld [vmem:[%s4106_s13 + $0x434] ss:$40 sps:$4 sm:$0xff]  }
 0x136   : > { %2418 = vmatmul.mubr.bf16.gmra.mrb[136].mxu1 %v3997_v2  ;;  %2579 = vmatmul.mubr.bf16.gmra.mrb[136].mxu0 %v3998_v3  ;;  %v4009_v2 = vld [vmem:[%s4106_s13 + $0x3d8] ss:$40 sps:$4 sm:$0xff]  }
 0x137   : > { %2425 = vmatprep.mubr.bf16.mxu1 %v3999_v14  ;;  %2586 = vmatprep.mubr.bf16.mxu0 %v4001_v15  ;;  %v4011_v15 = vld [vmem:[%s4106_s13 + $0x42c] ss:$40 sps:$4 sm:$0xff]  }
 0x139   : > { %v3252_v24 = vpop.f32.mrb[32].mxu1  ;;  %v3364_v25 = vpop.f32.mrb[32].mxu0 }
 0x13a   : > { %v3253_v30 = vpop.f32.mrb[33].mxu1  ;;  %v3365_v31 = vpop.f32.mrb[33].mxu0 }
 0x13b   : > { %v3254_v34 = vadd.f32 %v3253_v30, %v3252_v24  ;;  %v3366_v35 = vadd.f32 %v3365_v31, %v3364_v25  ;;  %v3255_v40 = vpop.f32.mrb[34].mxu1  ;;  %v3367_v41 = vpop.f32.mrb[34].mxu0 }
 0x13c   : > { %v3256_v46 = vpop.f32.mrb[35].mxu1  ;;  %v3368_v47 = vpop.f32.mrb[35].mxu0 }
 0x13d   : > { %v2018_v50 = vadd.f32 %v3254_v34, %v4433_v4  ;;  %v3257_v51 = vadd.f32 %v3256_v46, %v3255_v40  ;;  %v3369_v54 = vadd.f32 %v3368_v47, %v3367_v41  ;;  %v4010_v4 = vld [vmem:[%s4106_s13 + $0x3e0] ss:$40 sps:$4 sm:$0xff]  }
 0x13e   : > { %2426 = vmatmul.mubr.bf16.gmra.mrb[140].mxu1 %v4003_v32  ;;  %2587 = vmatmul.mubr.bf16.gmra.mrb[140].mxu0 %v4004_v33 }
 0x13f   : > { %v4532_v55 = vadd.f32 %v3366_v35, %v2018_v50  ;;  %v2021_v56 = vadd.f32 %v3257_v51, %v4439_v12  ;;  %2433 = vmatprep.mubr.bf16.mxu1 %v4005_v42  ;;  %2594 = vmatprep.mubr.bf16.mxu0 %v4007_v43  ;;  %v4015_v42 = vld [vmem:[%s4106_s13 + $0x428] ss:$40 sps:$4 sm:$0xff]   ;;  %v4017_v51 = vld [vmem:[%s4106_s13 + $0x47c] ss:$40 sps:$4 sm:$0xff]  }
 0x141   : > { %v4535_v57 = vadd.f32 %v3369_v54, %v2021_v56  ;;  %v3258_v62 = vpop.f32.mrb[36].mxu1  ;;  %v3370_v63 = vpop.f32.mrb[36].mxu0  ;;  %v4019_v54 = vld [vmem:[%s4106_s13 + $0x484] ss:$40 sps:$4 sm:$0xff]  }
 0x142   : > { %v3259_v0 = vpop.f32.mrb[37].mxu1  ;;  %v3371_v1 = vpop.f32.mrb[37].mxu0 }
 0x143   : > { %v3260_v3 = vadd.f32 %v3259_v0, %v3258_v62  ;;  %v3372_v10 = vadd.f32 %v3371_v1, %v3370_v63  ;;  %v3261_v11 = vpop.f32.mrb[38].mxu1  ;;  %v3373_v14 = vpop.f32.mrb[38].mxu0 }
 0x144   : > { %v3262_v19 = vpop.f32.mrb[39].mxu1  ;;  %v3374_v24 = vpop.f32.mrb[39].mxu0 }
 0x145   : > { %v2026_v12 = vadd.f32 %v3260_v3, %v4445_v20  ;;  %v3263_v25 = vadd.f32 %v3262_v19, %v3261_v11  ;;  %v3375_v30 = vadd.f32 %v3374_v24, %v3373_v14  ;;  %v4016_v20 = vld [vmem:[%s4106_s13 + $0x430] ss:$40 sps:$4 sm:$0xff]  }
 0x146   : > { %2434 = vmatmul.mubr.bf16.gmra.mrb[144].mxu1 %v4009_v2  ;;  %2595 = vmatmul.mubr.bf16.gmra.mrb[144].mxu0 %v4010_v4 }
 0x147   : > { %v4542_v31 = vadd.f32 %v3372_v10, %v2026_v12  ;;  %v2029_v32 = vadd.f32 %v3263_v25, %v4451_v28  ;;  %2441 = vmatprep.mubr.bf16.mxu1 %v4011_v15  ;;  %2602 = vmatprep.mubr.bf16.mxu0 %v4013_v18  ;;  %v4021_v15 = vld [vmem:[%s4106_s13 + $0x478] ss:$40 sps:$4 sm:$0xff]   ;;  %v4023_v25 = vld [vmem:[%s4106_s13 + $0x4cc] ss:$40 sps:$4 sm:$0xff]  }
 0x149   : > { %v4545_v33 = vadd.f32 %v3375_v30, %v2029_v32  ;;  %v3264_v34 = vpop.f32.mrb[40].mxu1  ;;  %v3376_v35 = vpop.f32.mrb[40].mxu0  ;;  %v4025_v30 = vld [vmem:[%s4106_s13 + $0x4d4] ss:$40 sps:$4 sm:$0xff]  }
 0x14a   : > { %v3265_v40 = vpop.f32.mrb[41].mxu1  ;;  %v3377_v41 = vpop.f32.mrb[41].mxu0 }
 0x14b   : > { %v3266_v43 = vadd.f32 %v3265_v40, %v3264_v34  ;;  %v3378_v46 = vadd.f32 %v3377_v41, %v3376_v35  ;;  %v3267_v47 = vpop.f32.mrb[42].mxu1  ;;  %v3379_v50 = vpop.f32.mrb[42].mxu0 }
 0x14c   : > { %v3268_v56 = vpop.f32.mrb[43].mxu1  ;;  %v3380_v62 = vpop.f32.mrb[43].mxu0 }
 0x14d   : > { %v2034_v28 = vadd.f32 %v3266_v43, %v4457_v36  ;;  %v3269_v63 = vadd.f32 %v3268_v56, %v3267_v47  ;;  %v3381_v0 = vadd.f32 %v3380_v62, %v3379_v50  ;;  %v4022_v36 = vld [vmem:[%s4106_s13 + $0x480] ss:$40 sps:$4 sm:$0xff]  }
 0x14e   : > { %2442 = vmatmul.mubr.bf16.gmra.mrb[148].mxu1 %v4015_v42  ;;  %2603 = vmatmul.mubr.bf16.gmra.mrb[148].mxu0 %v4016_v20 }
 0x14f   : > { %v4552_v1 = vadd.f32 %v3378_v46, %v2034_v28  ;;  %v2037_v2 = vadd.f32 %v3269_v63, %v4463_v44  ;;  %2449 = vmatprep.mubr.bf16.mxu1 %v4017_v51  ;;  %2610 = vmatprep.mubr.bf16.mxu0 %v4019_v54  ;;  %v4027_v51 = vld [vmem:[%s4106_s13 + $0x4c8] ss:$40 sps:$4 sm:$0xff]  }
 0x150   : > { %v4028_v54 = vld [vmem:[%s4106_s13 + $0x4d0] ss:$40 sps:$4 sm:$0xff]   ;;  %s2881_s13 = sshll.u32 %s4728_s19, 3 }
 0x151   : > { %v4555_v4 = vadd.f32 %v3381_v0, %v2037_v2  ;;  %v3270_v3 = vpop.f32.mrb[44].mxu1  ;;  %v3382_v10 = vpop.f32.mrb[44].mxu0  ;;  %s4646_s29 = scalar_lea.vmem %s4724_s2, %s2881_s13 }
 0x152   : > { %v3271_v11 = vpop.f32.mrb[45].mxu1  ;;  %v3383_v14 = vpop.f32.mrb[45].mxu0 }
 0x153   : > { %v3272_v18 = vadd.f32 %v3271_v11, %v3270_v3  ;;  %v3384_v19 = vadd.f32 %v3383_v14, %v3382_v10  ;;  %v3273_v24 = vpop.f32.mrb[46].mxu1  ;;  %v3385_v12 = vpop.f32.mrb[46].mxu0 }
 0x154   : > { %v3274_v32 = vpop.f32.mrb[47].mxu1  ;;  %v3386_v34 = vpop.f32.mrb[47].mxu0 }
 0x155   : > { %v2042_v44 = vadd.f32 %v3272_v18, %v4469_v52  ;;  %v3275_v35 = vadd.f32 %v3274_v32, %v3273_v24  ;;  %v3387_v40 = vadd.f32 %v3386_v34, %v3385_v12 }
 0x156   : > { %2450 = vmatmul.mubr.bf16.gmra.mrb[152].mxu1 %v4021_v15  ;;  %2611 = vmatmul.mubr.bf16.gmra.mrb[152].mxu0 %v4022_v36 }
 0x157   : > { %v4562_v41 = vadd.f32 %v3384_v19, %v2042_v44  ;;  %v2045_v42 = vadd.f32 %v3275_v35, %v4475_v60  ;;  %2457 = vmatprep.mubr.bf16.mxu1 %v4023_v25  ;;  %2618 = vmatprep.mubr.bf16.mxu0 %v4025_v30 }
 0x159   : > { %v4565_v20 = vadd.f32 %v3387_v40, %v2045_v42  ;;  %v3276_v43 = vpop.f32.mrb[48].mxu1  ;;  %v3388_v46 = vpop.f32.mrb[48].mxu0 }
 0x15a   : > { %v3277_v47 = vpop.f32.mrb[49].mxu1  ;;  %v3389_v50 = vpop.f32.mrb[49].mxu0 }
 0x15b   : > { %v3278_v56 = vadd.f32 %v3277_v47, %v3276_v43  ;;  %v3390_v52 = vadd.f32 %v3389_v50, %v3388_v46  ;;  %v3279_v62 = vpop.f32.mrb[50].mxu1  ;;  %v3391_v28 = vpop.f32.mrb[50].mxu0 }
 0x15c   : > { %v3280_v63 = vpop.f32.mrb[51].mxu1  ;;  %v3392_v0 = vpop.f32.mrb[51].mxu0 }
 0x15d   : > { %v2050_v2 = vadd.f32 %v3278_v56, %v4481_v6  ;;  %v3281_v3 = vadd.f32 %v3280_v63, %v3279_v62  ;;  %v3393_v60 = vadd.f32 %v3392_v0, %v3391_v28 }
 0x15e   : > { %2458 = vmatmul.mubr.bf16.gmra.mrb[156].mxu1 %v4027_v51  ;;  %2619 = vmatmul.mubr.bf16.gmra.mrb[156].mxu0 %v4028_v54 }
 0x15f   : > { %v4570_v10 = vadd.f32 %v3390_v52, %v2050_v2  ;;  %v2053_v11 = vadd.f32 %v3281_v3, %v4487_v16 }
 0x161   : > { %v4573_v14 = vadd.f32 %v3393_v60, %v2053_v11  ;;  %v3282_v15 = vpop.f32.mrb[52].mxu1  ;;  %v3394_v36 = vpop.f32.mrb[52].mxu0 }
 0x162   : > { %v3283_v18 = vpop.f32.mrb[53].mxu1  ;;  %v3395_v19 = vpop.f32.mrb[53].mxu0 }
 0x163   : > { %v3284_v24 = vadd.f32 %v3283_v18, %v3282_v15  ;;  %v3396_v12 = vadd.f32 %v3395_v19, %v3394_v36  ;;  %v3285_v25 = vpop.f32.mrb[54].mxu1  ;;  %v3397_v30 = vpop.f32.mrb[54].mxu0 }
 0x164   : > { %v3286_v32 = vpop.f32.mrb[55].mxu1  ;;  %v3398_v6 = vpop.f32.mrb[55].mxu0 }
 0x165   : > { %v2058_v34 = vadd.f32 %v3284_v24, %v4493_v26  ;;  %v3287_v44 = vadd.f32 %v3286_v32, %v3285_v25  ;;  %v3399_v35 = vadd.f32 %v3398_v6, %v3397_v30 }
 0x167   : > { %v4576_v40 = vadd.f32 %v3396_v12, %v2058_v34  ;;  %v2061_v16 = vadd.f32 %v3287_v44, %v4499_v38 }
 0x169   : > { %v4579_v42 = vadd.f32 %v3399_v35, %v2061_v16  ;;  %v3288_v43 = vpop.f32.mrb[56].mxu1  ;;  %v3400_v46 = vpop.f32.mrb[56].mxu0 }
 0x16a   : > { %v3289_v47 = vpop.f32.mrb[57].mxu1  ;;  %v3401_v50 = vpop.f32.mrb[57].mxu0 }
 0x16b   : > { %v3290_v51 = vadd.f32 %v3289_v47, %v3288_v43  ;;  %v3402_v54 = vadd.f32 %v3401_v50, %v3400_v46  ;;  %v3291_v56 = vpop.f32.mrb[58].mxu1  ;;  %v3403_v52 = vpop.f32.mrb[58].mxu0 }
 0x16c   : > { %v3292_v62 = vpop.f32.mrb[59].mxu1  ;;  %v3404_v28 = vpop.f32.mrb[59].mxu0 }
 0x16d   : > { %v2066_v26 = vadd.f32 %v3290_v51, %v4505_v48  ;;  %v3293_v63 = vadd.f32 %v3292_v62, %v3291_v56  ;;  %v3405_v0 = vadd.f32 %v3404_v28, %v3403_v52 }
 0x16f   : > { %v4582_v2 = vadd.f32 %v3402_v54, %v2066_v26  ;;  %v2069_v38 = vadd.f32 %v3293_v63, %v4511_v58 }
 0x171   : > { %v4585_v3 = vadd.f32 %v3405_v0, %v2069_v38  ;;  %v3294_v60 = vpop.f32.mrb[60].mxu1  ;;  %v3406_v11 = vpop.f32.mrb[60].mxu0 }
 0x172   : > { %v3295_v15 = vpop.f32.mrb[61].mxu1  ;;  %v3407_v36 = vpop.f32.mrb[61].mxu0 }
 0x173   : > { %v3296_v18 = vadd.f32 %v3295_v15, %v3294_v60  ;;  %v3408_v19 = vadd.f32 %v3407_v36, %v3406_v11  ;;  %v3297_v24 = vpop.f32.mrb[62].mxu1  ;;  %v3409_v12 = vpop.f32.mrb[62].mxu0 }
 0x174   : > { %v3298_v25 = vpop.f32.mrb[63].mxu1  ;;  %v3410_v30 = vpop.f32.mrb[63].mxu0 }
 0x175   : > { %v2074_v48 = vadd.f32 %v3296_v18, %v4517_v8  ;;  %v3299_v32 = vadd.f32 %v3298_v25, %v3297_v24  ;;  %v3411_v6 = vadd.f32 %v3410_v30, %v3409_v12 }
 0x177   : > { %v4588_v34 = vadd.f32 %v3408_v19, %v2074_v48  ;;  %v2077_v58 = vadd.f32 %v3299_v32, %v4523_v22 }
 0x179   : > { %v4591_v44 = vadd.f32 %v3411_v6, %v2077_v58  ;;  %v3300_v35 = vpop.f32.mrb[64].mxu1  ;;  %v3412_v16 = vpop.f32.mrb[64].mxu0 }
 0x17a   : > { %v3301_v43 = vpop.f32.mrb[65].mxu1  ;;  %v3413_v46 = vpop.f32.mrb[65].mxu0 }
 0x17b   : > { %v3302_v47 = vadd.f32 %v3301_v43, %v3300_v35  ;;  %v3414_v50 = vadd.f32 %v3413_v46, %v3412_v16  ;;  %v3303_v51 = vpop.f32.mrb[66].mxu1  ;;  %v3415_v54 = vpop.f32.mrb[66].mxu0 }
 0x17c   : > { %v3304_v56 = vpop.f32.mrb[67].mxu1  ;;  %v3416_v52 = vpop.f32.mrb[67].mxu0 }
 0x17d   : > { %v2082_v8 = vadd.f32 %v3302_v47, %v4435_v5  ;;  %v3305_v62 = vadd.f32 %v3304_v56, %v3303_v51  ;;  %v3417_v28 = vadd.f32 %v3416_v52, %v3415_v54 }
 0x17f   : > { %v4594_v26 = vadd.f32 %v3414_v50, %v2082_v8  ;;  %v2085_v22 = vadd.f32 %v3305_v62, %v4441_v13 }
 0x181   : > { %v4597_v63 = vadd.f32 %v3417_v28, %v2085_v22  ;;  %v3306_v0 = vpop.f32.mrb[68].mxu1  ;;  %v3418_v38 = vpop.f32.mrb[68].mxu0 }
 0x182   : > { %v3307_v60 = vpop.f32.mrb[69].mxu1  ;;  %v3419_v11 = vpop.f32.mrb[69].mxu0 }
 0x183   : > { %v3308_v15 = vadd.f32 %v3307_v60, %v3306_v0  ;;  %v3420_v36 = vadd.f32 %v3419_v11, %v3418_v38  ;;  %v3309_v18 = vpop.f32.mrb[70].mxu1  ;;  %v3421_v19 = vpop.f32.mrb[70].mxu0 }
 0x184   : > { %v3310_v24 = vpop.f32.mrb[71].mxu1  ;;  %v3422_v12 = vpop.f32.mrb[71].mxu0 }
 0x185   : > { %v2090_v5 = vadd.f32 %v3308_v15, %v4447_v21  ;;  %v3311_v25 = vadd.f32 %v3310_v24, %v3309_v18  ;;  %v3423_v30 = vadd.f32 %v3422_v12, %v3421_v19 }
 0x187   : > { %v4600_v48 = vadd.f32 %v3420_v36, %v2090_v5  ;;  %v2093_v13 = vadd.f32 %v3311_v25, %v4453_v29 }
 0x189   : > { %v4603_v32 = vadd.f32 %v3423_v30, %v2093_v13  ;;  %v3312_v6 = vpop.f32.mrb[72].mxu1  ;;  %v3424_v58 = vpop.f32.mrb[72].mxu0 }
 0x18a   : > { %v3313_v35 = vpop.f32.mrb[73].mxu1  ;;  %v3425_v16 = vpop.f32.mrb[73].mxu0 }
 0x18b   : > { %v3314_v43 = vadd.f32 %v3313_v35, %v3312_v6  ;;  %v3426_v46 = vadd.f32 %v3425_v16, %v3424_v58  ;;  %v3315_v47 = vpop.f32.mrb[74].mxu1  ;;  %v3427_v50 = vpop.f32.mrb[74].mxu0 }
 0x18c   : > { %v3316_v51 = vpop.f32.mrb[75].mxu1  ;;  %v3428_v54 = vpop.f32.mrb[75].mxu0 }
 0x18d   : > { %v2098_v21 = vadd.f32 %v3314_v43, %v4459_v37  ;;  %v3317_v56 = vadd.f32 %v3316_v51, %v3315_v47  ;;  %v3429_v52 = vadd.f32 %v3428_v54, %v3427_v50 }
 0x18f   : > { %v4606_v8 = vadd.f32 %v3426_v46, %v2098_v21  ;;  %v2101_v29 = vadd.f32 %v3317_v56, %v4465_v45 }
 0x191   : > { %v4609_v62 = vadd.f32 %v3429_v52, %v2101_v29  ;;  %v3318_v28 = vpop.f32.mrb[76].mxu1  ;;  %v3430_v22 = vpop.f32.mrb[76].mxu0 }
 0x192   : > { %v3319_v0 = vpop.f32.mrb[77].mxu1  ;;  %v3431_v38 = vpop.f32.mrb[77].mxu0 }
 0x193   : > { %v3320_v60 = vadd.f32 %v3319_v0, %v3318_v28  ;;  %v3432_v11 = vadd.f32 %v3431_v38, %v3430_v22  ;;  %v3321_v15 = vpop.f32.mrb[78].mxu1  ;;  %v3433_v36 = vpop.f32.mrb[78].mxu0 }
 0x194   : > { %v3322_v18 = vpop.f32.mrb[79].mxu1  ;;  %v3434_v19 = vpop.f32.mrb[79].mxu0 }
 0x195   : > { %v2106_v37 = vadd.f32 %v3320_v60, %v4471_v53  ;;  %v3323_v24 = vadd.f32 %v3322_v18, %v3321_v15  ;;  %v3435_v12 = vadd.f32 %v3434_v19, %v3433_v36 }
 0x197   : > { %v4612_v5 = vadd.f32 %v3432_v11, %v2106_v37  ;;  %v2109_v45 = vadd.f32 %v3323_v24, %v4477_v61 }
 0x199   : > { %v4615_v25 = vadd.f32 %v3435_v12, %v2109_v45  ;;  %v3324_v30 = vpop.f32.mrb[80].mxu1  ;;  %v3436_v13 = vpop.f32.mrb[80].mxu0 }
 0x19a   : > { %v3325_v6 = vpop.f32.mrb[81].mxu1  ;;  %v3437_v58 = vpop.f32.mrb[81].mxu0 }
 0x19b   : > { %v3326_v35 = vadd.f32 %v3325_v6, %v3324_v30  ;;  %v3438_v16 = vadd.f32 %v3437_v58, %v3436_v13  ;;  %v3327_v43 = vpop.f32.mrb[82].mxu1  ;;  %v3439_v46 = vpop.f32.mrb[82].mxu0 }
 0x19c   : > { %v3328_v47 = vpop.f32.mrb[83].mxu1  ;;  %v3440_v50 = vpop.f32.mrb[83].mxu0 }
 0x19d   : > { %v2114_v53 = vadd.f32 %v3326_v35, %v4483_v7  ;;  %v3329_v51 = vadd.f32 %v3328_v47, %v3327_v43  ;;  %v3441_v54 = vadd.f32 %v3440_v50, %v3439_v46 }
 0x19f   : > { %v4618_v21 = vadd.f32 %v3438_v16, %v2114_v53  ;;  %v2117_v61 = vadd.f32 %v3329_v51, %v4489_v17 }
 0x1a1   : > { %v4621_v56 = vadd.f32 %v3441_v54, %v2117_v61  ;;  %v3330_v52 = vpop.f32.mrb[84].mxu1  ;;  %v3442_v29 = vpop.f32.mrb[84].mxu0 }
 0x1a2   : > { %v3331_v28 = vpop.f32.mrb[85].mxu1  ;;  %v3443_v22 = vpop.f32.mrb[85].mxu0 }
 0x1a3   : > { %v3332_v0 = vadd.f32 %v3331_v28, %v3330_v52  ;;  %v3444_v38 = vadd.f32 %v3443_v22, %v3442_v29  ;;  %v3333_v60 = vpop.f32.mrb[86].mxu1  ;;  %v3445_v11 = vpop.f32.mrb[86].mxu0 }
 0x1a4   : > { %v3334_v15 = vpop.f32.mrb[87].mxu1  ;;  %v3446_v36 = vpop.f32.mrb[87].mxu0 }
 0x1a5   : > { %v2122_v7 = vadd.f32 %v3332_v0, %v4495_v27  ;;  %v3335_v18 = vadd.f32 %v3334_v15, %v3333_v60  ;;  %v3447_v19 = vadd.f32 %v3446_v36, %v3445_v11 }
 0x1a7   : > { %v4624_v37 = vadd.f32 %v3444_v38, %v2122_v7  ;;  %v2125_v17 = vadd.f32 %v3335_v18, %v4501_v39 }
 0x1a9   : > { %v4627_v24 = vadd.f32 %v3447_v19, %v2125_v17  ;;  %v3336_v12 = vpop.f32.mrb[88].mxu1  ;;  %v3448_v45 = vpop.f32.mrb[88].mxu0 }
 0x1aa   : > { %v3337_v30 = vpop.f32.mrb[89].mxu1  ;;  %v3449_v13 = vpop.f32.mrb[89].mxu0 }
 0x1ab   : > { %v3338_v6 = vadd.f32 %v3337_v30, %v3336_v12  ;;  %v3450_v58 = vadd.f32 %v3449_v13, %v3448_v45  ;;  %v3339_v35 = vpop.f32.mrb[90].mxu1  ;;  %v3451_v16 = vpop.f32.mrb[90].mxu0 }
 0x1ac   : > { %v3340_v43 = vpop.f32.mrb[91].mxu1  ;;  %v3452_v46 = vpop.f32.mrb[91].mxu0 }
 0x1ad   : > { %v2130_v27 = vadd.f32 %v3338_v6, %v4507_v49  ;;  %v3341_v47 = vadd.f32 %v3340_v43, %v3339_v35  ;;  %v3453_v50 = vadd.f32 %v3452_v46, %v3451_v16 }
 0x1af   : > { %v4630_v53 = vadd.f32 %v3450_v58, %v2130_v27  ;;  %v2133_v39 = vadd.f32 %v3341_v47, %v4513_v59 }
 0x1b1   : > { %v4633_v51 = vadd.f32 %v3453_v50, %v2133_v39  ;;  %v3342_v54 = vpop.f32.mrb[92].mxu1  ;;  %v3454_v61 = vpop.f32.mrb[92].mxu0 }
 0x1b2   : > { %v3343_v52 = vpop.f32.mrb[93].mxu1  ;;  %v3455_v29 = vpop.f32.mrb[93].mxu0 }
 0x1b3   : > { %v3344_v28 = vadd.f32 %v3343_v52, %v3342_v54  ;;  %v3456_v22 = vadd.f32 %v3455_v29, %v3454_v61  ;;  %v3345_v0 = vpop.f32.mrb[94].mxu1  ;;  %v3457_v38 = vpop.f32.mrb[94].mxu0 }
 0x1b4   : > { %v3346_v60 = vpop.f32.mrb[95].mxu1  ;;  %v3458_v11 = vpop.f32.mrb[95].mxu0 }
 0x1b5   : > { %v2138_v49 = vadd.f32 %v3344_v28, %v4519_v9  ;;  %v3347_v15 = vadd.f32 %v3346_v60, %v3345_v0  ;;  %v3459_v36 = vadd.f32 %v3458_v11, %v3457_v38 }
 0x1b7   : > { %v4636_v7 = vadd.f32 %v3456_v22, %v2138_v49  ;;  %v2141_v59 = vadd.f32 %v3347_v15, %v4525_v23 }
 0x1b9   : > { %v4639_v18 = vadd.f32 %v3459_v36, %v2141_v59  ;;  %v3476_v19 = vpop.f32.mrb[96].mxu1  ;;  %v3588_v17 = vpop.f32.mrb[96].mxu0 }
 0x1ba   : > { %v3477_v12 = vpop.f32.mrb[97].mxu1  ;;  %v3589_v45 = vpop.f32.mrb[97].mxu0 }
 0x1bb   : > { %v3478_v30 = vadd.f32 %v3477_v12, %v3476_v19  ;;  %v3590_v13 = vadd.f32 %v3589_v45, %v3588_v17  ;;  %v3479_v6 = vpop.f32.mrb[98].mxu1  ;;  %v3591_v58 = vpop.f32.mrb[98].mxu0 }
 0x1bc   : > { %v3480_v35 = vpop.f32.mrb[99].mxu1  ;;  %v3592_v16 = vpop.f32.mrb[99].mxu0 }
 0x1bd   : > { %v2340_v9 = vadd.f32 %v3478_v30, %v4532_v55  ;;  %v3481_v43 = vadd.f32 %v3480_v35, %v3479_v6  ;;  %v3593_v46 = vadd.f32 %v3592_v16, %v3591_v58 }
 0x1bf   : > { %v2501_v23 = vadd.f32 %v3590_v13, %v2340_v9  ;;  %v2343_v27 = vadd.f32 %v3481_v43, %v4535_v57 }
 0x1c1   : > { %2627 = vst [vmem:[%s4646_s29] sm:$0xff] %v2501_v23  ;;  %v2504_v47 = vadd.f32 %v3593_v46, %v2343_v27  ;;  %v3482_v50 = vpop.f32.mrb[100].mxu1  ;;  %v3594_v39 = vpop.f32.mrb[100].mxu0  ;;  %v2697_v54 = vmul.f32 %v2501_v23, %v2501_v23 }
 0x1c2   : > { %v3483_v61 = vpop.f32.mrb[101].mxu1  ;;  %v3595_v52 = vpop.f32.mrb[101].mxu0 }
 0x1c3   : > { %2628 = vst [vmem:[%s4646_s29 + $0x8] sm:$0xff] %v2504_v47  ;;  %v2659_v55 = vadd.f32 %v2504_v47, %v2501_v23  ;;  %v2698_v29 = vmul.f32 %v2504_v47, %v2504_v47  ;;  %v3484_v28 = vadd.f32 %v3483_v61, %v3482_v50  ;;  %v3596_v22 = vadd.f32 %v3595_v52, %v3594_v39  ;;  %v3485_v0 = vpop.f32.mrb[102].mxu1  ;;  %v3597_v38 = vpop.f32.mrb[102].mxu0 }
 0x1c4   : > { %v3486_v60 = vpop.f32.mrb[103].mxu1  ;;  %v3598_v11 = vpop.f32.mrb[103].mxu0 }
 0x1c5   : > { %v2729_v49 = vadd.f32 %v2698_v29, %v2697_v54  ;;  %v2348_v57 = vadd.f32 %v3484_v28, %v4542_v31  ;;  %v3487_v15 = vadd.f32 %v3486_v60, %v3485_v0  ;;  %v3599_v36 = vadd.f32 %v3598_v11, %v3597_v38 }
 0x1c7   : > { %v2509_v59 = vadd.f32 %v3596_v22, %v2348_v57  ;;  %v2351_v19 = vadd.f32 %v3487_v15, %v4545_v33 }
 0x1c9   : > { %2629 = vst [vmem:[%s4646_s29 + $0x10] sm:$0xff] %v2509_v59  ;;  %v2660_v17 = vadd.f32 %v2659_v55, %v2509_v59  ;;  %v2699_v12 = vmul.f32 %v2509_v59, %v2509_v59  ;;  %v2512_v45 = vadd.f32 %v3599_v36, %v2351_v19  ;;  %v3488_v30 = vpop.f32.mrb[104].mxu1  ;;  %v3600_v13 = vpop.f32.mrb[104].mxu0 }
 0x1ca   : > { %v3489_v6 = vpop.f32.mrb[105].mxu1  ;;  %v3601_v58 = vpop.f32.mrb[105].mxu0 }
 0x1cb   : > { %v2730_v35 = vadd.f32 %v2729_v49, %v2699_v12  ;;  %2630 = vst [vmem:[%s4646_s29 + $0x18] sm:$0xff] %v2512_v45  ;;  %v2661_v16 = vadd.f32 %v2660_v17, %v2512_v45  ;;  %v2700_v9 = vmul.f32 %v2512_v45, %v2512_v45  ;;  %v3490_v43 = vadd.f32 %v3489_v6, %v3488_v30  ;;  %v3491_v31 = vpop.f32.mrb[106].mxu1  ;;  %v3603_v46 = vpop.f32.mrb[106].mxu0 }
 0x1cc   : > { %v3602_v23 = vadd.f32 %v3601_v58, %v3600_v13  ;;  %v3492_v27 = vpop.f32.mrb[107].mxu1  ;;  %v3604_v47 = vpop.f32.mrb[107].mxu0 }
 0x1cd   : > { %v2731_v33 = vadd.f32 %v2730_v35, %v2700_v9  ;;  %v2356_v50 = vadd.f32 %v3490_v43, %v4552_v1  ;;  %v3493_v39 = vadd.f32 %v3492_v27, %v3491_v31  ;;  %v3605_v54 = vadd.f32 %v3604_v47, %v3603_v46 }
 0x1cf   : > { %v2517_v61 = vadd.f32 %v3602_v23, %v2356_v50  ;;  %v2359_v52 = vadd.f32 %v3493_v39, %v4555_v4 }
 0x1d1   : > { %2631 = vst [vmem:[%s4646_s29 + $0x20] sm:$0xff] %v2517_v61  ;;  %v2662_v55 = vadd.f32 %v2661_v16, %v2517_v61  ;;  %v2701_v29 = vmul.f32 %v2517_v61, %v2517_v61  ;;  %v2520_v28 = vadd.f32 %v3605_v54, %v2359_v52  ;;  %v3494_v22 = vpop.f32.mrb[108].mxu1  ;;  %v3606_v0 = vpop.f32.mrb[108].mxu0 }
 0x1d2   : > { %v3495_v38 = vpop.f32.mrb[109].mxu1  ;;  %v3607_v60 = vpop.f32.mrb[109].mxu0 }
 0x1d3   : > { %v2732_v11 = vadd.f32 %v2731_v33, %v2701_v29  ;;  %2632 = vst [vmem:[%s4646_s29 + $0x28] sm:$0xff] %v2520_v28  ;;  %v2663_v49 = vadd.f32 %v2662_v55, %v2520_v28  ;;  %v2702_v57 = vmul.f32 %v2520_v28, %v2520_v28  ;;  %v3496_v15 = vadd.f32 %v3495_v38, %v3494_v22  ;;  %v3497_v1 = vpop.f32.mrb[110].mxu1  ;;  %v3609_v36 = vpop.f32.mrb[110].mxu0 }
 0x1d4   : > { %v3608_v59 = vadd.f32 %v3607_v60, %v3606_v0  ;;  %v3498_v19 = vpop.f32.mrb[111].mxu1  ;;  %v3610_v17 = vpop.f32.mrb[111].mxu0 }
 0x1d5   : > { %v2733_v4 = vadd.f32 %v2732_v11, %v2702_v57  ;;  %v2364_v12 = vadd.f32 %v3496_v15, %v4562_v41  ;;  %v3499_v45 = vadd.f32 %v3498_v19, %v3497_v1  ;;  %v3611_v30 = vadd.f32 %v3610_v17, %v3609_v36 }
 0x1d7   : > { %v2525_v13 = vadd.f32 %v3608_v59, %v2364_v12  ;;  %v2367_v6 = vadd.f32 %v3499_v45, %v4565_v20 }
 0x1d9   : > { %2633 = vst [vmem:[%s4646_s29 + $0x30] sm:$0xff] %v2525_v13  ;;  %v2664_v58 = vadd.f32 %v2663_v49, %v2525_v13  ;;  %v2703_v35 = vmul.f32 %v2525_v13, %v2525_v13  ;;  %v2528_v16 = vadd.f32 %v3611_v30, %v2367_v6  ;;  %v3500_v9 = vpop.f32.mrb[112].mxu1  ;;  %v3612_v43 = vpop.f32.mrb[112].mxu0 }
 0x1da   : > { %v3501_v31 = vpop.f32.mrb[113].mxu1  ;;  %v3613_v46 = vpop.f32.mrb[113].mxu0 }
 0x1db   : > { %v2734_v23 = vadd.f32 %v2733_v4, %v2703_v35  ;;  %2634 = vst [vmem:[%s4646_s29 + $0x38] sm:$0xff] %v2528_v16  ;;  %v2665_v27 = vadd.f32 %v2664_v58, %v2528_v16  ;;  %v2704_v47 = vmul.f32 %v2528_v16, %v2528_v16  ;;  %v3502_v33 = vadd.f32 %v3501_v31, %v3500_v9  ;;  %v3503_v41 = vpop.f32.mrb[114].mxu1  ;;  %v3615_v50 = vpop.f32.mrb[114].mxu0 }
 0x1dc   : > { %v3614_v39 = vadd.f32 %v3613_v46, %v3612_v43  ;;  %v3504_v54 = vpop.f32.mrb[115].mxu1  ;;  %v3616_v61 = vpop.f32.mrb[115].mxu0 }
 0x1dd   : > { %v2735_v20 = vadd.f32 %v2734_v23, %v2704_v47  ;;  %v2372_v52 = vadd.f32 %v3502_v33, %v4570_v10  ;;  %v3505_v55 = vadd.f32 %v3504_v54, %v3503_v41  ;;  %v3617_v29 = vadd.f32 %v3616_v61, %v3615_v50 }
 0x1df   : > { %v2533_v28 = vadd.f32 %v3614_v39, %v2372_v52  ;;  %v2375_v22 = vadd.f32 %v3505_v55, %v4573_v14 }
 0x1e1   : > { %2635 = vst [vmem:[%s4646_s29 + $0x40] sm:$0xff] %v2533_v28  ;;  %v2666_v0 = vadd.f32 %v2665_v27, %v2533_v28  ;;  %v2705_v38 = vmul.f32 %v2533_v28, %v2533_v28  ;;  %v2536_v60 = vadd.f32 %v3617_v29, %v2375_v22  ;;  %v3506_v11 = vpop.f32.mrb[116].mxu1  ;;  %v3618_v49 = vpop.f32.mrb[116].mxu0 }
 0x1e2   : > { %v3507_v57 = vpop.f32.mrb[117].mxu1  ;;  %v3619_v15 = vpop.f32.mrb[117].mxu0 }
 0x1e3   : > { %v2736_v1 = vadd.f32 %v2735_v20, %v2705_v38  ;;  %2636 = vst [vmem:[%s4646_s29 + $0x48] sm:$0xff] %v2536_v60  ;;  %v2667_v36 = vadd.f32 %v2666_v0, %v2536_v60  ;;  %v2706_v59 = vmul.f32 %v2536_v60, %v2536_v60  ;;  %v3508_v19 = vadd.f32 %v3507_v57, %v3506_v11  ;;  %v3509_v10 = vpop.f32.mrb[118].mxu1  ;;  %v3621_v17 = vpop.f32.mrb[118].mxu0 }
 0x1e4   : > { %v3620_v4 = vadd.f32 %v3619_v15, %v3618_v49  ;;  %v3510_v12 = vpop.f32.mrb[119].mxu1  ;;  %v3622_v45 = vpop.f32.mrb[119].mxu0 }
 0x1e5   : > { %v2737_v14 = vadd.f32 %v2736_v1, %v2706_v59  ;;  %v2380_v30 = vadd.f32 %v3508_v19, %v4576_v40  ;;  %v3511_v13 = vadd.f32 %v3510_v12, %v3509_v10  ;;  %v3623_v6 = vadd.f32 %v3622_v45, %v3621_v17 }
 0x1e7   : > { %v2541_v58 = vadd.f32 %v3620_v4, %v2380_v30  ;;  %v2383_v35 = vadd.f32 %v3511_v13, %v4579_v42 }
 0x1e9   : > { %2637 = vst [vmem:[%s4646_s29 + $0x50] sm:$0xff] %v2541_v58  ;;  %v2668_v16 = vadd.f32 %v2667_v36, %v2541_v58  ;;  %v2707_v9 = vmul.f32 %v2541_v58, %v2541_v58  ;;  %v2544_v43 = vadd.f32 %v3623_v6, %v2383_v35  ;;  %v3512_v31 = vpop.f32.mrb[120].mxu1  ;;  %v3624_v46 = vpop.f32.mrb[120].mxu0 }
 0x1ea   : > { %v3513_v23 = vpop.f32.mrb[121].mxu1  ;;  %v3625_v27 = vpop.f32.mrb[121].mxu0 }
 0x1eb   : > { %v2738_v47 = vadd.f32 %v2737_v14, %v2707_v9  ;;  %2638 = vst [vmem:[%s4646_s29 + $0x58] sm:$0xff] %v2544_v43  ;;  %v2669_v33 = vadd.f32 %v2668_v16, %v2544_v43  ;;  %v2708_v41 = vmul.f32 %v2544_v43, %v2544_v43  ;;  %v3514_v50 = vadd.f32 %v3513_v23, %v3512_v31  ;;  %v3515_v40 = vpop.f32.mrb[122].mxu1  ;;  %v3627_v39 = vpop.f32.mrb[122].mxu0 }
 0x1ec   : > { %v3626_v54 = vadd.f32 %v3625_v27, %v3624_v46  ;;  %v3516_v61 = vpop.f32.mrb[123].mxu1  ;;  %v3628_v20 = vpop.f32.mrb[123].mxu0 }
 0x1ed   : > { %v2739_v42 = vadd.f32 %v2738_v47, %v2708_v41  ;;  %v2388_v52 = vadd.f32 %v3514_v50, %v4582_v2  ;;  %v3517_v55 = vadd.f32 %v3516_v61, %v3515_v40  ;;  %v3629_v29 = vadd.f32 %v3628_v20, %v3627_v39 }
 0x1ef   : > { %v2549_v28 = vadd.f32 %v3626_v54, %v2388_v52  ;;  %v2391_v22 = vadd.f32 %v3517_v55, %v4585_v3 }
 0x1f1   : > { %2639 = vst [vmem:[%s4646_s29 + $0x60] sm:$0xff] %v2549_v28  ;;  %v2670_v0 = vadd.f32 %v2669_v33, %v2549_v28  ;;  %v2709_v38 = vmul.f32 %v2549_v28, %v2549_v28  ;;  %v2552_v60 = vadd.f32 %v3629_v29, %v2391_v22  ;;  %v3518_v11 = vpop.f32.mrb[124].mxu1  ;;  %v3630_v49 = vpop.f32.mrb[124].mxu0 }
 0x1f2   : > { %v3519_v57 = vpop.f32.mrb[125].mxu1  ;;  %v3631_v15 = vpop.f32.mrb[125].mxu0 }
 0x1f3   : > { %v2740_v1 = vadd.f32 %v2739_v42, %v2709_v38  ;;  %2640 = vst [vmem:[%s4646_s29 + $0x68] sm:$0xff] %v2552_v60  ;;  %v2671_v36 = vadd.f32 %v2670_v0, %v2552_v60  ;;  %v2710_v59 = vmul.f32 %v2552_v60, %v2552_v60  ;;  %v3520_v19 = vadd.f32 %v3519_v57, %v3518_v11  ;;  %v3521_v2 = vpop.f32.mrb[126].mxu1  ;;  %v3633_v10 = vpop.f32.mrb[126].mxu0 }
 0x1f4   : > { %v3632_v17 = vadd.f32 %v3631_v15, %v3630_v49  ;;  %v3522_v4 = vpop.f32.mrb[127].mxu1  ;;  %v3634_v12 = vpop.f32.mrb[127].mxu0 }
 0x1f5   : > { %v2741_v3 = vadd.f32 %v2740_v1, %v2710_v59  ;;  %v2396_v45 = vadd.f32 %v3520_v19, %v4588_v34  ;;  %v3523_v14 = vadd.f32 %v3522_v4, %v3521_v2  ;;  %v3635_v30 = vadd.f32 %v3634_v12, %v3633_v10 }
 0x1f7   : > { %v2557_v13 = vadd.f32 %v3632_v17, %v2396_v45  ;;  %v2399_v6 = vadd.f32 %v3523_v14, %v4591_v44 }
 0x1f9   : > { %2641 = vst [vmem:[%s4646_s29 + $0x70] sm:$0xff] %v2557_v13  ;;  %v2672_v58 = vadd.f32 %v2671_v36, %v2557_v13  ;;  %v2711_v35 = vmul.f32 %v2557_v13, %v2557_v13  ;;  %v2560_v16 = vadd.f32 %v3635_v30, %v2399_v6  ;;  %v3524_v9 = vpop.f32.mrb[128].mxu1  ;;  %v3636_v43 = vpop.f32.mrb[128].mxu0 }
 0x1fa   : > { %v3525_v31 = vpop.f32.mrb[129].mxu1  ;;  %v3637_v46 = vpop.f32.mrb[129].mxu0 }
 0x1fb   : > { %v2742_v23 = vadd.f32 %v2741_v3, %v2711_v35  ;;  %2642 = vst [vmem:[%s4646_s29 + $0x78] sm:$0xff] %v2560_v16  ;;  %v2673_v27 = vadd.f32 %v2672_v58, %v2560_v16  ;;  %v2712_v47 = vmul.f32 %v2560_v16, %v2560_v16  ;;  %v3526_v33 = vadd.f32 %v3525_v31, %v3524_v9  ;;  %v3527_v34 = vpop.f32.mrb[130].mxu1  ;;  %v3639_v41 = vpop.f32.mrb[130].mxu0 }
 0x1fc   : > { %v3638_v50 = vadd.f32 %v3637_v46, %v3636_v43  ;;  %v3528_v40 = vpop.f32.mrb[131].mxu1  ;;  %v3640_v39 = vpop.f32.mrb[131].mxu0 }
 0x1fd   : > { %v2743_v44 = vadd.f32 %v2742_v23, %v2712_v47  ;;  %v2404_v54 = vadd.f32 %v3526_v33, %v4594_v26  ;;  %v3529_v61 = vadd.f32 %v3528_v40, %v3527_v34  ;;  %v3641_v20 = vadd.f32 %v3640_v39, %v3639_v41 }
 0x1ff   : > { %v2565_v42 = vadd.f32 %v3638_v50, %v2404_v54  ;;  %v2407_v52 = vadd.f32 %v3529_v61, %v4597_v63 }
 0x201   : > { %2643 = vst [vmem:[%s4646_s29 + $0x80] sm:$0xff] %v2565_v42  ;;  %v2674_v55 = vadd.f32 %v2673_v27, %v2565_v42  ;;  %v2713_v29 = vmul.f32 %v2565_v42, %v2565_v42  ;;  %v2568_v28 = vadd.f32 %v3641_v20, %v2407_v52  ;;  %v3530_v22 = vpop.f32.mrb[132].mxu1  ;;  %v3642_v0 = vpop.f32.mrb[132].mxu0 }
 0x202   : > { %v3531_v38 = vpop.f32.mrb[133].mxu1  ;;  %v3643_v60 = vpop.f32.mrb[133].mxu0 }
 0x203   : > { %v2744_v11 = vadd.f32 %v2743_v44, %v2713_v29  ;;  %2644 = vst [vmem:[%s4646_s29 + $0x88] sm:$0xff] %v2568_v28  ;;  %v2675_v49 = vadd.f32 %v2674_v55, %v2568_v28  ;;  %v2714_v57 = vmul.f32 %v2568_v28, %v2568_v28  ;;  %v3532_v15 = vadd.f32 %v3531_v38, %v3530_v22  ;;  %v3533_v26 = vpop.f32.mrb[134].mxu1  ;;  %v3645_v1 = vpop.f32.mrb[134].mxu0 }
 0x204   : > { %v3644_v36 = vadd.f32 %v3643_v60, %v3642_v0  ;;  %v3534_v59 = vpop.f32.mrb[135].mxu1  ;;  %v3646_v19 = vpop.f32.mrb[135].mxu0 }
 0x205   : > { %v2745_v63 = vadd.f32 %v2744_v11, %v2714_v57  ;;  %v2412_v2 = vadd.f32 %v3532_v15, %v4600_v48  ;;  %v3535_v10 = vadd.f32 %v3534_v59, %v3533_v26  ;;  %v3647_v17 = vadd.f32 %v3646_v19, %v3645_v1 }
 0x207   : > { %v2573_v4 = vadd.f32 %v3644_v36, %v2412_v2  ;;  %v2415_v12 = vadd.f32 %v3535_v10, %v4603_v32 }
 0x209   : > { %2645 = vst [vmem:[%s4646_s29 + $0x90] sm:$0xff] %v2573_v4  ;;  %v2676_v3 = vadd.f32 %v2675_v49, %v2573_v4  ;;  %v2715_v45 = vmul.f32 %v2573_v4, %v2573_v4  ;;  %v2576_v14 = vadd.f32 %v3647_v17, %v2415_v12  ;;  %v3536_v30 = vpop.f32.mrb[136].mxu1  ;;  %v3648_v13 = vpop.f32.mrb[136].mxu0 }
 0x20a   : > { %v3537_v6 = vpop.f32.mrb[137].mxu1  ;;  %v3649_v58 = vpop.f32.mrb[137].mxu0 }
 0x20b   : > { %v2746_v35 = vadd.f32 %v2745_v63, %v2715_v45  ;;  %2646 = vst [vmem:[%s4646_s29 + $0x98] sm:$0xff] %v2576_v14  ;;  %v2677_v16 = vadd.f32 %v2676_v3, %v2576_v14  ;;  %v2716_v9 = vmul.f32 %v2576_v14, %v2576_v14  ;;  %v3538_v43 = vadd.f32 %v3537_v6, %v3536_v30  ;;  %v3539_v48 = vpop.f32.mrb[138].mxu1  ;;  %v3651_v31 = vpop.f32.mrb[138].mxu0 }
 0x20c   : > { %v3650_v46 = vadd.f32 %v3649_v58, %v3648_v13  ;;  %v3540_v23 = vpop.f32.mrb[139].mxu1  ;;  %v3652_v27 = vpop.f32.mrb[139].mxu0 }
 0x20d   : > { %v2747_v32 = vadd.f32 %v2746_v35, %v2716_v9  ;;  %v2420_v47 = vadd.f32 %v3538_v43, %v4606_v8  ;;  %v3541_v33 = vadd.f32 %v3540_v23, %v3539_v48  ;;  %v3653_v34 = vadd.f32 %v3652_v27, %v3651_v31 }
 0x20f   : > { %v2581_v41 = vadd.f32 %v3650_v46, %v2420_v47  ;;  %v2423_v50 = vadd.f32 %v3541_v33, %v4609_v62 }
 0x211   : > { %2647 = vst [vmem:[%s4646_s29 + $0xa0] sm:$0xff] %v2581_v41  ;;  %v2678_v40 = vadd.f32 %v2677_v16, %v2581_v41  ;;  %v2717_v39 = vmul.f32 %v2581_v41, %v2581_v41  ;;  %v2584_v44 = vadd.f32 %v3653_v34, %v2423_v50  ;;  %v3542_v54 = vpop.f32.mrb[140].mxu1  ;;  %v3654_v61 = vpop.f32.mrb[140].mxu0 }
 0x212   : > { %v3543_v20 = vpop.f32.mrb[141].mxu1  ;;  %v3655_v42 = vpop.f32.mrb[141].mxu0 }
 0x213   : > { %v2748_v52 = vadd.f32 %v2747_v32, %v2717_v39  ;;  %2648 = vst [vmem:[%s4646_s29 + $0xa8] sm:$0xff] %v2584_v44  ;;  %v2679_v55 = vadd.f32 %v2678_v40, %v2584_v44  ;;  %v2718_v29 = vmul.f32 %v2584_v44, %v2584_v44  ;;  %v3544_v28 = vadd.f32 %v3543_v20, %v3542_v54  ;;  %v3545_v8 = vpop.f32.mrb[142].mxu1  ;;  %v3657_v22 = vpop.f32.mrb[142].mxu0 }
 0x214   : > { %v3656_v0 = vadd.f32 %v3655_v42, %v3654_v61  ;;  %v3546_v38 = vpop.f32.mrb[143].mxu1  ;;  %v3658_v60 = vpop.f32.mrb[143].mxu0 }
 0x215   : > { %v2749_v62 = vadd.f32 %v2748_v52, %v2718_v29  ;;  %v2428_v11 = vadd.f32 %v3544_v28, %v4612_v5  ;;  %v3547_v49 = vadd.f32 %v3546_v38, %v3545_v8  ;;  %v3659_v57 = vadd.f32 %v3658_v60, %v3657_v22 }
 0x217   : > { %v2589_v15 = vadd.f32 %v3656_v0, %v2428_v11  ;;  %v2431_v26 = vadd.f32 %v3547_v49, %v4615_v25 }
 0x219   : > { %2649 = vst [vmem:[%s4646_s29 + $0xb0] sm:$0xff] %v2589_v15  ;;  %v2680_v1 = vadd.f32 %v2679_v55, %v2589_v15  ;;  %v2719_v36 = vmul.f32 %v2589_v15, %v2589_v15  ;;  %v2592_v59 = vadd.f32 %v3659_v57, %v2431_v26  ;;  %v3548_v19 = vpop.f32.mrb[144].mxu1  ;;  %v3660_v63 = vpop.f32.mrb[144].mxu0 }
 0x21a   : > { %v3549_v2 = vpop.f32.mrb[145].mxu1  ;;  %v3661_v10 = vpop.f32.mrb[145].mxu0 }
 0x21b   : > { %v2750_v17 = vadd.f32 %v2749_v62, %v2719_v36  ;;  %2650 = vst [vmem:[%s4646_s29 + $0xb8] sm:$0xff] %v2592_v59  ;;  %v2681_v4 = vadd.f32 %v2680_v1, %v2592_v59  ;;  %v2720_v12 = vmul.f32 %v2592_v59, %v2592_v59  ;;  %v3550_v3 = vadd.f32 %v3549_v2, %v3548_v19  ;;  %v3551_v5 = vpop.f32.mrb[146].mxu1  ;;  %v3663_v45 = vpop.f32.mrb[146].mxu0 }
 0x21c   : > { %v3662_v14 = vadd.f32 %v3661_v10, %v3660_v63  ;;  %v3552_v30 = vpop.f32.mrb[147].mxu1  ;;  %v3664_v13 = vpop.f32.mrb[147].mxu0 }
 0x21d   : > { %v2751_v25 = vadd.f32 %v2750_v17, %v2720_v12  ;;  %v2436_v6 = vadd.f32 %v3550_v3, %v4618_v21  ;;  %v3553_v58 = vadd.f32 %v3552_v30, %v3551_v5  ;;  %v3665_v35 = vadd.f32 %v3664_v13, %v3663_v45 }
 0x21f   : > { %v2597_v16 = vadd.f32 %v3662_v14, %v2436_v6  ;;  %v2439_v9 = vadd.f32 %v3553_v58, %v4621_v56 }
 0x221   : > { %2651 = vst [vmem:[%s4646_s29 + $0xc0] sm:$0xff] %v2597_v16  ;;  %v2682_v43 = vadd.f32 %v2681_v4, %v2597_v16  ;;  %v2721_v48 = vmul.f32 %v2597_v16, %v2597_v16  ;;  %v2600_v31 = vadd.f32 %v3665_v35, %v2439_v9  ;;  %v3554_v46 = vpop.f32.mrb[148].mxu1  ;;  %v3666_v23 = vpop.f32.mrb[148].mxu0 }
 0x222   : > { %v3555_v27 = vpop.f32.mrb[149].mxu1  ;;  %v3667_v32 = vpop.f32.mrb[149].mxu0 }
 0x223   : > { %v2752_v47 = vadd.f32 %v2751_v25, %v2721_v48  ;;  %2652 = vst [vmem:[%s4646_s29 + $0xc8] sm:$0xff] %v2600_v31  ;;  %v2683_v33 = vadd.f32 %v2682_v43, %v2600_v31  ;;  %v2722_v34 = vmul.f32 %v2600_v31, %v2600_v31  ;;  %v3556_v41 = vadd.f32 %v3555_v27, %v3554_v46  ;;  %v3557_v21 = vpop.f32.mrb[150].mxu1  ;;  %v3669_v50 = vpop.f32.mrb[150].mxu0 }
 0x224   : > { %v3668_v40 = vadd.f32 %v3667_v32, %v3666_v23  ;;  %v3558_v39 = vpop.f32.mrb[151].mxu1  ;;  %v3670_v44 = vpop.f32.mrb[151].mxu0 }
 0x225   : > { %v2753_v56 = vadd.f32 %v2752_v47, %v2722_v34  ;;  %v2444_v54 = vadd.f32 %v3556_v41, %v4624_v37  ;;  %v3559_v61 = vadd.f32 %v3558_v39, %v3557_v21  ;;  %v3671_v20 = vadd.f32 %v3670_v44, %v3669_v50 }
 0x227   : > { %v2605_v42 = vadd.f32 %v3668_v40, %v2444_v54  ;;  %v2447_v52 = vadd.f32 %v3559_v61, %v4627_v24 }
 0x229   : > { %2653 = vst [vmem:[%s4646_s29 + $0xd0] sm:$0xff] %v2605_v42  ;;  %v2684_v55 = vadd.f32 %v2683_v33, %v2605_v42  ;;  %v2723_v29 = vmul.f32 %v2605_v42, %v2605_v42  ;;  %v2608_v28 = vadd.f32 %v3671_v20, %v2447_v52  ;;  %v3560_v8 = vpop.f32.mrb[152].mxu1  ;;  %v3672_v22 = vpop.f32.mrb[152].mxu0 }
 0x22a   : > { %v3561_v0 = vpop.f32.mrb[153].mxu1  ;;  %v3673_v38 = vpop.f32.mrb[153].mxu0 }
 0x22b   : > { %v2754_v60 = vadd.f32 %v2753_v56, %v2723_v29  ;;  %2654 = vst [vmem:[%s4646_s29 + $0xd8] sm:$0xff] %v2608_v28  ;;  %v2685_v62 = vadd.f32 %v2684_v55, %v2608_v28  ;;  %v2724_v11 = vmul.f32 %v2608_v28, %v2608_v28  ;;  %v3562_v49 = vadd.f32 %v3561_v0, %v3560_v8  ;;  %v3563_v37 = vpop.f32.mrb[154].mxu1  ;;  %v3675_v57 = vpop.f32.mrb[154].mxu0 }
 0x22c   : > { %v3674_v15 = vadd.f32 %v3673_v38, %v3672_v22  ;;  %v3564_v26 = vpop.f32.mrb[155].mxu1  ;;  %v3676_v1 = vpop.f32.mrb[155].mxu0 }
 0x22d   : > { %v2755_v24 = vadd.f32 %v2754_v60, %v2724_v11  ;;  %v2452_v36 = vadd.f32 %v3562_v49, %v4630_v53  ;;  %v3565_v59 = vadd.f32 %v3564_v26, %v3563_v37  ;;  %v3677_v19 = vadd.f32 %v3676_v1, %v3675_v57 }
 0x22f   : > { %v2613_v63 = vadd.f32 %v3674_v15, %v2452_v36  ;;  %v2455_v2 = vadd.f32 %v3565_v59, %v4633_v51 }
 0x231   : > { %2655 = vst [vmem:[%s4646_s29 + $0xe0] sm:$0xff] %v2613_v63  ;;  %v2686_v10 = vadd.f32 %v2685_v62, %v2613_v63  ;;  %v2725_v17 = vmul.f32 %v2613_v63, %v2613_v63  ;;  %v2616_v4 = vadd.f32 %v3677_v19, %v2455_v2  ;;  %v3566_v12 = vpop.f32.mrb[156].mxu1  ;;  %v3678_v3 = vpop.f32.mrb[156].mxu0 }
 0x232   : > { %v3567_v5 = vpop.f32.mrb[157].mxu1  ;;  %v3679_v45 = vpop.f32.mrb[157].mxu0 }
 0x233   : > { %v2756_v14 = vadd.f32 %v2755_v24, %v2725_v17  ;;  %2656 = vst [vmem:[%s4646_s29 + $0xe8] sm:$0xff] %v2616_v4  ;;  %v2687_v30 = vadd.f32 %v2686_v10, %v2616_v4  ;;  %v2726_v13 = vmul.f32 %v2616_v4, %v2616_v4  ;;  %v3568_v25 = vadd.f32 %v3567_v5, %v3566_v12  ;;  %v3569_v53 = vpop.f32.mrb[158].mxu1  ;;  %v3681_v6 = vpop.f32.mrb[158].mxu0 }
 0x234   : > { %v3680_v58 = vadd.f32 %v3679_v45, %v3678_v3  ;;  %v3570_v35 = vpop.f32.mrb[159].mxu1  ;;  %v3682_v51 = vpop.f32.mrb[159].mxu0 }
 0x235   : > { %v2757_v16 = vadd.f32 %v2756_v14, %v2726_v13  ;;  %v2460_v9 = vadd.f32 %v3568_v25, %v4636_v7  ;;  %v3571_v43 = vadd.f32 %v3570_v35, %v3569_v53  ;;  %v3683_v48 = vadd.f32 %v3682_v51, %v3681_v6 }
 0x237   : > { %v2621_v31 = vadd.f32 %v3680_v58, %v2460_v9  ;;  %v2463_v46 = vadd.f32 %v3571_v43, %v4639_v18 }
 0x239   : > { %2657 = vst [vmem:[%s4646_s29 + $0xf0] sm:$0xff] %v2621_v31  ;;  %v2688_v23 = vadd.f32 %v2687_v30, %v2621_v31  ;;  %v2727_v27 = vmul.f32 %v2621_v31, %v2621_v31  ;;  %v2624_v32 = vadd.f32 %v3683_v48, %v2463_v46 }
 0x23b   : > { %v2758_v47 = vadd.f32 %v2757_v16, %v2727_v27  ;;  %2658 = vst [vmem:[%s4646_s29 + $0xf8] sm:$0xff] %v2624_v32  ;;  %v2689_v33 = vadd.f32 %v2688_v23, %v2624_v32  ;;  %v2728_v34 = vmul.f32 %v2624_v32, %v2624_v32 }
 0x23d   : > { %v2690_v41 = vrot.slane %v2689_v33, 4  ;;  %v2759_v21 = vadd.f32 %v2758_v47, %v2728_v34 }
 0x23f   : > { %v2691_v50 = vadd.f32 %v2690_v41, %v2689_v33  ;;  %v2760_v40 = vrot.slane %v2759_v21, 4 }
 0x241   : > { %v2692_v7 = vrot.slane %v2691_v50, 2  ;;  %v2761_v39 = vadd.f32 %v2760_v40, %v2759_v21 }
 0x243   : > { %v2693_v44 = vadd.f32 %v2692_v7, %v2691_v50  ;;  %v2762_v56 = vrot.slane %v2761_v39, 2 }
 0x245   : > { %v2694_v18 = vrot.slane %v2693_v44, 1  ;;  %v2763_v54 = vadd.f32 %v2762_v56, %v2761_v39 }
 0x247   : > { %v2695_v61 = vadd.f32 %v2694_v18, %v2693_v44  ;;  %v2764_v20 = vrot.slane %v2763_v54, 1 }
 0x249   : > { %2696 = vst [vmem:[%s217_s5] sm:$0x1] %v2695_v61  ;;  %v2765_v42 = vadd.f32 %v2764_v20, %v2763_v54 }
 0x24b   : > { %2766 = vst [vmem:[%s220_s8] sm:$0x1] %v2765_v42 }
 0x24c PF: > { %s15_s15 = sadd.s32 1, %s4035_s15  }
 0x24d   : > { %p12_p5 = scmp.ge.s32.totalorder %s15_s15, 4  }
 0x24f   :  { %14 = sbr.rel (!%p12_p5) target bundleno = 1 (0x1), region = 82 }

</bundles_post_ra>
